<compile_context>
chip_gen: v7x
topology: tpu7x:2x2x1
jax: 0.10.0
libtpu: 0.0.40
codegen_flags: <defaults>
</compile_context>

<pallas_src>
import numpy as np
import jax
import jax.numpy as jnp
from jax.experimental import pallas as pl
from jax.experimental.pallas import tpu as pltpu

LANE = 128


# --------------------------------------------------------------------------
# Kernel
# --------------------------------------------------------------------------
def _cvae_kernel(img_ref, lbl_ref, dz_ref,
                 Wi_ref, bi_ref,
                 Wlbl_ref, blbl_ref,
                 We1a_ref, We1b_ref, be1_ref,
                 We2_ref, be2_ref,
                 Wmuls_ref, bmuls_ref,
                 Wdz_ref, bdz_ref,
                 Wd1a_ref, Wd1b_ref, bd1_ref,
                 Wd2_ref, bd2_ref,
                 Wd3_ref, bd3_ref,
                 x_ref, mu_ref, ls_ref):
    f32 = jnp.float32
    bf16 = jnp.bfloat16
    Hp = Wi_ref.shape[1]          # padded hidden size
    Zp = dz_ref.shape[1]          # padded latent size

    def mm(a_bf16, w_ref):
        # bf16 MXU operands, f32 accumulation.
        return jnp.dot(a_bf16, w_ref[...], preferred_element_type=f32)

    # ---------------- encode ----------------
    img_h = mm(img_ref[...], Wi_ref) + bi_ref[...]              # (TB, Hp) f32

    # Fused label matmul: columns [0,Hp) = enc_label_fc, [Hp,2Hp) = dec_label_fc.
    lab_h = mm(lbl_ref[...], Wlbl_ref) + blbl_ref[...]          # (TB, 2Hp) f32
    lbl_h = lab_h[:, :Hp]
    dec_l_h = lab_h[:, Hp:]

    # concat([img_h, lbl_h], 1) @ We1 == img_h @ We1[:H] + lbl_h @ We1[H:]
    h = (mm(img_h.astype(bf16), We1a_ref)
         + mm(lbl_h.astype(bf16), We1b_ref) + be1_ref[...])
    h = jnp.maximum(h, 0.0)                                      # ReLU (f32 VPU)
    h = jnp.maximum(mm(h.astype(bf16), We2_ref) + be2_ref[...], 0.0)

    # Fused z_mean | z_logstd matmul (single 256-wide N tile, one bf16 cast).
    ms = mm(h.astype(bf16), Wmuls_ref) + bmuls_ref[...]          # (TB, 2Zp)
    mu = ms[:, :Zp]
    logsigma = ms[:, Zp:]
    z = mu + jnp.exp(0.5 * logsigma) * dz_ref[...]               # reparameterize

    # ---------------- decode ----------------
    z_h = mm(z.astype(bf16), Wdz_ref) + bdz_ref[...]             # (TB, Hp)

    d = (mm(z_h.astype(bf16), Wd1a_ref)
         + mm(dec_l_h.astype(bf16), Wd1b_ref) + bd1_ref[...])
    d = jnp.maximum(d, 0.0)
    d = jnp.maximum(mm(d.astype(bf16), Wd2_ref) + bd2_ref[...], 0.0)

    logits = mm(d.astype(bf16), Wd3_ref) + bd3_ref[...]          # (TB, Dp)

    # Numerically safe sigmoid: clamp so exp(-t) never overflows; exp + approx
    # reciprocal both run on the EUP slot (free w.r.t. VALU).
    t = jnp.clip(logits, -30.0, 30.0)
    x = pl.reciprocal(1.0 + jnp.exp(-t), approx=True)

    x_ref[...] = x
    mu_ref[...] = mu
    ls_ref[...] = logsigma


# --------------------------------------------------------------------------
# Parameter init (PyTorch-default-style, weights stored as (in, out))
# --------------------------------------------------------------------------
def _init_linear(key, fan_in, fan_out):
    kw, kb = jax.random.split(key)
    bound = 1.0 / np.sqrt(fan_in)
    W = jax.random.uniform(kw, (fan_in, fan_out), jnp.float32, -bound, bound)
    b = jax.random.uniform(kb, (1, fan_out), jnp.float32, -bound, bound)
    return W, b


def init_cvae_params(key, img_size, label_size, latent_size, hidden_size):
    d_img = int(np.prod(img_size))
    H, H2 = hidden_size, 2 * hidden_size
    keys = jax.random.split(key, 11)
    p = {}
    p["enc_img_fc"]    = _init_linear(keys[0], d_img, H)
    p["enc_label_fc"]  = _init_linear(keys[1], label_size, H)
    p["enc1"]          = _init_linear(keys[2], H2, H2)
    p["enc2"]          = _init_linear(keys[3], H2, H2)
    p["z_mean"]        = _init_linear(keys[4], H2, latent_size)
    p["z_logstd"]      = _init_linear(keys[5], H2, latent_size)
    p["dec_latent_fc"] = _init_linear(keys[6], latent_size, H)
    p["dec_label_fc"]  = _init_linear(keys[7], label_size, H)
    p["dec1"]          = _init_linear(keys[8], H2, H2)
    p["dec2"]          = _init_linear(keys[9], H2, H2)
    p["dec3"]          = _init_linear(keys[10], H2, d_img)
    return p


# --------------------------------------------------------------------------
# One-time weight preparation (hoisted out of the forward path)
# --------------------------------------------------------------------------
def _round_up(x, m):
    return ((x + m - 1) // m) * m


def _pad2(a, rows, cols):
    r, c = a.shape
    return jnp.pad(a, ((0, rows - r), (0, cols - c)))


def prepare_cvae_weights(params):
    """Pad to lane multiples, fuse shared-LHS layers, cast weights to bf16.

    Done once; the returned structure is what cvae_forward consumes, so the
    per-call forward pass never touches f32 weights again.
    """
    Wi, bi = params["enc_img_fc"];      Wl, bl = params["enc_label_fc"]
    We1, be1 = params["enc1"];          We2, be2 = params["enc2"]
    Wmu, bmu = params["z_mean"];        Wls, bls = params["z_logstd"]
    Wdz, bdz = params["dec_latent_fc"]; Wdl, bdl = params["dec_label_fc"]
    Wd1, bd1 = params["dec1"];          Wd2, bd2 = params["dec2"]
    Wd3, bd3 = params["dec3"]

    d_img = Wi.shape[0]
    label = Wl.shape[0]
    H = Wi.shape[1]
    latent = Wmu.shape[1]

    Dp = _round_up(d_img, LANE)
    Lp = _round_up(label, LANE)
    Zp = _round_up(latent, LANE)
    Hp = _round_up(H, LANE)
    H2p = 2 * Hp

    def padW(W, rp, cp):
        return _pad2(W.astype(jnp.float32), rp, cp).astype(jnp.bfloat16)

    def padB(b, cp):
        return _pad2(b.astype(jnp.float32), 1, cp)

    # Fused shared-LHS layers.
    Wlbl = jnp.concatenate(
        [_pad2(Wl.astype(jnp.float32), Lp, Hp),
         _pad2(Wdl.astype(jnp.float32), Lp, Hp)], axis=1).astype(jnp.bfloat16)
    blbl = jnp.concatenate([padB(bl, Hp), padB(bdl, Hp)], axis=1)
    Wmuls = jnp.concatenate(
        [_pad2(Wmu.astype(jnp.float32), H2p, Zp),
         _pad2(Wls.astype(jnp.float32), H2p, Zp)], axis=1).astype(jnp.bfloat16)
    bmuls = jnp.concatenate([padB(bmu, Zp), padB(bls, Zp)], axis=1)

    weights = [
        padW(Wi, Dp, Hp),        padB(bi, Hp),
        Wlbl,                    blbl,
        padW(We1[:H], Hp, H2p),  padW(We1[H:], Hp, H2p),  padB(be1, H2p),
        padW(We2, H2p, H2p),     padB(be2, H2p),
        Wmuls,                   bmuls,
        padW(Wdz, Zp, Hp),       padB(bdz, Hp),
        padW(Wd1[:H], Hp, H2p),  padW(Wd1[H:], Hp, H2p),  padB(bd1, H2p),
        padW(Wd2, H2p, H2p),     padB(bd2, H2p),
        padW(Wd3, H2p, Dp),      padB(bd3, Dp),
    ]
    dims = dict(d_img=d_img, label=label, latent=latent, hidden=H,
                Dp=Dp, Lp=Lp, Zp=Zp, Hp=Hp, H2p=H2p)
    return {"weights": weights, "dims": dims}


# --------------------------------------------------------------------------
# Forward wrapper
# --------------------------------------------------------------------------
def _choose_batch_tile(B, batch_tile):
    """TB is a multiple of 16 (bf16 sublane packing); balance tiles so the
    tail is not mostly padding; split into >=2 tiles when the batch is big
    enough to feed both TensorCores (v7x megacore)."""
    cdiv = lambda a, b: -(-a // b)
    B16 = _round_up(max(int(B), 1), 16)
    tb_cap = max(16, _round_up(min(int(batch_tile), B16), 16))
    n_tiles = cdiv(B16, tb_cap)
    if n_tiles == 1 and B16 >= 64:
        n_tiles = 2
    tb = _round_up(cdiv(B16, n_tiles), 16)
    return tb, tb * n_tiles


def cvae_forward(prepared, batch_img, batch_label, dz, *, batch_tile=256):
    """Returns (x, mu, logsigma) exactly like CVAE.forward."""
    dims = prepared["dims"]
    weights = prepared["weights"]
    Dp, Lp, Zp = dims["Dp"], dims["Lp"], dims["Zp"]
    Hp, H2p = dims["Hp"], dims["H2p"]
    d_img, latent = dims["d_img"], dims["latent"]

    B = batch_img.shape[0]
    img_flat = batch_img.reshape(B, -1).astype(jnp.float32)     # view(B, -1)

    TB, Bp = _choose_batch_tile(B, batch_tile)
    grid = (Bp // TB,)

    # Batch-tiled activations (matmul-only inputs go bf16; dz stays f32).
    img_p = _pad2(img_flat, Bp, Dp).astype(jnp.bfloat16)
    lbl_p = _pad2(batch_label.astype(jnp.float32), Bp, Lp).astype(jnp.bfloat16)
    dz_p = _pad2(dz.astype(jnp.float32), Bp, Zp)

    # ---- BlockSpecs --------------------------------------------------------
    def act_spec(cols):
        return pl.BlockSpec((TB, cols), lambda i: (i, 0))

    def weight_specs(single_buffered):
        specs = []
        for w in weights:
            if single_buffered:
                # Constant index_map -> second pipeline buffer is pure waste.
                specs.append(pl.BlockSpec(w.shape, lambda i: (0, 0),
                                          pipeline_mode=pl.Buffered(1)))
            else:
                specs.append(pl.BlockSpec(w.shape, lambda i: (0, 0)))
        return specs

    out_specs = (act_spec(Dp), act_spec(Zp), act_spec(Zp))
    out_shape = (
        jax.ShapeDtypeStruct((Bp, Dp), jnp.float32),
        jax.ShapeDtypeStruct((Bp, Zp), jnp.float32),
        jax.ShapeDtypeStruct((Bp, Zp), jnp.float32),
    )

    # ---- cost estimate & generation-aware VMEM budget ----------------------
    layer_mn = [(Dp, Hp), (Lp, 2 * Hp), (Hp, H2p), (Hp, H2p), (H2p, H2p),
                (H2p, 2 * Zp), (Zp, Hp), (Hp, H2p), (Hp, H2p), (H2p, H2p),
                (H2p, Dp)]
    flops = 2 * Bp * sum(m * n for m, n in layer_mn)
    transcendentals = Bp * (Zp + 2 * Dp)
    weight_bytes = sum(int(w.size) * w.dtype.itemsize for w in weights)
    io_bytes = (int(img_p.size) * 2 + int(lbl_p.size) * 2 + int(dz_p.size) * 4
                + Bp * Dp * 4 + 2 * Bp * Zp * 4)
    cost = pl.CostEstimate(flops=int(flops),
                           transcendentals=int(transcendentals),
                           bytes_accessed=int(weight_bytes + io_bytes))

    tile_io_bytes = TB * (Dp * 2 + Lp * 2 + Zp * 4 + Dp * 4 + 2 * Zp * 4)
    act_bytes = TB * (3 * H2p + 3 * Hp + 3 * Zp + 2 * Dp) * 4   # intermediates
    vmem_need = 2 * weight_bytes + 2 * tile_io_bytes + act_bytes + (4 << 20)
    try:
        vmem_cap = int(pltpu.get_tpu_info().vmem_capacity_bytes)
    except Exception:
        vmem_cap = 64 << 20          # conservative per-TC default (v7x-safe)
    vmem_ceiling = vmem_cap - max(8 << 20, vmem_cap // 8)       # headroom
    vmem_limit = int(min(max(vmem_need, 32 << 20), vmem_ceiling))

    compiler_params = pltpu.CompilerParams(
        dimension_semantics=("parallel",),
        vmem_limit_bytes=vmem_limit)

    def build(single_buffered_weights):
        in_specs = [act_spec(Dp), act_spec(Lp), act_spec(Zp)]
        in_specs += weight_specs(single_buffered_weights)
        return pl.pallas_call(
            _cvae_kernel,
            out_shape=out_shape,
            grid_spec=pltpu.PrefetchScalarGridSpec(
                num_scalar_prefetch=0,
                grid=grid,
                in_specs=in_specs,
                out_specs=out_specs),
            compiler_params=compiler_params,
            cost_estimate=cost)

    try:
        x_p, mu_p, ls_p = build(True)(img_p, lbl_p, dz_p, *weights)
    except Exception:
        # Fallback if this JAX build rejects pipeline_mode=Buffered(1).
        x_p, mu_p, ls_p = build(False)(img_p, lbl_p, dz_p, *weights)

    # Strip batch / feature padding.
    return x_p[:B, :d_img], mu_p[:B, :latent], ls_p[:B, :latent]


# --------------------------------------------------------------------------
# Pure-JAX reference (mirrors the PyTorch module) for verification
# --------------------------------------------------------------------------
def cvae_forward_ref(params, batch_img, batch_label, dz):
    def lin(name, x):
        W, b = params[name]
        return x @ W + b

    B = batch_img.shape[0]
    img_flat = batch_img.reshape(B, -1)
    h = jnp.concatenate([lin("enc_img_fc", img_flat),
                         lin("enc_label_fc", batch_label)], axis=1)
    h = jax.nn.relu(lin("enc1", h))
    h = jax.nn.relu(lin("enc2", h))
    mu = lin("z_mean", h)
    logsigma = lin("z_logstd", h)
    z = mu + jnp.exp(0.5 * logsigma) * dz
    d = jnp.concatenate([lin("dec_latent_fc", z),
                         lin("dec_label_fc", batch_label)], axis=1)
    d = jax.nn.relu(lin("dec1", d))
    d = jax.nn.relu(lin("dec2", d))
    x = jax.nn.sigmoid(lin("dec3", d))
    return x, mu, logsigma


if __name__ == "__main__":
    # Small shapes consistent with the module's forward.
    img_size = (1, 16, 16)   # (C, H, W) -> 256 flat features
    label_size = 10
    latent_size = 8
    hidden_size = 32
    batch = 2

    key = jax.random.PRNGKey(0)
    k_params, k_img, k_lbl, k_dz = jax.random.split(key, 4)

    params = init_cvae_params(k_params, img_size, label_size, latent_size,
                              hidden_size)
    prepared = prepare_cvae_weights(params)   # one-time weight prep

    batch_img = jax.random.uniform(k_img, (batch,) + img_size, jnp.float32)
    batch_label = jax.nn.one_hot(
        jax.random.randint(k_lbl, (batch,), 0, label_size), label_size,
        dtype=jnp.float32)
    dz = jax.random.normal(k_dz, (batch, latent_size), jnp.float32)

    x, mu, logsigma = cvae_forward(prepared, batch_img, batch_label, dz)
    jax.block_until_ready((x, mu, logsigma))

    # Correctness check against the f32 pure-JAX reference.  Tolerance is
    # loosened (vs 1e-5) because the kernel uses bf16 MXU operands + approx
    # EUP reciprocal for the sigmoid.
    x_r, mu_r, ls_r = cvae_forward_ref(params, batch_img, batch_label, dz)
    np.testing.assert_allclose(np.asarray(x), np.asarray(x_r),
                               rtol=2e-2, atol=2e-2)
    np.testing.assert_allclose(np.asarray(mu), np.asarray(mu_r),
                               rtol=2e-2, atol=2e-2)
    np.testing.assert_allclose(np.asarray(logsigma), np.asarray(ls_r),
                               rtol=2e-2, atol=2e-2)

    print("KERNEL_OK")
</pallas_src>

<mosaic_0001>
module attributes {stable_mosaic.version = 11 : i64} {
  func.func @_cvae_kernel(%arg0: i32, %arg1: memref<16x256xbf16, #tpu.memory_space<vmem>>, %arg2: memref<16x128xbf16, #tpu.memory_space<vmem>>, %arg3: memref<16x128xf32, #tpu.memory_space<vmem>>, %arg4: memref<256x128xbf16, #tpu.memory_space<vmem>>, %arg5: memref<1x128xf32, #tpu.memory_space<vmem>>, %arg6: memref<128x256xbf16, #tpu.memory_space<vmem>>, %arg7: memref<1x256xf32, #tpu.memory_space<vmem>>, %arg8: memref<128x256xbf16, #tpu.memory_space<vmem>>, %arg9: memref<128x256xbf16, #tpu.memory_space<vmem>>, %arg10: memref<1x256xf32, #tpu.memory_space<vmem>>, %arg11: memref<256x256xbf16, #tpu.memory_space<vmem>>, %arg12: memref<1x256xf32, #tpu.memory_space<vmem>>, %arg13: memref<256x256xbf16, #tpu.memory_space<vmem>>, %arg14: memref<1x256xf32, #tpu.memory_space<vmem>>, %arg15: memref<128x128xbf16, #tpu.memory_space<vmem>>, %arg16: memref<1x128xf32, #tpu.memory_space<vmem>>, %arg17: memref<128x256xbf16, #tpu.memory_space<vmem>>, %arg18: memref<128x256xbf16, #tpu.memory_space<vmem>>, %arg19: memref<1x256xf32, #tpu.memory_space<vmem>>, %arg20: memref<256x256xbf16, #tpu.memory_space<vmem>>, %arg21: memref<1x256xf32, #tpu.memory_space<vmem>>, %arg22: memref<256x256xbf16, #tpu.memory_space<vmem>>, %arg23: memref<1x256xf32, #tpu.memory_space<vmem>>, %arg24: memref<16x256xf32, #tpu.memory_space<vmem>>, %arg25: memref<16x128xf32, #tpu.memory_space<vmem>>, %arg26: memref<16x128xf32, #tpu.memory_space<vmem>>) attributes {dimension_semantics = [#tpu.dimension_semantics<parallel>], iteration_bounds = array<i64: 1>, scalar_prefetch = 0 : i64, scratch_operands = 0 : i64, tpu.core_type = #tpu.core_type<tc>, window_params = [{transform_indices = @transform_0, window_bounds = array<i64: 16, 256>}, {transform_indices = @transform_1, window_bounds = array<i64: 16, 128>}, {transform_indices = @transform_2, window_bounds = array<i64: 16, 128>}, {pipeline_mode = #tpu.pipeline_mode<synchronous>, transform_indices = @transform_3, window_bounds = array<i64: 256, 128>}, {pipeline_mode = #tpu.pipeline_mode<synchronous>, transform_indices = @transform_4, window_bounds = array<i64: 1, 128>}, {pipeline_mode = #tpu.pipeline_mode<synchronous>, transform_indices = @transform_5, window_bounds = array<i64: 128, 256>}, {pipeline_mode = #tpu.pipeline_mode<synchronous>, transform_indices = @transform_6, window_bounds = array<i64: 1, 256>}, {pipeline_mode = #tpu.pipeline_mode<synchronous>, transform_indices = @transform_7, window_bounds = array<i64: 128, 256>}, {pipeline_mode = #tpu.pipeline_mode<synchronous>, transform_indices = @transform_8, window_bounds = array<i64: 128, 256>}, {pipeline_mode = #tpu.pipeline_mode<synchronous>, transform_indices = @transform_9, window_bounds = array<i64: 1, 256>}, {pipeline_mode = #tpu.pipeline_mode<synchronous>, transform_indices = @transform_10, window_bounds = array<i64: 256, 256>}, {pipeline_mode = #tpu.pipeline_mode<synchronous>, transform_indices = @transform_11, window_bounds = array<i64: 1, 256>}, {pipeline_mode = #tpu.pipeline_mode<synchronous>, transform_indices = @transform_12, window_bounds = array<i64: 256, 256>}, {pipeline_mode = #tpu.pipeline_mode<synchronous>, transform_indices = @transform_13, window_bounds = array<i64: 1, 256>}, {pipeline_mode = #tpu.pipeline_mode<synchronous>, transform_indices = @transform_14, window_bounds = array<i64: 128, 128>}, {pipeline_mode = #tpu.pipeline_mode<synchronous>, transform_indices = @transform_15, window_bounds = array<i64: 1, 128>}, {pipeline_mode = #tpu.pipeline_mode<synchronous>, transform_indices = @transform_16, window_bounds = array<i64: 128, 256>}, {pipeline_mode = #tpu.pipeline_mode<synchronous>, transform_indices = @transform_17, window_bounds = array<i64: 128, 256>}, {pipeline_mode = #tpu.pipeline_mode<synchronous>, transform_indices = @transform_18, window_bounds = array<i64: 1, 256>}, {pipeline_mode = #tpu.pipeline_mode<synchronous>, transform_indices = @transform_19, window_bounds = array<i64: 256, 256>}, {pipeline_mode = #tpu.pipeline_mode<synchronous>, transform_indices = @transform_20, window_bounds = array<i64: 1, 256>}, {pipeline_mode = #tpu.pipeline_mode<synchronous>, transform_indices = @transform_21, window_bounds = array<i64: 256, 256>}, {pipeline_mode = #tpu.pipeline_mode<synchronous>, transform_indices = @transform_22, window_bounds = array<i64: 1, 256>}, {transform_indices = @transform_23, window_bounds = array<i64: 16, 256>}, {transform_indices = @transform_24, window_bounds = array<i64: 16, 128>}, {transform_indices = @transform_25, window_bounds = array<i64: 16, 128>}]} {
    %c0 = arith.constant 0 : index
    %c0_0 = arith.constant 0 : index
    %0 = vector.load %arg1[%c0, %c0_0] : memref<16x256xbf16, #tpu.memory_space<vmem>>, vector<16x256xbf16>
    %c0_1 = arith.constant 0 : index
    %c0_2 = arith.constant 0 : index
    %1 = vector.load %arg4[%c0_1, %c0_2] : memref<256x128xbf16, #tpu.memory_space<vmem>>, vector<256x128xbf16>
    %cst = arith.constant dense<0.000000e+00> : vector<16x128xf32>
    %2 = tpu.matmul %0, %1, %cst {dimension_numbers = #tpu.dot_dimension_numbers<[1], [0], [0], [1], [0, 0, 1, 1], [], []>} : vector<16x256xbf16>, vector<256x128xbf16>, vector<16x128xf32> -> vector<16x128xf32>
    %c0_3 = arith.constant 0 : index
    %c0_4 = arith.constant 0 : index
    %3 = vector.load %arg5[%c0_3, %c0_4] : memref<1x128xf32, #tpu.memory_space<vmem>>, vector<1x128xf32>
    %4 = vector.broadcast %3 : vector<1x128xf32> to vector<16x128xf32>
    %5 = arith.addf %2, %4 : vector<16x128xf32>
    %c0_5 = arith.constant 0 : index
    %c0_6 = arith.constant 0 : index
    %6 = vector.load %arg2[%c0_5, %c0_6] : memref<16x128xbf16, #tpu.memory_space<vmem>>, vector<16x128xbf16>
    %c0_7 = arith.constant 0 : index
    %c0_8 = arith.constant 0 : index
    %7 = vector.load %arg6[%c0_7, %c0_8] : memref<128x256xbf16, #tpu.memory_space<vmem>>, vector<128x256xbf16>
    %cst_9 = arith.constant dense<0.000000e+00> : vector<16x256xf32>
    %8 = tpu.matmul %6, %7, %cst_9 {dimension_numbers = #tpu.dot_dimension_numbers<[1], [0], [0], [1], [0, 0, 1, 1], [], []>} : vector<16x128xbf16>, vector<128x256xbf16>, vector<16x256xf32> -> vector<16x256xf32>
    %c0_10 = arith.constant 0 : index
    %c0_11 = arith.constant 0 : index
    %9 = vector.load %arg7[%c0_10, %c0_11] : memref<1x256xf32, #tpu.memory_space<vmem>>, vector<1x256xf32>
    %10 = vector.broadcast %9 : vector<1x256xf32> to vector<16x256xf32>
    %11 = arith.addf %8, %10 : vector<16x256xf32>
    %12 = vector.extract_strided_slice %11 {offsets = [0, 0], sizes = [16, 128], strides = [1, 1]} : vector<16x256xf32> to vector<16x128xf32>
    %13 = vector.extract_strided_slice %11 {offsets = [0, 128], sizes = [16, 128], strides = [1, 1]} : vector<16x256xf32> to vector<16x128xf32>
    %14 = arith.truncf %5 : vector<16x128xf32> to vector<16x128xbf16>
    %c0_12 = arith.constant 0 : index
    %c0_13 = arith.constant 0 : index
    %15 = vector.load %arg8[%c0_12, %c0_13] : memref<128x256xbf16, #tpu.memory_space<vmem>>, vector<128x256xbf16>
    %cst_14 = arith.constant dense<0.000000e+00> : vector<16x256xf32>
    %16 = tpu.matmul %14, %15, %cst_14 {dimension_numbers = #tpu.dot_dimension_numbers<[1], [0], [0], [1], [0, 0, 1, 1], [], []>} : vector<16x128xbf16>, vector<128x256xbf16>, vector<16x256xf32> -> vector<16x256xf32>
    %17 = arith.truncf %12 : vector<16x128xf32> to vector<16x128xbf16>
    %c0_15 = arith.constant 0 : index
    %c0_16 = arith.constant 0 : index
    %18 = vector.load %arg9[%c0_15, %c0_16] : memref<128x256xbf16, #tpu.memory_space<vmem>>, vector<128x256xbf16>
    %cst_17 = arith.constant dense<0.000000e+00> : vector<16x256xf32>
    %19 = tpu.matmul %17, %18, %cst_17 {dimension_numbers = #tpu.dot_dimension_numbers<[1], [0], [0], [1], [0, 0, 1, 1], [], []>} : vector<16x128xbf16>, vector<128x256xbf16>, vector<16x256xf32> -> vector<16x256xf32>
    %20 = arith.addf %16, %19 : vector<16x256xf32>
    %c0_18 = arith.constant 0 : index
    %c0_19 = arith.constant 0 : index
    %21 = vector.load %arg10[%c0_18, %c0_19] : memref<1x256xf32, #tpu.memory_space<vmem>>, vector<1x256xf32>
    %22 = vector.broadcast %21 : vector<1x256xf32> to vector<16x256xf32>
    %23 = arith.addf %20, %22 : vector<16x256xf32>
    %cst_20 = arith.constant 0.000000e+00 : f32
    %24 = vector.broadcast %cst_20 : f32 to vector<16x256xf32>
    %25 = arith.maximumf %23, %24 : vector<16x256xf32>
    %26 = arith.truncf %25 : vector<16x256xf32> to vector<16x256xbf16>
    %c0_21 = arith.constant 0 : index
    %c0_22 = arith.constant 0 : index
    %27 = vector.load %arg11[%c0_21, %c0_22] : memref<256x256xbf16, #tpu.memory_space<vmem>>, vector<256x256xbf16>
    %cst_23 = arith.constant dense<0.000000e+00> : vector<16x256xf32>
    %28 = tpu.matmul %26, %27, %cst_23 {dimension_numbers = #tpu.dot_dimension_numbers<[1], [0], [0], [1], [0, 0, 1, 1], [], []>} : vector<16x256xbf16>, vector<256x256xbf16>, vector<16x256xf32> -> vector<16x256xf32>
    %c0_24 = arith.constant 0 : index
    %c0_25 = arith.constant 0 : index
    %29 = vector.load %arg12[%c0_24, %c0_25] : memref<1x256xf32, #tpu.memory_space<vmem>>, vector<1x256xf32>
    %30 = vector.broadcast %29 : vector<1x256xf32> to vector<16x256xf32>
    %31 = arith.addf %28, %30 : vector<16x256xf32>
    %cst_26 = arith.constant 0.000000e+00 : f32
    %32 = vector.broadcast %cst_26 : f32 to vector<16x256xf32>
    %33 = arith.maximumf %31, %32 : vector<16x256xf32>
    %34 = arith.truncf %33 : vector<16x256xf32> to vector<16x256xbf16>
    %c0_27 = arith.constant 0 : index
    %c0_28 = arith.constant 0 : index
    %35 = vector.load %arg13[%c0_27, %c0_28] : memref<256x256xbf16, #tpu.memory_space<vmem>>, vector<256x256xbf16>
    %cst_29 = arith.constant dense<0.000000e+00> : vector<16x256xf32>
    %36 = tpu.matmul %34, %35, %cst_29 {dimension_numbers = #tpu.dot_dimension_numbers<[1], [0], [0], [1], [0, 0, 1, 1], [], []>} : vector<16x256xbf16>, vector<256x256xbf16>, vector<16x256xf32> -> vector<16x256xf32>
    %c0_30 = arith.constant 0 : index
    %c0_31 = arith.constant 0 : index
    %37 = vector.load %arg14[%c0_30, %c0_31] : memref<1x256xf32, #tpu.memory_space<vmem>>, vector<1x256xf32>
    %38 = vector.broadcast %37 : vector<1x256xf32> to vector<16x256xf32>
    %39 = arith.addf %36, %38 : vector<16x256xf32>
    %40 = vector.extract_strided_slice %39 {offsets = [0, 0], sizes = [16, 128], strides = [1, 1]} : vector<16x256xf32> to vector<16x128xf32>
    %41 = vector.extract_strided_slice %39 {offsets = [0, 128], sizes = [16, 128], strides = [1, 1]} : vector<16x256xf32> to vector<16x128xf32>
    %cst_32 = arith.constant 5.000000e-01 : f32
    %42 = vector.broadcast %cst_32 : f32 to vector<16x128xf32>
    %43 = arith.mulf %42, %41 : vector<16x128xf32>
    %44 = math.exp %43 : vector<16x128xf32>
    %c0_33 = arith.constant 0 : index
    %c0_34 = arith.constant 0 : index
    %45 = vector.load %arg3[%c0_33, %c0_34] : memref<16x128xf32, #tpu.memory_space<vmem>>, vector<16x128xf32>
    %46 = arith.mulf %44, %45 : vector<16x128xf32>
    %47 = arith.addf %40, %46 : vector<16x128xf32>
    %48 = arith.truncf %47 : vector<16x128xf32> to vector<16x128xbf16>
    %c0_35 = arith.constant 0 : index
    %c0_36 = arith.constant 0 : index
    %49 = vector.load %arg15[%c0_35, %c0_36] : memref<128x128xbf16, #tpu.memory_space<vmem>>, vector<128x128xbf16>
    %cst_37 = arith.constant dense<0.000000e+00> : vector<16x128xf32>
    %50 = tpu.matmul %48, %49, %cst_37 {dimension_numbers = #tpu.dot_dimension_numbers<[1], [0], [0], [1], [0, 0, 1, 1], [], []>} : vector<16x128xbf16>, vector<128x128xbf16>, vector<16x128xf32> -> vector<16x128xf32>
    %c0_38 = arith.constant 0 : index
    %c0_39 = arith.constant 0 : index
    %51 = vector.load %arg16[%c0_38, %c0_39] : memref<1x128xf32, #tpu.memory_space<vmem>>, vector<1x128xf32>
    %52 = vector.broadcast %51 : vector<1x128xf32> to vector<16x128xf32>
    %53 = arith.addf %50, %52 : vector<16x128xf32>
    %54 = arith.truncf %53 : vector<16x128xf32> to vector<16x128xbf16>
    %c0_40 = arith.constant 0 : index
    %c0_41 = arith.constant 0 : index
    %55 = vector.load %arg17[%c0_40, %c0_41] : memref<128x256xbf16, #tpu.memory_space<vmem>>, vector<128x256xbf16>
    %cst_42 = arith.constant dense<0.000000e+00> : vector<16x256xf32>
    %56 = tpu.matmul %54, %55, %cst_42 {dimension_numbers = #tpu.dot_dimension_numbers<[1], [0], [0], [1], [0, 0, 1, 1], [], []>} : vector<16x128xbf16>, vector<128x256xbf16>, vector<16x256xf32> -> vector<16x256xf32>
    %57 = arith.truncf %13 : vector<16x128xf32> to vector<16x128xbf16>
    %c0_43 = arith.constant 0 : index
    %c0_44 = arith.constant 0 : index
    %58 = vector.load %arg18[%c0_43, %c0_44] : memref<128x256xbf16, #tpu.memory_space<vmem>>, vector<128x256xbf16>
    %cst_45 = arith.constant dense<0.000000e+00> : vector<16x256xf32>
    %59 = tpu.matmul %57, %58, %cst_45 {dimension_numbers = #tpu.dot_dimension_numbers<[1], [0], [0], [1], [0, 0, 1, 1], [], []>} : vector<16x128xbf16>, vector<128x256xbf16>, vector<16x256xf32> -> vector<16x256xf32>
    %60 = arith.addf %56, %59 : vector<16x256xf32>
    %c0_46 = arith.constant 0 : index
    %c0_47 = arith.constant 0 : index
    %61 = vector.load %arg19[%c0_46, %c0_47] : memref<1x256xf32, #tpu.memory_space<vmem>>, vector<1x256xf32>
    %62 = vector.broadcast %61 : vector<1x256xf32> to vector<16x256xf32>
    %63 = arith.addf %60, %62 : vector<16x256xf32>
    %cst_48 = arith.constant 0.000000e+00 : f32
    %64 = vector.broadcast %cst_48 : f32 to vector<16x256xf32>
    %65 = arith.maximumf %63, %64 : vector<16x256xf32>
    %66 = arith.truncf %65 : vector<16x256xf32> to vector<16x256xbf16>
    %c0_49 = arith.constant 0 : index
    %c0_50 = arith.constant 0 : index
    %67 = vector.load %arg20[%c0_49, %c0_50] : memref<256x256xbf16, #tpu.memory_space<vmem>>, vector<256x256xbf16>
    %cst_51 = arith.constant dense<0.000000e+00> : vector<16x256xf32>
    %68 = tpu.matmul %66, %67, %cst_51 {dimension_numbers = #tpu.dot_dimension_numbers<[1], [0], [0], [1], [0, 0, 1, 1], [], []>} : vector<16x256xbf16>, vector<256x256xbf16>, vector<16x256xf32> -> vector<16x256xf32>
    %c0_52 = arith.constant 0 : index
    %c0_53 = arith.constant 0 : index
    %69 = vector.load %arg21[%c0_52, %c0_53] : memref<1x256xf32, #tpu.memory_space<vmem>>, vector<1x256xf32>
    %70 = vector.broadcast %69 : vector<1x256xf32> to vector<16x256xf32>
    %71 = arith.addf %68, %70 : vector<16x256xf32>
    %cst_54 = arith.constant 0.000000e+00 : f32
    %72 = vector.broadcast %cst_54 : f32 to vector<16x256xf32>
    %73 = arith.maximumf %71, %72 : vector<16x256xf32>
    %74 = arith.truncf %73 : vector<16x256xf32> to vector<16x256xbf16>
    %c0_55 = arith.constant 0 : index
    %c0_56 = arith.constant 0 : index
    %75 = vector.load %arg22[%c0_55, %c0_56] : memref<256x256xbf16, #tpu.memory_space<vmem>>, vector<256x256xbf16>
    %cst_57 = arith.constant dense<0.000000e+00> : vector<16x256xf32>
    %76 = tpu.matmul %74, %75, %cst_57 {dimension_numbers = #tpu.dot_dimension_numbers<[1], [0], [0], [1], [0, 0, 1, 1], [], []>} : vector<16x256xbf16>, vector<256x256xbf16>, vector<16x256xf32> -> vector<16x256xf32>
    %c0_58 = arith.constant 0 : index
    %c0_59 = arith.constant 0 : index
    %77 = vector.load %arg23[%c0_58, %c0_59] : memref<1x256xf32, #tpu.memory_space<vmem>>, vector<1x256xf32>
    %78 = vector.broadcast %77 : vector<1x256xf32> to vector<16x256xf32>
    %79 = arith.addf %76, %78 : vector<16x256xf32>
    %cst_60 = arith.constant -3.000000e+01 : f32
    %cst_61 = arith.constant 3.000000e+01 : f32
    %80 = vector.broadcast %cst_60 : f32 to vector<16x256xf32>
    %81 = arith.maximumf %80, %79 : vector<16x256xf32>
    %82 = vector.broadcast %cst_61 : f32 to vector<16x256xf32>
    %83 = arith.minimumf %82, %81 : vector<16x256xf32>
    %cst_62 = arith.constant 0.000000e+00 : f32
    %84 = vector.broadcast %cst_62 : f32 to vector<16x256xf32>
    %85 = arith.subf %84, %83 : vector<16x256xf32>
    %86 = math.exp %85 : vector<16x256xf32>
    %cst_63 = arith.constant 1.000000e+00 : f32
    %87 = vector.broadcast %cst_63 : f32 to vector<16x256xf32>
    %88 = arith.addf %87, %86 : vector<16x256xf32>
    %89 = tpu.reciprocal %88 {approx = true} : vector<16x256xf32> -> vector<16x256xf32>
    %c0_64 = arith.constant 0 : index
    %c0_65 = arith.constant 0 : index
    %90 = vector.load %arg24[%c0_64, %c0_65] : memref<16x256xf32, #tpu.memory_space<vmem>>, vector<16x256xf32>
    tpu.vector_store %arg24[%c0_64, %c0_65], %89 {strides = array<i32>} : memref<16x256xf32, #tpu.memory_space<vmem>>, vector<16x256xf32>,
    %c0_66 = arith.constant 0 : index
    %c0_67 = arith.constant 0 : index
    %91 = vector.load %arg25[%c0_66, %c0_67] : memref<16x128xf32, #tpu.memory_space<vmem>>, vector<16x128xf32>
    tpu.vector_store %arg25[%c0_66, %c0_67], %40 {strides = array<i32>} : memref<16x128xf32, #tpu.memory_space<vmem>>, vector<16x128xf32>,
    %c0_68 = arith.constant 0 : index
    %c0_69 = arith.constant 0 : index
    %92 = vector.load %arg26[%c0_68, %c0_69] : memref<16x128xf32, #tpu.memory_space<vmem>>, vector<16x128xf32>
    tpu.vector_store %arg26[%c0_68, %c0_69], %41 {strides = array<i32>} : memref<16x128xf32, #tpu.memory_space<vmem>>, vector<16x128xf32>,
    return
  }
  func.func @transform_0(%arg0: i32) -> (i32, i32) {
    %c0_i32 = arith.constant 0 : i32
    %c0_i32_0 = arith.constant 0 : i32
    return %arg0, %c0_i32 : i32, i32
  }
  func.func @transform_1(%arg0: i32) -> (i32, i32) {
    %c0_i32 = arith.constant 0 : i32
    %c0_i32_0 = arith.constant 0 : i32
    return %arg0, %c0_i32 : i32, i32
  }
  func.func @transform_2(%arg0: i32) -> (i32, i32) {
    %c0_i32 = arith.constant 0 : i32
    %c0_i32_0 = arith.constant 0 : i32
    return %arg0, %c0_i32 : i32, i32
  }
  func.func @transform_3(%arg0: i32) -> (i32, i32) {
    %c0_i32 = arith.constant 0 : i32
    %c0_i32_0 = arith.constant 0 : i32
    %c0_i32_1 = arith.constant 0 : i32
    return %c0_i32, %c0_i32_0 : i32, i32
  }
  func.func @transform_4(%arg0: i32) -> (i32, i32) {
    %c0_i32 = arith.constant 0 : i32
    %c0_i32_0 = arith.constant 0 : i32
    %c0_i32_1 = arith.constant 0 : i32
    return %c0_i32, %c0_i32_0 : i32, i32
  }
  func.func @transform_5(%arg0: i32) -> (i32, i32) {
    %c0_i32 = arith.constant 0 : i32
    %c0_i32_0 = arith.constant 0 : i32
    %c0_i32_1 = arith.constant 0 : i32
    return %c0_i32, %c0_i32_0 : i32, i32
  }
  func.func @transform_6(%arg0: i32) -> (i32, i32) {
    %c0_i32 = arith.constant 0 : i32
    %c0_i32_0 = arith.constant 0 : i32
    %c0_i32_1 = arith.constant 0 : i32
    return %c0_i32, %c0_i32_0 : i32, i32
  }
  func.func @transform_7(%arg0: i32) -> (i32, i32) {
    %c0_i32 = arith.constant 0 : i32
    %c0_i32_0 = arith.constant 0 : i32
    %c0_i32_1 = arith.constant 0 : i32
    return %c0_i32, %c0_i32_0 : i32, i32
  }
  func.func @transform_8(%arg0: i32) -> (i32, i32) {
    %c0_i32 = arith.constant 0 : i32
    %c0_i32_0 = arith.constant 0 : i32
    %c0_i32_1 = arith.constant 0 : i32
    return %c0_i32, %c0_i32_0 : i32, i32
  }
  func.func @transform_9(%arg0: i32) -> (i32, i32) {
    %c0_i32 = arith.constant 0 : i32
    %c0_i32_0 = arith.constant 0 : i32
    %c0_i32_1 = arith.constant 0 : i32
    return %c0_i32, %c0_i32_0 : i32, i32
  }
  func.func @transform_10(%arg0: i32) -> (i32, i32) {
    %c0_i32 = arith.constant 0 : i32
    %c0_i32_0 = arith.constant 0 : i32
    %c0_i32_1 = arith.constant 0 : i32
    return %c0_i32, %c0_i32_0 : i32, i32
  }
  func.func @transform_11(%arg0: i32) -> (i32, i32) {
    %c0_i32 = arith.constant 0 : i32
    %c0_i32_0 = arith.constant 0 : i32
    %c0_i32_1 = arith.constant 0 : i32
    return %c0_i32, %c0_i32_0 : i32, i32
  }
  func.func @transform_12(%arg0: i32) -> (i32, i32) {
    %c0_i32 = arith.constant 0 : i32
    %c0_i32_0 = arith.constant 0 : i32
    %c0_i32_1 = arith.constant 0 : i32
    return %c0_i32, %c0_i32_0 : i32, i32
  }
  func.func @transform_13(%arg0: i32) -> (i32, i32) {
    %c0_i32 = arith.constant 0 : i32
    %c0_i32_0 = arith.constant 0 : i32
    %c0_i32_1 = arith.constant 0 : i32
    return %c0_i32, %c0_i32_0 : i32, i32
  }
  func.func @transform_14(%arg0: i32) -> (i32, i32) {
    %c0_i32 = arith.constant 0 : i32
    %c0_i32_0 = arith.constant 0 : i32
    %c0_i32_1 = arith.constant 0 : i32
    return %c0_i32, %c0_i32_0 : i32, i32
  }
  func.func @transform_15(%arg0: i32) -> (i32, i32) {
    %c0_i32 = arith.constant 0 : i32
    %c0_i32_0 = arith.constant 0 : i32
    %c0_i32_1 = arith.constant 0 : i32
    return %c0_i32, %c0_i32_0 : i32, i32
  }
  func.func @transform_16(%arg0: i32) -> (i32, i32) {
    %c0_i32 = arith.constant 0 : i32
    %c0_i32_0 = arith.constant 0 : i32
    %c0_i32_1 = arith.constant 0 : i32
    return %c0_i32, %c0_i32_0 : i32, i32
  }
  func.func @transform_17(%arg0: i32) -> (i32, i32) {
    %c0_i32 = arith.constant 0 : i32
    %c0_i32_0 = arith.constant 0 : i32
    %c0_i32_1 = arith.constant 0 : i32
    return %c0_i32, %c0_i32_0 : i32, i32
  }
  func.func @transform_18(%arg0: i32) -> (i32, i32) {
    %c0_i32 = arith.constant 0 : i32
    %c0_i32_0 = arith.constant 0 : i32
    %c0_i32_1 = arith.constant 0 : i32
    return %c0_i32, %c0_i32_0 : i32, i32
  }
  func.func @transform_19(%arg0: i32) -> (i32, i32) {
    %c0_i32 = arith.constant 0 : i32
    %c0_i32_0 = arith.constant 0 : i32
    %c0_i32_1 = arith.constant 0 : i32
    return %c0_i32, %c0_i32_0 : i32, i32
  }
  func.func @transform_20(%arg0: i32) -> (i32, i32) {
    %c0_i32 = arith.constant 0 : i32
    %c0_i32_0 = arith.constant 0 : i32
    %c0_i32_1 = arith.constant 0 : i32
    return %c0_i32, %c0_i32_0 : i32, i32
  }
  func.func @transform_21(%arg0: i32) -> (i32, i32) {
    %c0_i32 = arith.constant 0 : i32
    %c0_i32_0 = arith.constant 0 : i32
    %c0_i32_1 = arith.constant 0 : i32
    return %c0_i32, %c0_i32_0 : i32, i32
  }
  func.func @transform_22(%arg0: i32) -> (i32, i32) {
    %c0_i32 = arith.constant 0 : i32
    %c0_i32_0 = arith.constant 0 : i32
    %c0_i32_1 = arith.constant 0 : i32
    return %c0_i32, %c0_i32_0 : i32, i32
  }
  func.func @transform_23(%arg0: i32) -> (i32, i32) {
    %c0_i32 = arith.constant 0 : i32
    %c0_i32_0 = arith.constant 0 : i32
    return %arg0, %c0_i32 : i32, i32
  }
  func.func @transform_24(%arg0: i32) -> (i32, i32) {
    %c0_i32 = arith.constant 0 : i32
    %c0_i32_0 = arith.constant 0 : i32
    return %arg0, %c0_i32 : i32, i32
  }
  func.func @transform_25(%arg0: i32) -> (i32, i32) {
    %c0_i32 = arith.constant 0 : i32
    %c0_i32_0 = arith.constant 0 : i32
    return %arg0, %c0_i32 : i32, i32
  }
}

module attributes {stable_mosaic.version = 11 : i64} {
  func.func @_cvae_kernel(%arg0: i32, %arg1: memref<16x256xbf16, #tpu.memory_space<vmem>>, %arg2: memref<16x128xbf16, #tpu.memory_space<vmem>>, %arg3: memref<16x128xf32, #tpu.memory_space<vmem>>, %arg4: memref<256x128xbf16, #tpu.memory_space<vmem>>, %arg5: memref<1x128xf32, #tpu.memory_space<vmem>>, %arg6: memref<128x256xbf16, #tpu.memory_space<vmem>>, %arg7: memref<1x256xf32, #tpu.memory_space<vmem>>, %arg8: memref<128x256xbf16, #tpu.memory_space<vmem>>, %arg9: memref<128x256xbf16, #tpu.memory_space<vmem>>, %arg10: memref<1x256xf32, #tpu.memory_space<vmem>>, %arg11: memref<256x256xbf16, #tpu.memory_space<vmem>>, %arg12: memref<1x256xf32, #tpu.memory_space<vmem>>, %arg13: memref<256x256xbf16, #tpu.memory_space<vmem>>, %arg14: memref<1x256xf32, #tpu.memory_space<vmem>>, %arg15: memref<128x128xbf16, #tpu.memory_space<vmem>>, %arg16: memref<1x128xf32, #tpu.memory_space<vmem>>, %arg17: memref<128x256xbf16, #tpu.memory_space<vmem>>, %arg18: memref<128x256xbf16, #tpu.memory_space<vmem>>, %arg19: memref<1x256xf32, #tpu.memory_space<vmem>>, %arg20: memref<256x256xbf16, #tpu.memory_space<vmem>>, %arg21: memref<1x256xf32, #tpu.memory_space<vmem>>, %arg22: memref<256x256xbf16, #tpu.memory_space<vmem>>, %arg23: memref<1x256xf32, #tpu.memory_space<vmem>>, %arg24: memref<16x256xf32, #tpu.memory_space<vmem>>, %arg25: memref<16x128xf32, #tpu.memory_space<vmem>>, %arg26: memref<16x128xf32, #tpu.memory_space<vmem>>) attributes {dimension_semantics = [#tpu.dimension_semantics<parallel>], iteration_bounds = array<i64: 1>, scalar_prefetch = 0 : i64, scratch_operands = 0 : i64, tpu.core_type = #tpu.core_type<tc>, window_params = [{transform_indices = @transform_0, window_bounds = array<i64: 16, 256>}, {transform_indices = @transform_1, window_bounds = array<i64: 16, 128>}, {transform_indices = @transform_2, window_bounds = array<i64: 16, 128>}, {pipeline_mode = #tpu.pipeline_mode<synchronous>, transform_indices = @transform_3, window_bounds = array<i64: 256, 128>}, {pipeline_mode = #tpu.pipeline_mode<synchronous>, transform_indices = @transform_4, window_bounds = array<i64: 1, 128>}, {pipeline_mode = #tpu.pipeline_mode<synchronous>, transform_indices = @transform_5, window_bounds = array<i64: 128, 256>}, {pipeline_mode = #tpu.pipeline_mode<synchronous>, transform_indices = @transform_6, window_bounds = array<i64: 1, 256>}, {pipeline_mode = #tpu.pipeline_mode<synchronous>, transform_indices = @transform_7, window_bounds = array<i64: 128, 256>}, {pipeline_mode = #tpu.pipeline_mode<synchronous>, transform_indices = @transform_8, window_bounds = array<i64: 128, 256>}, {pipeline_mode = #tpu.pipeline_mode<synchronous>, transform_indices = @transform_9, window_bounds = array<i64: 1, 256>}, {pipeline_mode = #tpu.pipeline_mode<synchronous>, transform_indices = @transform_10, window_bounds = array<i64: 256, 256>}, {pipeline_mode = #tpu.pipeline_mode<synchronous>, transform_indices = @transform_11, window_bounds = array<i64: 1, 256>}, {pipeline_mode = #tpu.pipeline_mode<synchronous>, transform_indices = @transform_12, window_bounds = array<i64: 256, 256>}, {pipeline_mode = #tpu.pipeline_mode<synchronous>, transform_indices = @transform_13, window_bounds = array<i64: 1, 256>}, {pipeline_mode = #tpu.pipeline_mode<synchronous>, transform_indices = @transform_14, window_bounds = array<i64: 128, 128>}, {pipeline_mode = #tpu.pipeline_mode<synchronous>, transform_indices = @transform_15, window_bounds = array<i64: 1, 128>}, {pipeline_mode = #tpu.pipeline_mode<synchronous>, transform_indices = @transform_16, window_bounds = array<i64: 128, 256>}, {pipeline_mode = #tpu.pipeline_mode<synchronous>, transform_indices = @transform_17, window_bounds = array<i64: 128, 256>}, {pipeline_mode = #tpu.pipeline_mode<synchronous>, transform_indices = @transform_18, window_bounds = array<i64: 1, 256>}, {pipeline_mode = #tpu.pipeline_mode<synchronous>, transform_indices = @transform_19, window_bounds = array<i64: 256, 256>}, {pipeline_mode = #tpu.pipeline_mode<synchronous>, transform_indices = @transform_20, window_bounds = array<i64: 1, 256>}, {pipeline_mode = #tpu.pipeline_mode<synchronous>, transform_indices = @transform_21, window_bounds = array<i64: 256, 256>}, {pipeline_mode = #tpu.pipeline_mode<synchronous>, transform_indices = @transform_22, window_bounds = array<i64: 1, 256>}, {transform_indices = @transform_23, window_bounds = array<i64: 16, 256>}, {transform_indices = @transform_24, window_bounds = array<i64: 16, 128>}, {transform_indices = @transform_25, window_bounds = array<i64: 16, 128>}]} {
    %c0 = arith.constant 0 : index
    %c0_0 = arith.constant 0 : index
    %0 = vector.load %arg1[%c0, %c0_0] : memref<16x256xbf16, #tpu.memory_space<vmem>>, vector<16x256xbf16>
    %c0_1 = arith.constant 0 : index
    %c0_2 = arith.constant 0 : index
    %1 = vector.load %arg4[%c0_1, %c0_2] : memref<256x128xbf16, #tpu.memory_space<vmem>>, vector<256x128xbf16>
    %cst = arith.constant dense<0.000000e+00> : vector<16x128xf32>
    %2 = tpu.matmul %0, %1, %cst {dimension_numbers = #tpu.dot_dimension_numbers<[1], [0], [0], [1], [0, 0, 1, 1], [], []>} : vector<16x256xbf16>, vector<256x128xbf16>, vector<16x128xf32> -> vector<16x128xf32>
    %c0_3 = arith.constant 0 : index
    %c0_4 = arith.constant 0 : index
    %3 = vector.load %arg5[%c0_3, %c0_4] : memref<1x128xf32, #tpu.memory_space<vmem>>, vector<1x128xf32>
    %4 = vector.broadcast %3 : vector<1x128xf32> to vector<16x128xf32>
    %5 = arith.addf %2, %4 : vector<16x128xf32>
    %c0_5 = arith.constant 0 : index
    %c0_6 = arith.constant 0 : index
    %6 = vector.load %arg2[%c0_5, %c0_6] : memref<16x128xbf16, #tpu.memory_space<vmem>>, vector<16x128xbf16>
    %c0_7 = arith.constant 0 : index
    %c0_8 = arith.constant 0 : index
    %7 = vector.load %arg6[%c0_7, %c0_8] : memref<128x256xbf16, #tpu.memory_space<vmem>>, vector<128x256xbf16>
    %cst_9 = arith.constant dense<0.000000e+00> : vector<16x256xf32>
    %8 = tpu.matmul %6, %7, %cst_9 {dimension_numbers = #tpu.dot_dimension_numbers<[1], [0], [0], [1], [0, 0, 1, 1], [], []>} : vector<16x128xbf16>, vector<128x256xbf16>, vector<16x256xf32> -> vector<16x256xf32>
    %c0_10 = arith.constant 0 : index
    %c0_11 = arith.constant 0 : index
    %9 = vector.load %arg7[%c0_10, %c0_11] : memref<1x256xf32, #tpu.memory_space<vmem>>, vector<1x256xf32>
    %10 = vector.broadcast %9 : vector<1x256xf32> to vector<16x256xf32>
    %11 = arith.addf %8, %10 : vector<16x256xf32>
    %12 = vector.extract_strided_slice %11 {offsets = [0, 0], sizes = [16, 128], strides = [1, 1]} : vector<16x256xf32> to vector<16x128xf32>
    %13 = vector.extract_strided_slice %11 {offsets = [0, 128], sizes = [16, 128], strides = [1, 1]} : vector<16x256xf32> to vector<16x128xf32>
    %14 = arith.truncf %5 : vector<16x128xf32> to vector<16x128xbf16>
    %c0_12 = arith.constant 0 : index
    %c0_13 = arith.constant 0 : index
    %15 = vector.load %arg8[%c0_12, %c0_13] : memref<128x256xbf16, #tpu.memory_space<vmem>>, vector<128x256xbf16>
    %cst_14 = arith.constant dense<0.000000e+00> : vector<16x256xf32>
    %16 = tpu.matmul %14, %15, %cst_14 {dimension_numbers = #tpu.dot_dimension_numbers<[1], [0], [0], [1], [0, 0, 1, 1], [], []>} : vector<16x128xbf16>, vector<128x256xbf16>, vector<16x256xf32> -> vector<16x256xf32>
    %17 = arith.truncf %12 : vector<16x128xf32> to vector<16x128xbf16>
    %c0_15 = arith.constant 0 : index
    %c0_16 = arith.constant 0 : index
    %18 = vector.load %arg9[%c0_15, %c0_16] : memref<128x256xbf16, #tpu.memory_space<vmem>>, vector<128x256xbf16>
    %cst_17 = arith.constant dense<0.000000e+00> : vector<16x256xf32>
    %19 = tpu.matmul %17, %18, %cst_17 {dimension_numbers = #tpu.dot_dimension_numbers<[1], [0], [0], [1], [0, 0, 1, 1], [], []>} : vector<16x128xbf16>, vector<128x256xbf16>, vector<16x256xf32> -> vector<16x256xf32>
    %20 = arith.addf %16, %19 : vector<16x256xf32>
    %c0_18 = arith.constant 0 : index
    %c0_19 = arith.constant 0 : index
    %21 = vector.load %arg10[%c0_18, %c0_19] : memref<1x256xf32, #tpu.memory_space<vmem>>, vector<1x256xf32>
    %22 = vector.broadcast %21 : vector<1x256xf32> to vector<16x256xf32>
    %23 = arith.addf %20, %22 : vector<16x256xf32>
    %cst_20 = arith.constant 0.000000e+00 : f32
    %24 = vector.broadcast %cst_20 : f32 to vector<16x256xf32>
    %25 = arith.maximumf %23, %24 : vector<16x256xf32>
    %26 = arith.truncf %25 : vector<16x256xf32> to vector<16x256xbf16>
    %c0_21 = arith.constant 0 : index
    %c0_22 = arith.constant 0 : index
    %27 = vector.load %arg11[%c0_21, %c0_22] : memref<256x256xbf16, #tpu.memory_space<vmem>>, vector<256x256xbf16>
    %cst_23 = arith.constant dense<0.000000e+00> : vector<16x256xf32>
    %28 = tpu.matmul %26, %27, %cst_23 {dimension_numbers = #tpu.dot_dimension_numbers<[1], [0], [0], [1], [0, 0, 1, 1], [], []>} : vector<16x256xbf16>, vector<256x256xbf16>, vector<16x256xf32> -> vector<16x256xf32>
    %c0_24 = arith.constant 0 : index
    %c0_25 = arith.constant 0 : index
    %29 = vector.load %arg12[%c0_24, %c0_25] : memref<1x256xf32, #tpu.memory_space<vmem>>, vector<1x256xf32>
    %30 = vector.broadcast %29 : vector<1x256xf32> to vector<16x256xf32>
    %31 = arith.addf %28, %30 : vector<16x256xf32>
    %cst_26 = arith.constant 0.000000e+00 : f32
    %32 = vector.broadcast %cst_26 : f32 to vector<16x256xf32>
    %33 = arith.maximumf %31, %32 : vector<16x256xf32>
    %34 = arith.truncf %33 : vector<16x256xf32> to vector<16x256xbf16>
    %c0_27 = arith.constant 0 : index
    %c0_28 = arith.constant 0 : index
    %35 = vector.load %arg13[%c0_27, %c0_28] : memref<256x256xbf16, #tpu.memory_space<vmem>>, vector<256x256xbf16>
    %cst_29 = arith.constant dense<0.000000e+00> : vector<16x256xf32>
    %36 = tpu.matmul %34, %35, %cst_29 {dimension_numbers = #tpu.dot_dimension_numbers<[1], [0], [0], [1], [0, 0, 1, 1], [], []>} : vector<16x256xbf16>, vector<256x256xbf16>, vector<16x256xf32> -> vector<16x256xf32>
    %c0_30 = arith.constant 0 : index
    %c0_31 = arith.constant 0 : index
    %37 = vector.load %arg14[%c0_30, %c0_31] : memref<1x256xf32, #tpu.memory_space<vmem>>, vector<1x256xf32>
    %38 = vector.broadcast %37 : vector<1x256xf32> to vector<16x256xf32>
    %39 = arith.addf %36, %38 : vector<16x256xf32>
    %40 = vector.extract_strided_slice %39 {offsets = [0, 0], sizes = [16, 128], strides = [1, 1]} : vector<16x256xf32> to vector<16x128xf32>
    %41 = vector.extract_strided_slice %39 {offsets = [0, 128], sizes = [16, 128], strides = [1, 1]} : vector<16x256xf32> to vector<16x128xf32>
    %cst_32 = arith.constant 5.000000e-01 : f32
    %42 = vector.broadcast %cst_32 : f32 to vector<16x128xf32>
    %43 = arith.mulf %42, %41 : vector<16x128xf32>
    %44 = math.exp %43 : vector<16x128xf32>
    %c0_33 = arith.constant 0 : index
    %c0_34 = arith.constant 0 : index
    %45 = vector.load %arg3[%c0_33, %c0_34] : memref<16x128xf32, #tpu.memory_space<vmem>>, vector<16x128xf32>
    %46 = arith.mulf %44, %45 : vector<16x128xf32>
    %47 = arith.addf %40, %46 : vector<16x128xf32>
    %48 = arith.truncf %47 : vector<16x128xf32> to vector<16x128xbf16>
    %c0_35 = arith.constant 0 : index
    %c0_36 = arith.constant 0 : index
    %49 = vector.load %arg15[%c0_35, %c0_36] : memref<128x128xbf16, #tpu.memory_space<vmem>>, vector<128x128xbf16>
    %cst_37 = arith.constant dense<0.000000e+00> : vector<16x128xf32>
    %50 = tpu.matmul %48, %49, %cst_37 {dimension_numbers = #tpu.dot_dimension_numbers<[1], [0], [0], [1], [0, 0, 1, 1], [], []>} : vector<16x128xbf16>, vector<128x128xbf16>, vector<16x128xf32> -> vector<16x128xf32>
    %c0_38 = arith.constant 0 : index
    %c0_39 = arith.constant 0 : index
    %51 = vector.load %arg16[%c0_38, %c0_39] : memref<1x128xf32, #tpu.memory_space<vmem>>, vector<1x128xf32>
    %52 = vector.broadcast %51 : vector<1x128xf32> to vector<16x128xf32>
    %53 = arith.addf %50, %52 : vector<16x128xf32>
    %54 = arith.truncf %53 : vector<16x128xf32> to vector<16x128xbf16>
    %c0_40 = arith.constant 0 : index
    %c0_41 = arith.constant 0 : index
    %55 = vector.load %arg17[%c0_40, %c0_41] : memref<128x256xbf16, #tpu.memory_space<vmem>>, vector<128x256xbf16>
    %cst_42 = arith.constant dense<0.000000e+00> : vector<16x256xf32>
    %56 = tpu.matmul %54, %55, %cst_42 {dimension_numbers = #tpu.dot_dimension_numbers<[1], [0], [0], [1], [0, 0, 1, 1], [], []>} : vector<16x128xbf16>, vector<128x256xbf16>, vector<16x256xf32> -> vector<16x256xf32>
    %57 = arith.truncf %13 : vector<16x128xf32> to vector<16x128xbf16>
    %c0_43 = arith.constant 0 : index
    %c0_44 = arith.constant 0 : index
    %58 = vector.load %arg18[%c0_43, %c0_44] : memref<128x256xbf16, #tpu.memory_space<vmem>>, vector<128x256xbf16>
    %cst_45 = arith.constant dense<0.000000e+00> : vector<16x256xf32>
    %59 = tpu.matmul %57, %58, %cst_45 {dimension_numbers = #tpu.dot_dimension_numbers<[1], [0], [0], [1], [0, 0, 1, 1], [], []>} : vector<16x128xbf16>, vector<128x256xbf16>, vector<16x256xf32> -> vector<16x256xf32>
    %60 = arith.addf %56, %59 : vector<16x256xf32>
    %c0_46 = arith.constant 0 : index
    %c0_47 = arith.constant 0 : index
    %61 = vector.load %arg19[%c0_46, %c0_47] : memref<1x256xf32, #tpu.memory_space<vmem>>, vector<1x256xf32>
    %62 = vector.broadcast %61 : vector<1x256xf32> to vector<16x256xf32>
    %63 = arith.addf %60, %62 : vector<16x256xf32>
    %cst_48 = arith.constant 0.000000e+00 : f32
    %64 = vector.broadcast %cst_48 : f32 to vector<16x256xf32>
    %65 = arith.maximumf %63, %64 : vector<16x256xf32>
    %66 = arith.truncf %65 : vector<16x256xf32> to vector<16x256xbf16>
    %c0_49 = arith.constant 0 : index
    %c0_50 = arith.constant 0 : index
    %67 = vector.load %arg20[%c0_49, %c0_50] : memref<256x256xbf16, #tpu.memory_space<vmem>>, vector<256x256xbf16>
    %cst_51 = arith.constant dense<0.000000e+00> : vector<16x256xf32>
    %68 = tpu.matmul %66, %67, %cst_51 {dimension_numbers = #tpu.dot_dimension_numbers<[1], [0], [0], [1], [0, 0, 1, 1], [], []>} : vector<16x256xbf16>, vector<256x256xbf16>, vector<16x256xf32> -> vector<16x256xf32>
    %c0_52 = arith.constant 0 : index
    %c0_53 = arith.constant 0 : index
    %69 = vector.load %arg21[%c0_52, %c0_53] : memref<1x256xf32, #tpu.memory_space<vmem>>, vector<1x256xf32>
    %70 = vector.broadcast %69 : vector<1x256xf32> to vector<16x256xf32>
    %71 = arith.addf %68, %70 : vector<16x256xf32>
    %cst_54 = arith.constant 0.000000e+00 : f32
    %72 = vector.broadcast %cst_54 : f32 to vector<16x256xf32>
    %73 = arith.maximumf %71, %72 : vector<16x256xf32>
    %74 = arith.truncf %73 : vector<16x256xf32> to vector<16x256xbf16>
    %c0_55 = arith.constant 0 : index
    %c0_56 = arith.constant 0 : index
    %75 = vector.load %arg22[%c0_55, %c0_56] : memref<256x256xbf16, #tpu.memory_space<vmem>>, vector<256x256xbf16>
    %cst_57 = arith.constant dense<0.000000e+00> : vector<16x256xf32>
    %76 = tpu.matmul %74, %75, %cst_57 {dimension_numbers = #tpu.dot_dimension_numbers<[1], [0], [0], [1], [0, 0, 1, 1], [], []>} : vector<16x256xbf16>, vector<256x256xbf16>, vector<16x256xf32> -> vector<16x256xf32>
    %c0_58 = arith.constant 0 : index
    %c0_59 = arith.constant 0 : index
    %77 = vector.load %arg23[%c0_58, %c0_59] : memref<1x256xf32, #tpu.memory_space<vmem>>, vector<1x256xf32>
    %78 = vector.broadcast %77 : vector<1x256xf32> to vector<16x256xf32>
    %79 = arith.addf %76, %78 : vector<16x256xf32>
    %cst_60 = arith.constant -3.000000e+01 : f32
    %cst_61 = arith.constant 3.000000e+01 : f32
    %80 = vector.broadcast %cst_60 : f32 to vector<16x256xf32>
    %81 = arith.maximumf %80, %79 : vector<16x256xf32>
    %82 = vector.broadcast %cst_61 : f32 to vector<16x256xf32>
    %83 = arith.minimumf %82, %81 : vector<16x256xf32>
    %cst_62 = arith.constant 0.000000e+00 : f32
    %84 = vector.broadcast %cst_62 : f32 to vector<16x256xf32>
    %85 = arith.subf %84, %83 : vector<16x256xf32>
    %86 = math.exp %85 : vector<16x256xf32>
    %cst_63 = arith.constant 1.000000e+00 : f32
    %87 = vector.broadcast %cst_63 : f32 to vector<16x256xf32>
    %88 = arith.addf %87, %86 : vector<16x256xf32>
    %89 = tpu.reciprocal %88 {approx = true} : vector<16x256xf32> -> vector<16x256xf32>
    %c0_64 = arith.constant 0 : index
    %c0_65 = arith.constant 0 : index
    %90 = vector.load %arg24[%c0_64, %c0_65] : memref<16x256xf32, #tpu.memory_space<vmem>>, vector<16x256xf32>
    tpu.vector_store %arg24[%c0_64, %c0_65], %89 {strides = array<i32>} : memref<16x256xf32, #tpu.memory_space<vmem>>, vector<16x256xf32>,
    %c0_66 = arith.constant 0 : index
    %c0_67 = arith.constant 0 : index
    %91 = vector.load %arg25[%c0_66, %c0_67] : memref<16x128xf32, #tpu.memory_space<vmem>>, vector<16x128xf32>
    tpu.vector_store %arg25[%c0_66, %c0_67], %40 {strides = array<i32>} : memref<16x128xf32, #tpu.memory_space<vmem>>, vector<16x128xf32>,
    %c0_68 = arith.constant 0 : index
    %c0_69 = arith.constant 0 : index
    %92 = vector.load %arg26[%c0_68, %c0_69] : memref<16x128xf32, #tpu.memory_space<vmem>>, vector<16x128xf32>
    tpu.vector_store %arg26[%c0_68, %c0_69], %41 {strides = array<i32>} : memref<16x128xf32, #tpu.memory_space<vmem>>, vector<16x128xf32>,
    return
  }
  func.func @transform_0(%arg0: i32) -> (i32, i32) {
    %c0_i32 = arith.constant 0 : i32
    %c0_i32_0 = arith.constant 0 : i32
    return %arg0, %c0_i32 : i32, i32
  }
  func.func @transform_1(%arg0: i32) -> (i32, i32) {
    %c0_i32 = arith.constant 0 : i32
    %c0_i32_0 = arith.constant 0 : i32
    return %arg0, %c0_i32 : i32, i32
  }
  func.func @transform_2(%arg0: i32) -> (i32, i32) {
    %c0_i32 = arith.constant 0 : i32
    %c0_i32_0 = arith.constant 0 : i32
    return %arg0, %c0_i32 : i32, i32
  }
  func.func @transform_3(%arg0: i32) -> (i32, i32) {
    %c0_i32 = arith.constant 0 : i32
    %c0_i32_0 = arith.constant 0 : i32
    %c0_i32_1 = arith.constant 0 : i32
    return %c0_i32, %c0_i32_0 : i32, i32
  }
  func.func @transform_4(%arg0: i32) -> (i32, i32) {
    %c0_i32 = arith.constant 0 : i32
    %c0_i32_0 = arith.constant 0 : i32
    %c0_i32_1 = arith.constant 0 : i32
    return %c0_i32, %c0_i32_0 : i32, i32
  }
  func.func @transform_5(%arg0: i32) -> (i32, i32) {
    %c0_i32 = arith.constant 0 : i32
    %c0_i32_0 = arith.constant 0 : i32
    %c0_i32_1 = arith.constant 0 : i32
    return %c0_i32, %c0_i32_0 : i32, i32
  }
  func.func @transform_6(%arg0: i32) -> (i32, i32) {
    %c0_i32 = arith.constant 0 : i32
    %c0_i32_0 = arith.constant 0 : i32
    %c0_i32_1 = arith.constant 0 : i32
    return %c0_i32, %c0_i32_0 : i32, i32
  }
  func.func @transform_7(%arg0: i32) -> (i32, i32) {
    %c0_i32 = arith.constant 0 : i32
    %c0_i32_0 = arith.constant 0 : i32
    %c0_i32_1 = arith.constant 0 : i32
    return %c0_i32, %c0_i32_0 : i32, i32
  }
  func.func @transform_8(%arg0: i32) -> (i32, i32) {
    %c0_i32 = arith.constant 0 : i32
    %c0_i32_0 = arith.constant 0 : i32
    %c0_i32_1 = arith.constant 0 : i32
    return %c0_i32, %c0_i32_0 : i32, i32
  }
  func.func @transform_9(%arg0: i32) -> (i32, i32) {
    %c0_i32 = arith.constant 0 : i32
    %c0_i32_0 = arith.constant 0 : i32
    %c0_i32_1 = arith.constant 0 : i32
    return %c0_i32, %c0_i32_0 : i32, i32
  }
  func.func @transform_10(%arg0: i32) -> (i32, i32) {
    %c0_i32 = arith.constant 0 : i32
    %c0_i32_0 = arith.constant 0 : i32
    %c0_i32_1 = arith.constant 0 : i32
    return %c0_i32, %c0_i32_0 : i32, i32
  }
  func.func @transform_11(%arg0: i32) -> (i32, i32) {
    %c0_i32 = arith.constant 0 : i32
    %c0_i32_0 = arith.constant 0 : i32
    %c0_i32_1 = arith.constant 0 : i32
    return %c0_i32, %c0_i32_0 : i32, i32
  }
  func.func @transform_12(%arg0: i32) -> (i32, i32) {
    %c0_i32 = arith.constant 0 : i32
    %c0_i32_0 = arith.constant 0 : i32
    %c0_i32_1 = arith.constant 0 : i32
    return %c0_i32, %c0_i32_0 : i32, i32
  }
  func.func @transform_13(%arg0: i32) -> (i32, i32) {
    %c0_i32 = arith.constant 0 : i32
    %c0_i32_0 = arith.constant 0 : i32
    %c0_i32_1 = arith.constant 0 : i32
    return %c0_i32, %c0_i32_0 : i32, i32
  }
  func.func @transform_14(%arg0: i32) -> (i32, i32) {
    %c0_i32 = arith.constant 0 : i32
    %c0_i32_0 = arith.constant 0 : i32
    %c0_i32_1 = arith.constant 0 : i32
    return %c0_i32, %c0_i32_0 : i32, i32
  }
  func.func @transform_15(%arg0: i32) -> (i32, i32) {
    %c0_i32 = arith.constant 0 : i32
    %c0_i32_0 = arith.constant 0 : i32
    %c0_i32_1 = arith.constant 0 : i32
    return %c0_i32, %c0_i32_0 : i32, i32
  }
  func.func @transform_16(%arg0: i32) -> (i32, i32) {
    %c0_i32 = arith.constant 0 : i32
    %c0_i32_0 = arith.constant 0 : i32
    %c0_i32_1 = arith.constant 0 : i32
    return %c0_i32, %c0_i32_0 : i32, i32
  }
  func.func @transform_17(%arg0: i32) -> (i32, i32) {
    %c0_i32 = arith.constant 0 : i32
    %c0_i32_0 = arith.constant 0 : i32
    %c0_i32_1 = arith.constant 0 : i32
    return %c0_i32, %c0_i32_0 : i32, i32
  }
  func.func @transform_18(%arg0: i32) -> (i32, i32) {
    %c0_i32 = arith.constant 0 : i32
    %c0_i32_0 = arith.constant 0 : i32
    %c0_i32_1 = arith.constant 0 : i32
    return %c0_i32, %c0_i32_0 : i32, i32
  }
  func.func @transform_19(%arg0: i32) -> (i32, i32) {
    %c0_i32 = arith.constant 0 : i32
    %c0_i32_0 = arith.constant 0 : i32
    %c0_i32_1 = arith.constant 0 : i32
    return %c0_i32, %c0_i32_0 : i32, i32
  }
  func.func @transform_20(%arg0: i32) -> (i32, i32) {
    %c0_i32 = arith.constant 0 : i32
    %c0_i32_0 = arith.constant 0 : i32
    %c0_i32_1 = arith.constant 0 : i32
    return %c0_i32, %c0_i32_0 : i32, i32
  }
  func.func @transform_21(%arg0: i32) -> (i32, i32) {
    %c0_i32 = arith.constant 0 : i32
    %c0_i32_0 = arith.constant 0 : i32
    %c0_i32_1 = arith.constant 0 : i32
    return %c0_i32, %c0_i32_0 : i32, i32
  }
  func.func @transform_22(%arg0: i32) -> (i32, i32) {
    %c0_i32 = arith.constant 0 : i32
    %c0_i32_0 = arith.constant 0 : i32
    %c0_i32_1 = arith.constant 0 : i32
    return %c0_i32, %c0_i32_0 : i32, i32
  }
  func.func @transform_23(%arg0: i32) -> (i32, i32) {
    %c0_i32 = arith.constant 0 : i32
    %c0_i32_0 = arith.constant 0 : i32
    return %arg0, %c0_i32 : i32, i32
  }
  func.func @transform_24(%arg0: i32) -> (i32, i32) {
    %c0_i32 = arith.constant 0 : i32
    %c0_i32_0 = arith.constant 0 : i32
    return %arg0, %c0_i32 : i32, i32
  }
  func.func @transform_25(%arg0: i32) -> (i32, i32) {
    %c0_i32 = arith.constant 0 : i32
    %c0_i32_0 = arith.constant 0 : i32
    return %arg0, %c0_i32 : i32, i32
  }
}

</mosaic_0001>

<bundles_post_ra>
// kernel: tpu_custom_call.1
= control target key start
LH: loop header
LB: loop body
LE: loop exit
PB: predicated region body
PF: predicated region fallthrough
CT: control target
= control target key end

     0   :  { %s4026_s0 = inlined_call_operand.hbm [shape: bf16[16,256], index: 0, kind: input, shape index: {}]   ;;  %s4027_s1 = inlined_call_operand.hbm [shape: bf16[16,128], index: 1, kind: input, shape index: {}]   ;;  %s4028_s2 = inlined_call_operand.hbm [shape: f32[16,128], index: 2, kind: input, shape index: {}]   ;;  %s4029_s3 = inlined_call_operand.hbm [shape: bf16[256,128], index: 3, kind: input, shape index: {}]   ;;  %s4030_s4 = inlined_call_operand.vmem [shape: f32[1,128], index: 4, kind: input, shape index: {}]   ;;  %s4031_s5 = inlined_call_operand.hbm [shape: bf16[128,256], index: 5, kind: input, shape index: {}]   ;;  %s4032_s6 = inlined_call_operand.vmem [shape: f32[1,256], index: 6, kind: input, shape index: {}]   ;;  %s4033_s7 = inlined_call_operand.hbm [shape: bf16[128,256], index: 7, kind: input, shape index: {}]   ;;  %s4034_s8 = inlined_call_operand.hbm [shape: bf16[128,256], index: 8, kind: input, shape index: {}]   ;;  %s4035_s9 = inlined_call_operand.vmem [shape: f32[1,256], index: 9, kind: input, shape index: {}]   ;;  %s4036_s10 = inlined_call_operand.hbm [shape: bf16[256,256], index: 10, kind: input, shape index: {}]   ;;  %s4037_s11 = inlined_call_operand.vmem [shape: f32[1,256], index: 11, kind: input, shape index: {}]   ;;  %s4038_s12 = inlined_call_operand.hbm [shape: bf16[256,256], index: 12, kind: input, shape index: {}]   ;;  %s4039_s13 = inlined_call_operand.vmem [shape: f32[1,256], index: 13, kind: input, shape index: {}]   ;;  %s4040_s14 = inlined_call_operand.hbm [shape: bf16[128,128], index: 14, kind: input, shape index: {}]   ;;  %s4041_s15 = inlined_call_operand.vmem [shape: f32[1,128], index: 15, kind: input, shape index: {}]   ;;  %s4042_s16 = inlined_call_operand.hbm [shape: bf16[128,256], index: 16, kind: input, shape index: {}]   ;;  %s4043_s17 = inlined_call_operand.hbm [shape: bf16[128,256], index: 17, kind: input, shape index: {}]   ;;  %s4044_s18 = inlined_call_operand.vmem [shape: f32[1,256], index: 18, kind: input, shape index: {}]   ;;  %s4045_s19 = inlined_call_operand.hbm [shape: bf16[256,256], index: 19, kind: input, shape index: {}]   ;;  %s4046_s20 = inlined_call_operand.vmem [shape: f32[1,256], index: 20, kind: input, shape index: {}]   ;;  %s4047_s21 = inlined_call_operand.hbm [shape: bf16[256,256], index: 21, kind: input, shape index: {}]   ;;  %s4048_s22 = inlined_call_operand.vmem [shape: f32[1,256], index: 22, kind: input, shape index: {}]   ;;  %s4049_s23 = inlined_call_operand.hbm [shape: f32[16,256], index: 23, kind: output, shape index: {0}]   ;;  %s4050_s24 = inlined_call_operand.hbm [shape: f32[16,128], index: 24, kind: output, shape index: {1}]   ;;  %s4051_s25 = inlined_call_operand.hbm [shape: f32[16,128], index: 25, kind: output, shape index: {2}]  }
   0x1   :  { %4061 = sst [smem:[#allocation39_spill]] %s4026_s0 }
   0x2   :  { %4062 = sst [smem:[#allocation40_spill]] %s4027_s1 }
   0x3   :  { %4063 = sst [smem:[#allocation41_spill]] %s4028_s2 }
   0x4   :  { %4064 = sst [smem:[#allocation42_spill]] %s4029_s3 }
   0x5   :  { %4065 = sst [smem:[#allocation43_spill]] %s4030_s4 }
   0x6   :  { %4066 = sst [smem:[#allocation44_spill]] %s4031_s5 }
   0x7   :  { %4067 = sst [smem:[#allocation45_spill]] %s4032_s6 }
   0x8   :  { %4068 = sst [smem:[#allocation46_spill]] %s4033_s7 }
   0x9   :  { %4069 = sst [smem:[#allocation47_spill]] %s4034_s8 }
   0xa   :  { %4070 = sst [smem:[#allocation48_spill]] %s4035_s9 }
   0xb   :  { %4071 = sst [smem:[#allocation49_spill]] %s4048_s22 }
   0xc   :  { %4072 = sst [smem:[#allocation50_spill]] %s4049_s23 }
   0xd   :  { %4073 = sst [smem:[#allocation51_spill]] %s4051_s25 }
   0xe   :  { %31 = vsyncpa [#allocation3], 0 }
   0xf   :  { %32 = vsyncpa [#allocation6], 0 }
  0x10   :  { %33 = vsyncpa [#allocation9], 0 }
  0x11   :  { %34 = vsyncpa [#allocation12], 0 }
  0x12   :  { %35 = vsyncpa [#allocation15], 0 }
  0x13   :  { %36 = vsyncpa [#allocation18], 0 }
  0x14   :  { %37 = vsyncpa [#allocation21], 0 }
  0x15   :  { %38 = vsyncpa [#allocation24], 0 }
  0x16   :  { %39 = vsyncpa [#allocation4], 0 }
  0x17   :  { %40 = vsyncpa [#allocation27], 0  ;;  %s3517_s29 = smov [#allocation5]   ;;  %s4074_s7 = sld [smem:[#allocation40_spill]] }
  0x18   :  { %s58_s2 = sshll.u32 %s3517_s29, 4  ;;  %s59_s2 = int_to_ptr.vmem [resolvable:$true] %s58_s2 }
  0x1d   :  { %s3123_s3 = scalar_lea.hbm %s4074_s7, 128 }
  0x1e   :  { %p3124_p0 = scmp.ne.s32.totalorder %s4074_s7, %s3123_s3  ;;  %p3127_p1 = scmp.lt.u32.totalorder %s3123_s3, %s4074_s7 }
  0x20   :  { %p3129_p2 = pnand %p3127_p1, %p3124_p0 }
  0x22   :  { %3132 = shalt.err (!%p3129_p2)
}
  0x23   :  { %s3133_s4 = scalar_lea.vmem %s59_s2, 128  ;;  %p3138_p4 = scmp.lt.s32.totalorder %s59_s2, %s59_s2 }
  0x24   :  { %p3134_p3 = scmp.ne.s32.totalorder %s59_s2, %s3133_s4  ;;  %p3139_p5 = scmp.lt.s32.totalorder %s3133_s4, %s3133_s4 }
  0x26   :  { %p3140_p6 = por %p3139_p5, %p3138_p4 }
  0x28   :  { %p3141_p7 = pnand %p3140_p6, %p3134_p3 }
  0x2a   :  { %3144 = shalt.err (!%p3141_p7)
}
  0x2b   :  { %s3518_s28 = smov 64   ;;  %s3519_s9 = smov 4  }
  0x2c   :  { %64 = dma.hbm_to_vmem [thread:$0]  %s4074_s7, 128, %s59_s2, [#allocation6], %s3518_s28, %s3518_s28, %s3519_s9  }
  0x2d   :  { %s3520_s29 = smov [#allocation8]   ;;  %s4075_s26 = sld [smem:[#allocation42_spill]] }
  0x2e   :  { %s82_s6 = sshll.u32 %s3520_s29, 4  ;;  %s83_s6 = int_to_ptr.vmem [resolvable:$true] %s82_s6 }
  0x33   :  { %s3145_s1 = scalar_lea.hbm %s4075_s26, 2048 }
  0x34   :  { %p3146_p8 = scmp.ne.s32.totalorder %s4075_s26, %s3145_s1  ;;  %p3149_p9 = scmp.lt.u32.totalorder %s3145_s1, %s4075_s26 }
  0x36   :  { %p3151_p10 = pnand %p3149_p9, %p3146_p8 }
  0x38   :  { %3154 = shalt.err (!%p3151_p10)
}
  0x39   :  { %s3155_s22 = scalar_lea.vmem %s83_s6, 2048  ;;  %p3160_p12 = scmp.lt.s32.totalorder %s83_s6, %s83_s6 }
  0x3a   :  { %p3156_p11 = scmp.ne.s32.totalorder %s83_s6, %s3155_s22  ;;  %p3161_p13 = scmp.lt.s32.totalorder %s3155_s22, %s3155_s22 }
  0x3c   :  { %p3162_p0 = por %p3161_p13, %p3160_p12 }
  0x3e   :  { %p3163_p1 = pnand %p3162_p0, %p3156_p11 }
  0x40   :  { %3166 = shalt.err (!%p3163_p1)
}
  0x41   :  { %88 = dma.hbm_to_vmem [thread:$0]  %s4075_s26, 2048, %s83_s6, [#allocation9], %s3518_s28, %s3518_s28, %s3519_s9  }
  0x42   :  { %s3521_s5 = smov [#allocation11]   ;;  %s3522_s23 = smov [#allocation14]  }
  0x43   :  { %s110_s0 = sshll.u32 %s3521_s5, 4  ;;  %s136_s29 = sshll.u32 %s3522_s23, 4  ;;  %s111_s0 = int_to_ptr.vmem [resolvable:$true] %s110_s0  ;;  %s3703_s29 = int_to_ptr.vmem [resolvable:$true] %s136_s29 }
  0x44   :  { %s4076_s22 = sld [smem:[#allocation46_spill]] }
  0x4a   :  { %s3167_s1 = scalar_lea.hbm %s4076_s22, 2048 }
  0x4b   :  { %p3168_p2 = scmp.ne.s32.totalorder %s4076_s22, %s3167_s1  ;;  %p3171_p3 = scmp.lt.u32.totalorder %s3167_s1, %s4076_s22 }
  0x4d   :  { %p3173_p4 = pnand %p3171_p3, %p3168_p2 }
  0x4f   :  { %3176 = shalt.err (!%p3173_p4)
}
  0x50   :  { %s3177_s6 = scalar_lea.vmem %s111_s0, 2048  ;;  %p3182_p6 = scmp.lt.s32.totalorder %s111_s0, %s111_s0 }
  0x51   :  { %p3178_p5 = scmp.ne.s32.totalorder %s111_s0, %s3177_s6  ;;  %p3183_p7 = scmp.lt.s32.totalorder %s3177_s6, %s3177_s6 }
  0x53   :  { %p3184_p8 = por %p3183_p7, %p3182_p6 }
  0x55   :  { %p3185_p9 = pnand %p3184_p8, %p3178_p5 }
  0x57   :  { %3188 = shalt.err (!%p3185_p9)
}
  0x58   :  { %s3523_s26 = smov 128   ;;  %s3524_s2 = smov 8  }
  0x59   :  { %116 = dma.hbm_to_vmem [thread:$0]  %s4076_s22, 2048, %s111_s0, [#allocation12], %s3523_s26, %s3523_s26, %s3524_s2  }
  0x5a   :  { %s3189_s30 = scalar_lea.hbm %s4036_s10, 4096 }
  0x5b   :  { %p3190_p10 = scmp.ne.s32.totalorder %s4036_s10, %s3189_s30  ;;  %p3193_p11 = scmp.lt.u32.totalorder %s3189_s30, %s4036_s10 }
  0x5d   :  { %p3195_p12 = pnand %p3193_p11, %p3190_p10 }
  0x5f   :  { %3198 = shalt.err (!%p3195_p12)
}
  0x60   :  { %s3199_s4 = scalar_lea.vmem %s3703_s29, 4096  ;;  %p3204_p0 = scmp.lt.s32.totalorder %s3703_s29, %s3703_s29 }
  0x61   :  { %p3200_p13 = scmp.ne.s32.totalorder %s3703_s29, %s3199_s4  ;;  %p3205_p1 = scmp.lt.s32.totalorder %s3199_s4, %s3199_s4 }
  0x63   :  { %p3206_p2 = por %p3205_p1, %p3204_p0 }
  0x65   :  { %p3207_p3 = pnand %p3206_p2, %p3200_p13 }
  0x67   :  { %3210 = shalt.err (!%p3207_p3)
}
  0x68   :  { %142 = dma.hbm_to_vmem [thread:$0]  %s4036_s10, 4096, %s3703_s29, [#allocation15], %s3523_s26, %s3523_s26, %s3524_s2  }
  0x69   :  { %s3525_s6 = smov [#allocation17]   ;;  %s3526_s5 = smov [#allocation20]  }
  0x6a   :  { %s164_s7 = sshll.u32 %s3525_s6, 4  ;;  %s190_s25 = sshll.u32 %s3526_s5, 4  ;;  %s165_s7 = int_to_ptr.vmem [resolvable:$true] %s164_s7  ;;  %s3740_s25 = int_to_ptr.vmem [resolvable:$true] %s190_s25 }
  0x6b   :  { %s3211_s3 = scalar_lea.hbm %s4040_s14, 1024 }
  0x6c   :  { %p3212_p4 = scmp.ne.s32.totalorder %s4040_s14, %s3211_s3  ;;  %p3215_p5 = scmp.lt.u32.totalorder %s3211_s3, %s4040_s14 }
  0x6e   :  { %p3217_p6 = pnand %p3215_p5, %p3212_p4 }
  0x70   :  { %3220 = shalt.err (!%p3217_p6)
}
  0x71   :  { %s3221_s10 = scalar_lea.vmem %s165_s7, 1024  ;;  %p3226_p8 = scmp.lt.s32.totalorder %s165_s7, %s165_s7 }
  0x72   :  { %p3222_p7 = scmp.ne.s32.totalorder %s165_s7, %s3221_s10  ;;  %p3227_p9 = scmp.lt.s32.totalorder %s3221_s10, %s3221_s10 }
  0x74   :  { %p3228_p10 = por %p3227_p9, %p3226_p8 }
  0x76   :  { %p3229_p11 = pnand %p3228_p10, %p3222_p7 }
  0x78   :  { %3232 = shalt.err (!%p3229_p11)
}
  0x79   :  { %170 = dma.hbm_to_vmem [thread:$0]  %s4040_s14, 1024, %s165_s7, [#allocation18], %s3518_s28, %s3518_s28, %s3519_s9  }
  0x7a   :  { %s3233_s5 = scalar_lea.hbm %s4043_s17, 2048 }
  0x7b   :  { %p3234_p12 = scmp.ne.s32.totalorder %s4043_s17, %s3233_s5  ;;  %p3237_p13 = scmp.lt.u32.totalorder %s3233_s5, %s4043_s17 }
  0x7d   :  { %p3239_p0 = pnand %p3237_p13, %p3234_p12 }
  0x7f   :  { %3242 = shalt.err (!%p3239_p0)
}
  0x80   :  { %s3243_s8 = scalar_lea.vmem %s3740_s25, 2048  ;;  %p3248_p2 = scmp.lt.s32.totalorder %s3740_s25, %s3740_s25 }
  0x81   :  { %p3244_p1 = scmp.ne.s32.totalorder %s3740_s25, %s3243_s8  ;;  %p3249_p3 = scmp.lt.s32.totalorder %s3243_s8, %s3243_s8 }
  0x83   :  { %p3250_p4 = por %p3249_p3, %p3248_p2 }
  0x85   :  { %p3251_p5 = pnand %p3250_p4, %p3244_p1 }
  0x87   :  { %3254 = shalt.err (!%p3251_p5)
}
  0x88   :  { %196 = dma.hbm_to_vmem [thread:$0]  %s4043_s17, 2048, %s3740_s25, [#allocation21], %s3523_s26, %s3523_s26, %s3524_s2  }
  0x89   :  { %s3527_s9 = smov [#allocation2]   ;;  %s3528_s27 = smov [#allocation7]  }
  0x8a   :  { %s46_s7 = sshll.u32 %s3527_s9, 4  ;;  %s70_s4 = sshll.u32 %s3528_s27, 4  ;;  %s47_s7 = int_to_ptr.vmem [resolvable:$true] %s46_s7  ;;  %s3777_s4 = int_to_ptr.vmem [resolvable:$true] %s70_s4 }
  0x8b   :  { %s4077_s0 = sld [smem:[#allocation39_spill]] }
  0x91   :  { %s3255_s22 = scalar_lea.hbm %s4077_s0, 256 }
  0x92   :  { %p3256_p6 = scmp.ne.s32.totalorder %s4077_s0, %s3255_s22  ;;  %p3259_p7 = scmp.lt.u32.totalorder %s3255_s22, %s4077_s0 }
  0x94   :  { %p3261_p8 = pnand %p3259_p7, %p3256_p6 }
  0x96   :  { %3264 = shalt.err (!%p3261_p8)
}
  0x97   :  { %s3265_s17 = scalar_lea.vmem %s47_s7, 256  ;;  %p3270_p10 = scmp.lt.s32.totalorder %s47_s7, %s47_s7 }
  0x98   :  { %p3266_p9 = scmp.ne.s32.totalorder %s47_s7, %s3265_s17  ;;  %p3271_p11 = scmp.lt.s32.totalorder %s3265_s17, %s3265_s17 }
  0x9a   :  { %p3272_p12 = por %p3271_p11, %p3270_p10 }
  0x9c   :  { %p3273_p13 = pnand %p3272_p12, %p3266_p9 }
  0x9e   :  { %3276 = shalt.err (!%p3273_p13)
}
  0x9f   :  { %52 = dma.hbm_to_vmem [thread:$0]  %s4077_s0, 256, %s47_s7, [#allocation3], %s3523_s26, %s3523_s26, %s3524_s2  }
  0xa0   :  { %s4078_s14 = sld [smem:[#allocation41_spill]] }
  0xa6   :  { %s3277_s28 = scalar_lea.hbm %s4078_s14, 256 }
  0xa7   :  { %p3278_p0 = scmp.ne.s32.totalorder %s4078_s14, %s3277_s28  ;;  %p3281_p1 = scmp.lt.u32.totalorder %s3277_s28, %s4078_s14 }
  0xa9   :  { %p3283_p2 = pnand %p3281_p1, %p3278_p0 }
  0xab   :  { %3286 = shalt.err (!%p3283_p2)
}
  0xac   :  { %s3287_s22 = scalar_lea.vmem %s3777_s4, 256  ;;  %p3292_p4 = scmp.lt.s32.totalorder %s3777_s4, %s3777_s4 }
  0xad   :  { %p3288_p3 = scmp.ne.s32.totalorder %s3777_s4, %s3287_s22  ;;  %p3293_p5 = scmp.lt.s32.totalorder %s3287_s22, %s3287_s22 }
  0xaf   :  { %p3294_p6 = por %p3293_p5, %p3292_p4 }
  0xb1   :  { %p3295_p7 = pnand %p3294_p6, %p3288_p3 }
  0xb3   :  { %3298 = shalt.err (!%p3295_p7)
}
  0xb4   :  { %76 = dma.hbm_to_vmem [thread:$0]  %s4078_s14, 256, %s3777_s4, [#allocation6], %s3523_s26, %s3523_s26, %s3524_s2  }
  0xb5   :  { %s3529_s6 = smov [#allocation10]   ;;  %s3530_s23 = smov [#allocation13]  }
  0xb6   :  { %s96_s5 = sshll.u32 %s3529_s6, 4  ;;  %s122_s30 = sshll.u32 %s3530_s23, 4  ;;  %s97_s5 = int_to_ptr.vmem [resolvable:$true] %s96_s5  ;;  %s3814_s30 = int_to_ptr.vmem [resolvable:$true] %s122_s30 }
  0xb7   :  { %s4079_s3 = sld [smem:[#allocation44_spill]] }
  0xbd   :  { %s3299_s1 = scalar_lea.hbm %s4079_s3, 2048 }
  0xbe   :  { %p3300_p8 = scmp.ne.s32.totalorder %s4079_s3, %s3299_s1  ;;  %p3303_p9 = scmp.lt.u32.totalorder %s3299_s1, %s4079_s3 }
  0xc0   :  { %p3305_p10 = pnand %p3303_p9, %p3300_p8 }
  0xc2   :  { %3308 = shalt.err (!%p3305_p10)
}
  0xc3   :  { %s3309_s4 = scalar_lea.vmem %s97_s5, 2048  ;;  %p3314_p12 = scmp.lt.s32.totalorder %s97_s5, %s97_s5 }
  0xc4   :  { %p3310_p11 = scmp.ne.s32.totalorder %s97_s5, %s3309_s4  ;;  %p3315_p13 = scmp.lt.s32.totalorder %s3309_s4, %s3309_s4 }
  0xc6   :  { %p3316_p0 = por %p3315_p13, %p3314_p12 }
  0xc8   :  { %p3317_p1 = pnand %p3316_p0, %p3310_p11 }
  0xca   :  { %3320 = shalt.err (!%p3317_p1)
}
  0xcb   :  { %102 = dma.hbm_to_vmem [thread:$0]  %s4079_s3, 2048, %s97_s5, [#allocation9], %s3523_s26, %s3523_s26, %s3524_s2  }
  0xcc   :  { %s4080_s7 = sld [smem:[#allocation47_spill]] }
  0xd2   :  { %s3321_s0 = scalar_lea.hbm %s4080_s7, 2048 }
  0xd3   :  { %p3322_p2 = scmp.ne.s32.totalorder %s4080_s7, %s3321_s0  ;;  %p3325_p3 = scmp.lt.u32.totalorder %s3321_s0, %s4080_s7 }
  0xd5   :  { %p3327_p4 = pnand %p3325_p3, %p3322_p2 }
  0xd7   :  { %3330 = shalt.err (!%p3327_p4)
}
  0xd8   :  { %s3331_s1 = scalar_lea.vmem %s3814_s30, 2048  ;;  %p3336_p6 = scmp.lt.s32.totalorder %s3814_s30, %s3814_s30 }
  0xd9   :  { %p3332_p5 = scmp.ne.s32.totalorder %s3814_s30, %s3331_s1  ;;  %p3337_p7 = scmp.lt.s32.totalorder %s3331_s1, %s3331_s1 }
  0xdb   :  { %p3338_p8 = por %p3337_p7, %p3336_p6 }
  0xdd   :  { %p3339_p9 = pnand %p3338_p8, %p3332_p5 }
  0xdf   :  { %3342 = shalt.err (!%p3339_p9)
}
  0xe0   :  { %128 = dma.hbm_to_vmem [thread:$0]  %s4080_s7, 2048, %s3814_s30, [#allocation12], %s3523_s26, %s3523_s26, %s3524_s2  }
  0xe1   :  { %s3531_s8 = smov [#allocation16]   ;;  %s3532_s9 = smov [#allocation19]  }
  0xe2   :  { %s150_s28 = sshll.u32 %s3531_s8, 4  ;;  %s178_s27 = sshll.u32 %s3532_s9, 4  ;;  %s151_s28 = int_to_ptr.vmem [resolvable:$true] %s150_s28  ;;  %s3851_s27 = int_to_ptr.vmem [resolvable:$true] %s178_s27 }
  0xe3   :  { %s3343_s10 = scalar_lea.hbm %s4038_s12, 4096 }
  0xe4   :  { %p3344_p10 = scmp.ne.s32.totalorder %s4038_s12, %s3343_s10  ;;  %p3347_p11 = scmp.lt.u32.totalorder %s3343_s10, %s4038_s12 }
  0xe6   :  { %p3349_p12 = pnand %p3347_p11, %p3344_p10 }
  0xe8   :  { %3352 = shalt.err (!%p3349_p12)
}
  0xe9   :  { %s3353_s30 = scalar_lea.vmem %s151_s28, 4096  ;;  %p3358_p0 = scmp.lt.s32.totalorder %s151_s28, %s151_s28 }
  0xea   :  { %p3354_p13 = scmp.ne.s32.totalorder %s151_s28, %s3353_s30  ;;  %p3359_p1 = scmp.lt.s32.totalorder %s3353_s30, %s3353_s30 }
  0xec   :  { %p3360_p2 = por %p3359_p1, %p3358_p0 }
  0xee   :  { %p3361_p3 = pnand %p3360_p2, %p3354_p13 }
  0xf0   :  { %3364 = shalt.err (!%p3361_p3)
}
  0xf1   :  { %156 = dma.hbm_to_vmem [thread:$0]  %s4038_s12, 4096, %s151_s28, [#allocation15], %s3523_s26, %s3523_s26, %s3524_s2  }
  0xf2   :  { %s3365_s1 = scalar_lea.hbm %s4042_s16, 2048 }
  0xf3   :  { %p3366_p4 = scmp.ne.s32.totalorder %s4042_s16, %s3365_s1  ;;  %p3369_p5 = scmp.lt.u32.totalorder %s3365_s1, %s4042_s16 }
  0xf5   :  { %p3371_p6 = pnand %p3369_p5, %p3366_p4 }
  0xf7   :  { %3374 = shalt.err (!%p3371_p6)
}
  0xf8   :  { %s3375_s4 = scalar_lea.vmem %s3851_s27, 2048  ;;  %p3380_p8 = scmp.lt.s32.totalorder %s3851_s27, %s3851_s27 }
  0xf9   :  { %p3376_p7 = scmp.ne.s32.totalorder %s3851_s27, %s3375_s4  ;;  %p3381_p9 = scmp.lt.s32.totalorder %s3375_s4, %s3375_s4 }
  0xfb   :  { %p3382_p10 = por %p3381_p9, %p3380_p8 }
  0xfd   :  { %p3383_p11 = pnand %p3382_p10, %p3376_p7 }
  0xff   :  { %3386 = shalt.err (!%p3383_p11)
}
 0x100   :  { %184 = dma.hbm_to_vmem [thread:$0]  %s4042_s16, 2048, %s3851_s27, [#allocation18], %s3523_s26, %s3523_s26, %s3524_s2  }
 0x101   :  { %s3533_s14 = smov [#allocation22]   ;;  %s3534_s29 = smov [#allocation23]  }
 0x102   :  { %s204_s10 = sshll.u32 %s3533_s14, 4  ;;  %s218_s22 = sshll.u32 %s3534_s29, 4  ;;  %s205_s10 = int_to_ptr.vmem [resolvable:$true] %s204_s10  ;;  %s3888_s22 = int_to_ptr.vmem [resolvable:$true] %s218_s22 }
 0x103   :  { %s3387_s30 = scalar_lea.hbm %s4045_s19, 4096 }
 0x104   :  { %p3388_p12 = scmp.ne.s32.totalorder %s4045_s19, %s3387_s30  ;;  %p3391_p13 = scmp.lt.u32.totalorder %s3387_s30, %s4045_s19 }
 0x106   :  { %p3393_p0 = pnand %p3391_p13, %p3388_p12 }
 0x108   :  { %3396 = shalt.err (!%p3393_p0)
}
 0x109   :  { %s3397_s16 = scalar_lea.vmem %s205_s10, 4096  ;;  %p3402_p2 = scmp.lt.s32.totalorder %s205_s10, %s205_s10 }
 0x10a   :  { %p3398_p1 = scmp.ne.s32.totalorder %s205_s10, %s3397_s16  ;;  %p3403_p3 = scmp.lt.s32.totalorder %s3397_s16, %s3397_s16 }
 0x10c   :  { %p3404_p4 = por %p3403_p3, %p3402_p2 }
 0x10e   :  { %p3405_p5 = pnand %p3404_p4, %p3398_p1 }
 0x110   :  { %3408 = shalt.err (!%p3405_p5)
}
 0x111   :  { %210 = dma.hbm_to_vmem [thread:$0]  %s4045_s19, 4096, %s205_s10, [#allocation21], %s3523_s26, %s3523_s26, %s3524_s2  }
 0x112   :  { %s3409_s8 = scalar_lea.hbm %s4047_s21, 4096 }
 0x113   :  { %p3410_p6 = scmp.ne.s32.totalorder %s4047_s21, %s3409_s8  ;;  %p3413_p7 = scmp.lt.u32.totalorder %s3409_s8, %s4047_s21 }
 0x115   :  { %p3415_p8 = pnand %p3413_p7, %p3410_p6 }
 0x117   :  { %3418 = shalt.err (!%p3415_p8)
}
 0x118   :  { %s3419_s14 = scalar_lea.vmem %s3888_s22, 4096  ;;  %p3424_p10 = scmp.lt.s32.totalorder %s3888_s22, %s3888_s22 }
 0x119   :  { %p3420_p9 = scmp.ne.s32.totalorder %s3888_s22, %s3419_s14  ;;  %p3425_p11 = scmp.lt.s32.totalorder %s3419_s14, %s3419_s14 }
 0x11b   :  { %p3426_p12 = por %p3425_p11, %p3424_p10 }
 0x11d   :  { %p3427_p13 = pnand %p3426_p12, %p3420_p9 }
 0x11f   :  { %3430 = shalt.err (!%p3427_p13)
}
 0x120   :  { %224 = dma.hbm_to_vmem [thread:$0]  %s4047_s21, 4096, %s3888_s22, [#allocation24], %s3523_s26, %s3523_s26, %s3524_s2  }
 0x121   :  { %3497 = dma.done.wait [#allocation3], 256  }
 0x122   :  { %3498 = vsyncadd [#allocation3], 4294967040 }
 0x123   :  { %3499 = dma.done.wait [#allocation6], 384  }
 0x124   :  { %3500 = vsyncadd [#allocation6], 4294966912 }
 0x125   :  { %3501 = dma.done.wait [#allocation9], 4096  }
 0x126   :  { %3502 = vsyncadd [#allocation9], 4294963200 }
 0x127   :  { %3503 = dma.done.wait [#allocation12], 4096  }
 0x128   :  { %3504 = vsyncadd [#allocation12], 4294963200 }
 0x129   :  { %3505 = dma.done.wait [#allocation15], 8192  }
 0x12a   :  { %3506 = vsyncadd [#allocation15], 4294959104 }
 0x12b   :  { %3507 = dma.done.wait [#allocation18], 3072  }
 0x12c   :  { %3508 = vsyncadd [#allocation18], 4294964224 }
 0x12d   :  { %3509 = dma.done.wait [#allocation21], 6144  }
 0x12e   :  { %3510 = vsyncadd [#allocation21], 4294961152 }
 0x12f   :  { %3511 = dma.done.wait [#allocation24], 4096  }
 0x130   :  { %3512 = vsyncadd [#allocation24], 4294963200  ;;  %v3535_v0 = vmov 0   ;;  %v2763_v1 = vld [vmem:[#allocation10 + $0x4] ss:$8 sps:$4 sm:$0xff]   ;;  %v2792_v16 = vld [vmem:[#allocation8 + $0x50] sm:$0xff]  }
 0x131   :  { %606 = vmatprep.mubr.bf16.mxu1 %v3535_v0  ;;  %v2765_v2 = vld [vmem:[#allocation10] ss:$8 sps:$4 sm:$0xff]   ;;  %574 = vmatprep.subr.bf16.mxu1 %v2763_v1  ;;  %v2766_v3 = vld [vmem:[#allocation10 + $0x14] ss:$8 sps:$4 sm:$0xff]   ;;  %v2768_v4 = vld [vmem:[#allocation10 + $0x10] ss:$8 sps:$4 sm:$0xff]  }
 0x132   :  { %575 = vmatpush1.bf16.msra.mxu1 %v2765_v2  ;;  %v2769_v5 = vld [vmem:[#allocation10 + $0x24] ss:$8 sps:$4 sm:$0xff]   ;;  %v2771_v6 = vld [vmem:[#allocation10 + $0x20] ss:$8 sps:$4 sm:$0xff]   ;;  %v2772_v7 = vld [vmem:[#allocation10 + $0x34] ss:$8 sps:$4 sm:$0xff]  }
 0x133   :  { %576 = vmatprep.subr.bf16.mxu1 %v2766_v3  ;;  %v2783_v8 = vld [vmem:[#allocation8 + $0x40] sm:$0xff]   ;;  %v2774_v9 = vld [vmem:[#allocation10 + $0x30] ss:$8 sps:$4 sm:$0xff]   ;;  %v2788_v13 = vld [vmem:[#allocation8 + $0x48] sm:$0xff]   ;;  %s4081_s22 = sld [smem:[#allocation45_spill]]  ;;  %s4082_s30 = sld [smem:[#allocation43_spill]] }
 0x134   :  { %2678 = vmatprep.subr.bf16.mxu0 %v2783_v8  ;;  %v2785_v10 = vld [vmem:[#allocation8] sm:$0xff]   ;;  %v2790_v14 = vld [vmem:[#allocation8 + $0x8] sm:$0xff]   ;;  %v2778_v15 = vld [vmem:[#allocation10 + $0x54] ss:$8 sps:$4 sm:$0xff]   ;;  %s4083_s17 = sld [smem:[#allocation48_spill]]  ;;  %vm3537_vm0 = vmmov 0  }
 0x135   :  { %v2775_v11 = vld [vmem:[#allocation10 + $0x44] ss:$8 sps:$4 sm:$0xff]   ;;  %v2777_v12 = vld [vmem:[#allocation10 + $0x40] ss:$8 sps:$4 sm:$0xff]   ;;  %2679 = vmatpush3.bf16.msra.mxu0 %v2785_v10  ;;  %v2793_v17 = vld [vmem:[#allocation8 + $0x10] sm:$0xff]  }
 0x136   :  { %577 = vmatpush1.bf16.msra.mxu1 %v2768_v4  ;;  %2680 = vmatprep.subr.bf16.mxu0 %v2788_v13  ;;  %v2794_v18 = vld [vmem:[#allocation8 + $0x58] sm:$0xff]   ;;  %v2781_v20 = vld [vmem:[#allocation10 + $0x64] ss:$8 sps:$4 sm:$0xff]   ;;  %v2784_v23 = vld [vmem:[#allocation10 + $0x60] ss:$8 sps:$4 sm:$0xff]  }
 0x137   :  { %578 = vmatprep.subr.bf16.mxu1 %v2769_v5  ;;  %v2780_v19 = vld [vmem:[#allocation10 + $0x50] ss:$8 sps:$4 sm:$0xff]   ;;  %v2796_v22 = vld [vmem:[#allocation8 + $0x60] sm:$0xff]   ;;  %v2786_v24 = vld [vmem:[#allocation10 + $0x74] ss:$8 sps:$4 sm:$0xff]  }
 0x138   :  { %v2795_v21 = vld [vmem:[#allocation8 + $0x18] sm:$0xff]   ;;  %v2797_v25 = vld [vmem:[#allocation8 + $0x20] sm:$0xff]   ;;  %v2798_v26 = vld [vmem:[#allocation8 + $0x68] sm:$0xff]  }
 0x139   :  { %2681 = vmatpush3.bf16.msra.mxu0 %v2790_v14  ;;  %v2789_v27 = vld [vmem:[#allocation10 + $0x70] ss:$8 sps:$4 sm:$0xff]   ;;  %v2791_v28 = vld [vmem:[#allocation5] sm:$0xff]   ;;  %v2806_v29 = vld [vmem:[#allocation2 + $0x4] ss:$8 sps:$4 sm:$0xff]  }
 0x13a   :  { %579 = vmatpush1.bf16.msra.mxu1 %v2771_v6  ;;  %2682 = vmatprep.subr.bf16.mxu0 %v2792_v16  ;;  %v2799_v30 = vld [vmem:[#allocation8 + $0x28] sm:$0xff]   ;;  %v2800_v31 = vld [vmem:[#allocation8 + $0x70] sm:$0xff]   ;;  %v2802_v33 = vld [vmem:[#allocation8 + $0x78] sm:$0xff]  }
 0x13b   :  { %580 = vmatprep.subr.bf16.mxu1 %v2772_v7  ;;  %449 = vmatprep.mubr.bf16.mxu0 %v2806_v29  ;;  %v2801_v32 = vld [vmem:[#allocation8 + $0x30] sm:$0xff]   ;;  %v2803_v34 = vld [vmem:[#allocation8 + $0x38] sm:$0xff]   ;;  %v2809_v36 = vld [vmem:[#allocation13 + $0x4] ss:$8 sps:$4 sm:$0xff]  }
 0x13c   :  { %v2804_v35 = vld [vmem:[#allocation2] ss:$8 sps:$4 sm:$0xff]   ;;  %v2812_v38 = vld [vmem:[#allocation13 + $0x14] ss:$8 sps:$4 sm:$0xff]   ;;  %v2815_v40 = vld [vmem:[#allocation13 + $0x24] ss:$8 sps:$4 sm:$0xff]  }
 0x13d   :  { %2683 = vmatpush3.bf16.msra.mxu0 %v2793_v17  ;;  %v2807_v37 = vld [vmem:[#allocation13] ss:$8 sps:$4 sm:$0xff]   ;;  %v2810_v39 = vld [vmem:[#allocation13 + $0x10] ss:$8 sps:$4 sm:$0xff]   ;;  %v2818_v42 = vld [vmem:[#allocation13 + $0x34] ss:$8 sps:$4 sm:$0xff]  }
 0x13e   :  { %581 = vmatpush1.bf16.msra.mxu1 %v2774_v9  ;;  %2684 = vmatprep.subr.bf16.mxu0 %v2794_v18  ;;  %v2813_v41 = vld [vmem:[#allocation13 + $0x20] ss:$8 sps:$4 sm:$0xff]   ;;  %v2816_v43 = vld [vmem:[#allocation13 + $0x30] ss:$8 sps:$4 sm:$0xff]   ;;  %v2821_v44 = vld [vmem:[#allocation13 + $0x44] ss:$8 sps:$4 sm:$0xff]   ;;  %v478_v18 = vlaneseq }
 0x13f   :  { %582 = vmatprep.subr.bf16.mxu1 %v2775_v11  ;;  %v2819_v45 = vld [vmem:[#allocation13 + $0x40] ss:$8 sps:$4 sm:$0xff]   ;;  %v2824_v46 = vld [vmem:[#allocation13 + $0x54] ss:$8 sps:$4 sm:$0xff]   ;;  %v2822_v47 = vld [vmem:[#allocation13 + $0x50] ss:$8 sps:$4 sm:$0xff]  }
 0x140   :  { %v2827_v48 = vld [vmem:[#allocation13 + $0x64] ss:$8 sps:$4 sm:$0xff]   ;;  %v2825_v49 = vld [vmem:[#allocation13 + $0x60] ss:$8 sps:$4 sm:$0xff]   ;;  %v2830_v50 = vld [vmem:[#allocation13 + $0x74] ss:$8 sps:$4 sm:$0xff]  }
 0x141   :  { %2685 = vmatpush3.bf16.msra.mxu0 %v2795_v21  ;;  %v2828_v51 = vld [vmem:[#allocation13 + $0x70] ss:$8 sps:$4 sm:$0xff]   ;;  %v2833_v52 = vld [vmem:[#allocation11 + $0x4] ss:$8 sps:$4 sm:$0xff]   ;;  %v2855_v53 = vld [vmem:[#allocation14] ss:$8 sps:$4 sm:$0xff]  }
 0x142   :  { %583 = vmatpush1.bf16.msra.mxu1 %v2777_v12  ;;  %2686 = vmatprep.subr.bf16.mxu0 %v2796_v22  ;;  %v2857_v54 = vld [vmem:[#allocation14 + $0x4] ss:$8 sps:$4 sm:$0xff]   ;;  %v2860_v55 = vld [vmem:[#allocation14 + $0x14] ss:$8 sps:$4 sm:$0xff]   ;;  %v2858_v56 = vld [vmem:[#allocation14 + $0x10] ss:$8 sps:$4 sm:$0xff]  }
 0x143   :  { %584 = vmatprep.subr.bf16.mxu1 %v2778_v15  ;;  %v2863_v57 = vld [vmem:[#allocation14 + $0x24] ss:$8 sps:$4 sm:$0xff]   ;;  %v2861_v58 = vld [vmem:[#allocation14 + $0x20] ss:$8 sps:$4 sm:$0xff]   ;;  %v2866_v59 = vld [vmem:[#allocation14 + $0x34] ss:$8 sps:$4 sm:$0xff]  }
 0x144   :  { %v2864_v60 = vld [vmem:[#allocation14 + $0x30] ss:$8 sps:$4 sm:$0xff]   ;;  %v2869_v61 = vld [vmem:[#allocation14 + $0x44] ss:$8 sps:$4 sm:$0xff]   ;;  %v2867_v62 = vld [vmem:[#allocation14 + $0x40] ss:$8 sps:$4 sm:$0xff]  }
 0x145   :  { %2687 = vmatpush3.bf16.msra.mxu0 %v2797_v25  ;;  %v2872_v63 = vld [vmem:[#allocation14 + $0x54] ss:$8 sps:$4 sm:$0xff]   ;;  %v2870_v1 = vld [vmem:[#allocation14 + $0x50] ss:$8 sps:$4 sm:$0xff]   ;;  %v2875_v2 = vld [vmem:[#allocation14 + $0x64] ss:$8 sps:$4 sm:$0xff]  }
 0x146   :  { %585 = vmatpush1.bf16.msra.mxu1 %v2780_v19  ;;  %2688 = vmatprep.subr.bf16.mxu0 %v2798_v26  ;;  %v2873_v3 = vld [vmem:[#allocation14 + $0x60] ss:$8 sps:$4 sm:$0xff]   ;;  %v2878_v4 = vld [vmem:[#allocation14 + $0x74] ss:$8 sps:$4 sm:$0xff]   ;;  %v2876_v5 = vld [vmem:[#allocation14 + $0x70] ss:$8 sps:$4 sm:$0xff]  }
 0x147   :  { %586 = vmatprep.subr.bf16.mxu1 %v2781_v20  ;;  %v2881_v6 = vld [vmem:[#allocation14 + $0x84] ss:$8 sps:$4 sm:$0xff]   ;;  %v2879_v7 = vld [vmem:[#allocation14 + $0x80] ss:$8 sps:$4 sm:$0xff]   ;;  %v2884_v8 = vld [vmem:[#allocation14 + $0x94] ss:$8 sps:$4 sm:$0xff]  }
 0x148   :  { %v2882_v9 = vld [vmem:[#allocation14 + $0x90] ss:$8 sps:$4 sm:$0xff]   ;;  %v2887_v10 = vld [vmem:[#allocation14 + $0xa4] ss:$8 sps:$4 sm:$0xff]   ;;  %v2885_v11 = vld [vmem:[#allocation14 + $0xa0] ss:$8 sps:$4 sm:$0xff]  }
 0x149   :  { %2689 = vmatpush3.bf16.msra.mxu0 %v2799_v30  ;;  %v2890_v12 = vld [vmem:[#allocation14 + $0xb4] ss:$8 sps:$4 sm:$0xff]   ;;  %v2888_v13 = vld [vmem:[#allocation14 + $0xb0] ss:$8 sps:$4 sm:$0xff]   ;;  %v2893_v14 = vld [vmem:[#allocation14 + $0xc4] ss:$8 sps:$4 sm:$0xff]  }
 0x14a   :  { %587 = vmatpush1.bf16.msra.mxu1 %v2784_v23  ;;  %2690 = vmatprep.subr.bf16.mxu0 %v2800_v31  ;;  %v2891_v15 = vld [vmem:[#allocation14 + $0xc0] ss:$8 sps:$4 sm:$0xff]   ;;  %v2896_v16 = vld [vmem:[#allocation14 + $0xd4] ss:$8 sps:$4 sm:$0xff]   ;;  %v2894_v17 = vld [vmem:[#allocation14 + $0xd0] ss:$8 sps:$4 sm:$0xff]  }
 0x14b   :  { %588 = vmatprep.subr.bf16.mxu1 %v2786_v24  ;;  %v479_v19 = vshrl.u32 %v478_v18, 7  ;;  %v476_v21 = vld [vmem:[%s4081_s22] sm:$0x3]  ;;  %v2927_v18 = vld [vmem:[#allocation16 + $0x80] ss:$8 sps:$4 sm:$0xff]  }
 0x14d   :  { %2691 = vmatpush3.bf16.msra.mxu0 %v2801_v32  ;;  %v3927_v20 = vsub.s32 0, %v479_v19  ;;  %v3932_v22 = vsub.s32 1, %v479_v19  ;;  %v2932_v19 = vld [vmem:[#allocation16 + $0x94] ss:$8 sps:$4 sm:$0xff]  }
 0x14e   :  { %589 = vmatpush1.bf16.msra.mxu1 %v2789_v27  ;;  %2692 = vmatprep.subr.bf16.mxu0 %v2802_v33  ;;  %v2831_v33 = vld [vmem:[#allocation11] ss:$8 sps:$4 sm:$0xff]  }
 0x14f   :  { %1123 = vmatprep.subr.bf16.mxu1 %v2857_v54  ;;  %v481_v23 = vrot.slane %v476_v21, %v3927_v20  ;;  %v485_v25 = vrot.slane %v476_v21, %v3932_v22  ;;  %v2848_v54 = vld [vmem:[#allocation11 + $0x54] ss:$8 sps:$4 sm:$0xff]   ;;  %v2930_v21 = vld [vmem:[#allocation16 + $0x90] ss:$8 sps:$4 sm:$0xff]  }
 0x151   :  { %607 = vmatmul.mubr.bf16.vlgmr.msra.gmra.mrb[0].mxu1 %v2791_v28  ;;  %2693 = vmatpush3.bf16.msra.mxu0 %v2803_v34 }
 0x152   :  { %731 = vmatprep.subr.bf16.mxu0 %v2809_v36  ;;  %1124 = vmatpush1.bf16.msra.mxu1 %v2855_v53  ;;  %v2843_v53 = vld [vmem:[#allocation11 + $0x40] ss:$8 sps:$4 sm:$0xff]  }
 0x153   :  { %1125 = vmatprep.subr.bf16.mxu1 %v2860_v55  ;;  %v2846_v55 = vld [vmem:[#allocation11 + $0x50] ss:$8 sps:$4 sm:$0xff]  }
 0x154   :  { %450 = vmatmul.mubr.bf16.vlgmr.msra.gmra.mrb[0].mxu0 %v2804_v35  ;;  %v2836_v35 = vld [vmem:[#allocation11 + $0x14] ss:$8 sps:$4 sm:$0xff]  }
 0x155   :  { %732 = vmatpush1.bf16.msra.mxu0 %v2807_v37  ;;  %763 = vmatprep.mubr.bf16.mxu0 %v3535_v0  ;;  %v2834_v37 = vld [vmem:[#allocation11 + $0x10] ss:$8 sps:$4 sm:$0xff]  }
 0x156   :  { %733 = vmatprep.subr.bf16.mxu0 %v2812_v38  ;;  %1126 = vmatpush1.bf16.msra.mxu1 %v2858_v56  ;;  %v2839_v38 = vld [vmem:[#allocation11 + $0x24] ss:$8 sps:$4 sm:$0xff]  }
 0x157   :  { %1127 = vmatprep.subr.bf16.mxu1 %v2863_v57  ;;  %v2851_v56 = vld [vmem:[#allocation11 + $0x64] ss:$8 sps:$4 sm:$0xff]   ;;  %v2849_v57 = vld [vmem:[#allocation11 + $0x60] ss:$8 sps:$4 sm:$0xff]  }
 0x159   :  { %734 = vmatpush1.bf16.msra.mxu0 %v2810_v39 }
 0x15a   :  { %735 = vmatprep.subr.bf16.mxu0 %v2815_v40  ;;  %1128 = vmatpush1.bf16.msra.mxu1 %v2861_v58  ;;  %v2437_v40 = vld [vmem:[%s4082_s30] ss:$0 sm:$0xff]  ;;  %v2854_v58 = vld [vmem:[#allocation11 + $0x74] ss:$8 sps:$4 sm:$0xff]  }
 0x15b   :  { %1129 = vmatprep.subr.bf16.mxu1 %v2866_v59  ;;  %v2852_v59 = vld [vmem:[#allocation11 + $0x70] ss:$8 sps:$4 sm:$0xff]  }
 0x15d   :  { %736 = vmatpush1.bf16.msra.mxu0 %v2813_v41 }
 0x15e   :  { %737 = vmatprep.subr.bf16.mxu0 %v2818_v42  ;;  %1130 = vmatpush1.bf16.msra.mxu1 %v2864_v60  ;;  %v2837_v42 = vld [vmem:[#allocation11 + $0x20] ss:$8 sps:$4 sm:$0xff]   ;;  %v2899_v60 = vld [vmem:[#allocation14 + $0xe4] ss:$8 sps:$4 sm:$0xff]  }
 0x15f   :  { %1131 = vmatprep.subr.bf16.mxu1 %v2869_v61  ;;  %v2897_v61 = vld [vmem:[#allocation14 + $0xe0] ss:$8 sps:$4 sm:$0xff]  }
 0x161   :  { %738 = vmatpush1.bf16.msra.mxu0 %v2816_v43 }
 0x162   :  { %739 = vmatprep.subr.bf16.mxu0 %v2821_v44  ;;  %1132 = vmatpush1.bf16.msra.mxu1 %v2867_v62  ;;  %v2902_v62 = vld [vmem:[#allocation14 + $0xf4] ss:$8 sps:$4 sm:$0xff]  }
 0x163   :  { %1133 = vmatprep.subr.bf16.mxu1 %v2872_v63  ;;  %v2900_v63 = vld [vmem:[#allocation14 + $0xf0] ss:$8 sps:$4 sm:$0xff]  }
 0x165   :  { %740 = vmatpush1.bf16.msra.mxu0 %v2819_v45  ;;  %v2842_v45 = vld [vmem:[#allocation11 + $0x34] ss:$8 sps:$4 sm:$0xff]  }
 0x166   :  { %741 = vmatprep.subr.bf16.mxu0 %v2824_v46  ;;  %1134 = vmatpush1.bf16.msra.mxu1 %v2870_v1  ;;  %v2903_v1 = vld [vmem:[#allocation16] ss:$8 sps:$4 sm:$0xff]  }
 0x167   :  { %1135 = vmatprep.subr.bf16.mxu1 %v2875_v2  ;;  %v2905_v2 = vld [vmem:[#allocation16 + $0x4] ss:$8 sps:$4 sm:$0xff]  }
 0x169   :  { %742 = vmatpush1.bf16.msra.mxu0 %v2822_v47 }
 0x16a   :  { %743 = vmatprep.subr.bf16.mxu0 %v2827_v48  ;;  %1136 = vmatpush1.bf16.msra.mxu1 %v2873_v3  ;;  %v2908_v3 = vld [vmem:[#allocation16 + $0x14] ss:$8 sps:$4 sm:$0xff]  }
 0x16b   :  { %1137 = vmatprep.subr.bf16.mxu1 %v2878_v4  ;;  %v2906_v4 = vld [vmem:[#allocation16 + $0x10] ss:$8 sps:$4 sm:$0xff]  }
 0x16d   :  { %744 = vmatpush1.bf16.msra.mxu0 %v2825_v49  ;;  %v2840_v49 = vld [vmem:[#allocation11 + $0x30] ss:$8 sps:$4 sm:$0xff]  }
 0x16e   :  { %745 = vmatprep.subr.bf16.mxu0 %v2830_v50  ;;  %1138 = vmatpush1.bf16.msra.mxu1 %v2876_v5  ;;  %v2911_v5 = vld [vmem:[#allocation16 + $0x24] ss:$8 sps:$4 sm:$0xff]  }
 0x16f   :  { %1139 = vmatprep.subr.bf16.mxu1 %v2881_v6  ;;  %v2909_v6 = vld [vmem:[#allocation16 + $0x20] ss:$8 sps:$4 sm:$0xff]  }
 0x171   :  { %746 = vmatpush1.bf16.msra.mxu0 %v2828_v51  ;;  %v2845_v51 = vld [vmem:[#allocation11 + $0x44] ss:$8 sps:$4 sm:$0xff]  }
 0x172   :  { %854 = vmatprep.subr.bf16.mxu0 %v2833_v52  ;;  %1140 = vmatpush1.bf16.msra.mxu1 %v2879_v7  ;;  %v2914_v7 = vld [vmem:[#allocation16 + $0x34] ss:$8 sps:$4 sm:$0xff]  }
 0x173   :  { %1141 = vmatprep.subr.bf16.mxu1 %v2884_v8  ;;  %v2912_v8 = vld [vmem:[#allocation16 + $0x30] ss:$8 sps:$4 sm:$0xff]  }
 0x176   :  { %1142 = vmatpush1.bf16.msra.mxu1 %v2882_v9  ;;  %v2917_v9 = vld [vmem:[#allocation16 + $0x44] ss:$8 sps:$4 sm:$0xff]  }
 0x177   :  { %1143 = vmatprep.subr.bf16.mxu1 %v2887_v10  ;;  %v2915_v10 = vld [vmem:[#allocation16 + $0x40] ss:$8 sps:$4 sm:$0xff]  }
 0x17a   :  { %1144 = vmatpush1.bf16.msra.mxu1 %v2885_v11  ;;  %v2920_v11 = vld [vmem:[#allocation16 + $0x54] ss:$8 sps:$4 sm:$0xff]  }
 0x17b   :  { %1145 = vmatprep.subr.bf16.mxu1 %v2890_v12  ;;  %v2918_v12 = vld [vmem:[#allocation16 + $0x50] ss:$8 sps:$4 sm:$0xff]  }
 0x17e   :  { %1146 = vmatpush1.bf16.msra.mxu1 %v2888_v13  ;;  %v2923_v13 = vld [vmem:[#allocation16 + $0x64] ss:$8 sps:$4 sm:$0xff]  }
 0x17f   :  { %1147 = vmatprep.subr.bf16.mxu1 %v2893_v14  ;;  %v2921_v14 = vld [vmem:[#allocation16 + $0x60] ss:$8 sps:$4 sm:$0xff]  }
 0x182   :  { %1148 = vmatpush1.bf16.msra.mxu1 %v2891_v15  ;;  %v2926_v15 = vld [vmem:[#allocation16 + $0x74] ss:$8 sps:$4 sm:$0xff]  }
 0x183   :  { %1149 = vmatprep.subr.bf16.mxu1 %v2896_v16  ;;  %v2924_v16 = vld [vmem:[#allocation16 + $0x70] ss:$8 sps:$4 sm:$0xff]  }
 0x186   :  { %1150 = vmatpush1.bf16.msra.mxu1 %v2894_v17  ;;  %v2929_v17 = vld [vmem:[#allocation16 + $0x84] ss:$8 sps:$4 sm:$0xff]  }
 0x187   :  { %1151 = vmatprep.subr.bf16.mxu1 %v2899_v60 }
 0x18a   :  { %1152 = vmatpush1.bf16.msra.mxu1 %v2897_v61 }
 0x18b   :  { %1153 = vmatprep.subr.bf16.mxu1 %v2902_v62 }
 0x18e   :  { %1154 = vmatpush1.bf16.msra.mxu1 %v2900_v63 }
 0x224   :  { %v608_v24 = vpop.f32.mrb[0].mxu1 }
 0x225   :  { %v610_v26 = vpop.f32.mrb[1].mxu1  ;;  %v609_v28 = vadd.f32 %v608_v24, %v481_v23  ;;  %v2933_v24 = vld [vmem:[#allocation16 + $0xa0] ss:$8 sps:$4 sm:$0xff]  }
 0x226   :  { %v612_v27 = vpop.f32.mrb[2].mxu1  ;;  %v3936_v31 = vadd.f32 %v610_v26, %v485_v25  ;;  %v2936_v26 = vld [vmem:[#allocation16 + $0xb0] ss:$8 sps:$4 sm:$0xff]  }
 0x227   :  { %v613_v29 = vadd.f32 %v612_v27, %v481_v23  ;;  %v614_v30 = vpop.f32.mrb[3].mxu1  ;;  %v2694_v39 = vpop.f32.mrb[0].mxu0  ;;  %v2935_v23 = vld [vmem:[#allocation16 + $0xa4] ss:$8 sps:$4 sm:$0xff]  }
 0x228   :  { %v3938_v32 = vadd.f32 %v614_v30, %v485_v25  ;;  %v2695_v41 = vpop.f32.mrb[1].mxu0  ;;  %v2938_v25 = vld [vmem:[#allocation16 + $0xb4] ss:$8 sps:$4 sm:$0xff]   ;;  %v2941_v27 = vld [vmem:[#allocation16 + $0xc4] ss:$8 sps:$4 sm:$0xff]  }
 0x229   :  { %v634_v34 = vpack.c.bf16 %v613_v29, %v609_v28  ;;  %v2696_v43 = vadd.f32 %v2695_v41, %v2694_v39  ;;  %v2697_v44 = vpop.f32.mrb[2].mxu0  ;;  %v2939_v28 = vld [vmem:[#allocation16 + $0xc0] ss:$8 sps:$4 sm:$0xff]   ;;  %v2944_v29 = vld [vmem:[#allocation16 + $0xd4] ss:$8 sps:$4 sm:$0xff]  }
 0x22a   :  { %v1561_v36 = vpack.c.bf16 %v3938_v32, %v3936_v31  ;;  %v2698_v46 = vpop.f32.mrb[3].mxu0  ;;  %v2942_v30 = vld [vmem:[#allocation16 + $0xd0] ss:$8 sps:$4 sm:$0xff]   ;;  %v3003_v32 = vld [vmem:[#allocation19 + $0x64] ss:$8 sps:$4 sm:$0xff]  }
 0x22b   :  { %764 = vmatmul.mubr.bf16.vlgmr.msra.gmra.mrb[4].mxu0 %v634_v34  ;;  %v452_v47 = vadd.f32 %v2696_v43, %v2437_v40  ;;  %v2699_v48 = vadd.f32 %v2698_v46, %v2697_v44  ;;  %v2998_v31 = vld [vmem:[#allocation19 + $0x50] ss:$8 sps:$4 sm:$0xff]  }
 0x22c   :  { %855 = vmatpush1.bf16.msra.mxu0 %v2831_v33  ;;  %886 = vmatprep.mubr.bf16.mxu0 %v3535_v0  ;;  %v897_v33 = vld [vmem:[%s4083_s17] sm:$0x3] }
 0x22d   :  { %856 = vmatprep.subr.bf16.mxu0 %v2836_v35  ;;  %v455_v50 = vadd.f32 %v2699_v48, %v2437_v40  ;;  %v902_v34 = vrot.slane %v897_v33, %v3927_v20  ;;  %v906_v35 = vrot.slane %v897_v33, %v3932_v22 }
 0x22f   :  { %v617_v52 = vpack.c.bf16 %v455_v50, %v452_v47 }
 0x230   :  { %857 = vmatpush1.bf16.msra.mxu0 %v2834_v37 }
 0x231   :  { %858 = vmatprep.subr.bf16.mxu0 %v2839_v38 }
 0x234   :  { %859 = vmatpush1.bf16.msra.mxu0 %v2837_v42 }
 0x235   :  { %860 = vmatprep.subr.bf16.mxu0 %v2842_v45 }
 0x238   :  { %861 = vmatpush1.bf16.msra.mxu0 %v2840_v49 }
 0x239   :  { %862 = vmatprep.subr.bf16.mxu0 %v2845_v51  ;;  %v2947_v51 = vld [vmem:[#allocation16 + $0xe4] ss:$8 sps:$4 sm:$0xff]  }
 0x23c   :  { %863 = vmatpush1.bf16.msra.mxu0 %v2843_v53  ;;  %v2950_v53 = vld [vmem:[#allocation16 + $0xf4] ss:$8 sps:$4 sm:$0xff]  }
 0x23d   :  { %864 = vmatprep.subr.bf16.mxu0 %v2848_v54  ;;  %v2948_v54 = vld [vmem:[#allocation16 + $0xf0] ss:$8 sps:$4 sm:$0xff]  }
 0x240   :  { %865 = vmatpush1.bf16.msra.mxu0 %v2846_v55  ;;  %v2951_v55 = vld [vmem:[#allocation17] sm:$0xff]  }
 0x241   :  { %866 = vmatprep.subr.bf16.mxu0 %v2851_v56  ;;  %v3536_v56 = vmov 0.0  }
 0x242   :  { %2709 = vmatprep.subr.bf16.mxu1 %v3536_v56 }
 0x244   :  { %867 = vmatpush1.bf16.msra.mxu0 %v2849_v57  ;;  %v2952_v57 = vld [vmem:[#allocation17 + $0x8] sm:$0xff]  }
 0x245   :  { %868 = vmatprep.subr.bf16.mxu0 %v2854_v58  ;;  %v951_v58 = vld [vmem:[%s4037_s11] sm:$0x3] }
 0x246   :  { %v960_v60 = vrot.slane %v951_v58, %v3932_v22 }
 0x248   :  { %869 = vmatpush1.bf16.msra.mxu0 %v2852_v59  ;;  %v956_v59 = vrot.slane %v951_v58, %v3927_v20  ;;  %v2974_v58 = vld [vmem:[#allocation20 + $0x50] ss:$8 sps:$4 sm:$0xff]  }
 0x249   :  { %1376 = vmatprep.subr.bf16.mxu0 %v2905_v2 }
 0x24b   :  { %887 = vmatmul.mubr.bf16.vlgmr.msra.gmra.mrb[4].mxu0 %v617_v52  ;;  %v2945_v52 = vld [vmem:[#allocation16 + $0xe0] ss:$8 sps:$4 sm:$0xff]  }
 0x24c   :  { %1377 = vmatpush1.bf16.msra.mxu0 %v2903_v1 }
 0x24d   :  { %1378 = vmatprep.subr.bf16.mxu0 %v2908_v3 }
 0x250   :  { %1379 = vmatpush1.bf16.msra.mxu0 %v2906_v4 }
 0x251   :  { %1380 = vmatprep.subr.bf16.mxu0 %v2911_v5 }
 0x254   :  { %1381 = vmatpush1.bf16.msra.mxu0 %v2909_v6 }
 0x255   :  { %1382 = vmatprep.subr.bf16.mxu0 %v2914_v7 }
 0x258   :  { %1383 = vmatpush1.bf16.msra.mxu0 %v2912_v8 }
 0x259   :  { %1384 = vmatprep.subr.bf16.mxu0 %v2917_v9 }
 0x25c   :  { %1385 = vmatpush1.bf16.msra.mxu0 %v2915_v10 }
 0x25d   :  { %1386 = vmatprep.subr.bf16.mxu0 %v2920_v11 }
 0x260   :  { %1387 = vmatpush1.bf16.msra.mxu0 %v2918_v12  ;;  %v2953_v12 = vld [vmem:[#allocation17 + $0x10] sm:$0xff]  }
 0x261   :  { %1388 = vmatprep.subr.bf16.mxu0 %v2923_v13  ;;  %v2954_v13 = vld [vmem:[#allocation17 + $0x18] sm:$0xff]  }
 0x264   :  { %1389 = vmatpush1.bf16.msra.mxu0 %v2921_v14  ;;  %v2955_v14 = vld [vmem:[#allocation17 + $0x20] sm:$0xff]  }
 0x265   :  { %1390 = vmatprep.subr.bf16.mxu0 %v2926_v15  ;;  %v2956_v15 = vld [vmem:[#allocation17 + $0x28] sm:$0xff]  }
 0x268   :  { %1391 = vmatpush1.bf16.msra.mxu0 %v2924_v16  ;;  %v2957_v16 = vld [vmem:[#allocation17 + $0x30] sm:$0xff]  }
 0x269   :  { %1392 = vmatprep.subr.bf16.mxu0 %v2929_v17  ;;  %v2958_v17 = vld [vmem:[#allocation17 + $0x38] sm:$0xff]  }
 0x26c   :  { %1393 = vmatpush1.bf16.msra.mxu0 %v2927_v18  ;;  %v2961_v18 = vld [vmem:[#allocation20 + $0x4] ss:$8 sps:$4 sm:$0xff]  }
 0x26d   :  { %1394 = vmatprep.subr.bf16.mxu0 %v2932_v19  ;;  %v1204_v19 = vld [vmem:[%s4039_s13] sm:$0x3] }
 0x270   :  { %1395 = vmatpush1.bf16.msra.mxu0 %v2930_v21  ;;  %v1209_v21 = vrot.slane %v1204_v19, %v3927_v20 }
 0x271   :  { %1396 = vmatprep.subr.bf16.mxu0 %v2935_v23  ;;  %v1213_v23 = vrot.slane %v1204_v19, %v3932_v22  ;;  %v3016_v19 = vld [vmem:[#allocation22 + $0x30] ss:$8 sps:$4 sm:$0xff]  }
 0x274   :  { %1397 = vmatpush1.bf16.msra.mxu0 %v2933_v24 }
 0x275   :  { %1398 = vmatprep.subr.bf16.mxu0 %v2938_v25 }
 0x278   :  { %1399 = vmatpush1.bf16.msra.mxu0 %v2936_v26 }
 0x279   :  { %1400 = vmatprep.subr.bf16.mxu0 %v2941_v27 }
 0x27c   :  { %1401 = vmatpush1.bf16.msra.mxu0 %v2939_v28 }
 0x27d   :  { %1402 = vmatprep.subr.bf16.mxu0 %v2944_v29 }
 0x280   :  { %1403 = vmatpush1.bf16.msra.mxu0 %v2942_v30 }
 0x281   :  { %1404 = vmatprep.subr.bf16.mxu0 %v2947_v51  ;;  %v2967_v51 = vld [vmem:[#allocation20 + $0x24] ss:$8 sps:$4 sm:$0xff]  }
 0x284   :  { %1405 = vmatpush1.bf16.msra.mxu0 %v2945_v52  ;;  %v2965_v52 = vld [vmem:[#allocation20 + $0x20] ss:$8 sps:$4 sm:$0xff]  }
 0x285   :  { %1406 = vmatprep.subr.bf16.mxu0 %v2950_v53  ;;  %v2970_v53 = vld [vmem:[#allocation20 + $0x34] ss:$8 sps:$4 sm:$0xff]  }
 0x288   :  { %1407 = vmatpush1.bf16.msra.mxu0 %v2948_v54  ;;  %v2968_v54 = vld [vmem:[#allocation20 + $0x30] ss:$8 sps:$4 sm:$0xff]  }
 0x31e   :  { %v888_v37 = vpop.f32.mrb[4].mxu0 }
 0x31f   :  { %v909_v38 = vadd.f32 %v902_v34, %v888_v37  ;;  %v890_v39 = vpop.f32.mrb[5].mxu0 }
 0x320   :  { %v910_v40 = vadd.f32 %v906_v35, %v890_v39  ;;  %v892_v41 = vpop.f32.mrb[6].mxu0  ;;  %v1425_v39 = vld [vmem:[#allocation7] sm:$0xff] }
 0x321   :  { %v911_v42 = vadd.f32 %v902_v34, %v892_v41  ;;  %v894_v43 = vpop.f32.mrb[7].mxu0  ;;  %v913_v45 = vmax.f32 %v909_v38, 0.0  ;;  %v1426_v41 = vld [vmem:[#allocation7 + $0x8] sm:$0xff] }
 0x322   :  { %v912_v44 = vadd.f32 %v906_v35, %v894_v43  ;;  %v914_v47 = vmax.f32 %v910_v40, 0.0 }
 0x323   :  { %v915_v46 = vmax.f32 %v911_v42, 0.0 }
 0x324   :  { %v916_v48 = vmax.f32 %v912_v44, 0.0 }
 0x325   :  { %v917_v49 = vpack.c.bf16 %v915_v46, %v913_v45 }
 0x326   :  { %v918_v50 = vpack.c.bf16 %v916_v48, %v914_v47  ;;  %v2959_v47 = vld [vmem:[#allocation20] ss:$8 sps:$4 sm:$0xff]  }
 0x328   :  { %1155 = vmatprep.mubr.bf16.mxu1 %v918_v50  ;;  %v2962_v50 = vld [vmem:[#allocation20 + $0x10] ss:$8 sps:$4 sm:$0xff]  }
 0x329   :  { %1156 = vmatmul.mubr.bf16.vlgmr.msra.gmra.mrb[4].mxu1 %v917_v49  ;;  %v2964_v49 = vld [vmem:[#allocation20 + $0x14] ss:$8 sps:$4 sm:$0xff]  }
 0x32a   :  { %2710 = vmatpush3.bf16.msra.mxu1 %v2951_v55  ;;  %2725 = vmatprep.mubr.msk.bf16.mxu1 %vm3537_vm0, %v3536_v56  ;;  %v2973_v55 = vld [vmem:[#allocation20 + $0x44] ss:$8 sps:$4 sm:$0xff]  }
 0x32b   :  { %2711 = vmatprep.subr.bf16.mxu1 %v3536_v56 }
 0x32e   :  { %2712 = vmatpush3.bf16.msra.mxu1 %v2952_v57  ;;  %v2976_v57 = vld [vmem:[#allocation20 + $0x54] ss:$8 sps:$4 sm:$0xff]  }
 0x32f   :  { %2713 = vmatprep.subr.bf16.mxu1 %v3536_v56 }
 0x332   :  { %2714 = vmatpush3.bf16.msra.mxu1 %v2953_v12  ;;  %v3007_v12 = vld [vmem:[#allocation22] ss:$8 sps:$4 sm:$0xff]  }
 0x333   :  { %2715 = vmatprep.subr.bf16.mxu1 %v3536_v56 }
 0x336   :  { %2716 = vmatpush3.bf16.msra.mxu1 %v2954_v13  ;;  %v3009_v13 = vld [vmem:[#allocation22 + $0x4] ss:$8 sps:$4 sm:$0xff]  }
 0x337   :  { %2717 = vmatprep.subr.bf16.mxu1 %v3536_v56  ;;  %2050 = vmatprep.subr.bf16.mxu0 %v3009_v13  ;;  %v3088_v13 = vld [vmem:[#allocation23 + $0xb0] ss:$8 sps:$4 sm:$0xff]  }
 0x33a   :  { %2718 = vmatpush3.bf16.msra.mxu1 %v2955_v14  ;;  %v3012_v14 = vld [vmem:[#allocation22 + $0x14] ss:$8 sps:$4 sm:$0xff]  }
 0x33b   :  { %2719 = vmatprep.subr.bf16.mxu1 %v3536_v56 }
 0x33e   :  { %2720 = vmatpush3.bf16.msra.mxu1 %v2956_v15  ;;  %v3010_v15 = vld [vmem:[#allocation22 + $0x10] ss:$8 sps:$4 sm:$0xff]  }
 0x33f   :  { %2721 = vmatprep.subr.bf16.mxu1 %v3536_v56 }
 0x342   :  { %2722 = vmatpush3.bf16.msra.mxu1 %v2957_v16  ;;  %v3015_v16 = vld [vmem:[#allocation22 + $0x24] ss:$8 sps:$4 sm:$0xff]  }
 0x343   :  { %2723 = vmatprep.subr.bf16.mxu1 %v3536_v56  ;;  %v2971_v56 = vld [vmem:[#allocation20 + $0x40] ss:$8 sps:$4 sm:$0xff]  }
 0x346   :  { %2724 = vmatpush3.bf16.msra.mxu1 %v2958_v17  ;;  %v3013_v17 = vld [vmem:[#allocation22 + $0x20] ss:$8 sps:$4 sm:$0xff]  }
 0x347   :  { %1658 = vmatprep.subr.bf16.mxu1 %v2961_v18  ;;  %v3018_v18 = vld [vmem:[#allocation22 + $0x34] ss:$8 sps:$4 sm:$0xff]  }
 0x3fc   :  { %v1157_v61 = vpop.f32.mrb[4].mxu1 }
 0x3fd   :  { %v1158_v62 = vadd.f32 %v1157_v61, %v956_v59  ;;  %v1159_v63 = vpop.f32.mrb[5].mxu1  ;;  %v2982_v61 = vld [vmem:[#allocation20 + $0x74] ss:$8 sps:$4 sm:$0xff]  }
 0x3fe   :  { %v1160_v1 = vadd.f32 %v1159_v63, %v960_v60  ;;  %v1161_v2 = vpop.f32.mrb[6].mxu1  ;;  %v2985_v63 = vld [vmem:[#allocation19 + $0x4] ss:$8 sps:$4 sm:$0xff]  }
 0x3ff   :  { %v1162_v3 = vadd.f32 %v1161_v2, %v956_v59  ;;  %v1163_v4 = vpop.f32.mrb[7].mxu1  ;;  %v1166_v6 = vmax.f32 %v1158_v62, 0.0  ;;  %v2979_v59 = vld [vmem:[#allocation20 + $0x64] ss:$8 sps:$4 sm:$0xff]   ;;  %v2980_v62 = vld [vmem:[#allocation20 + $0x70] ss:$8 sps:$4 sm:$0xff]  }
 0x400   :  { %v1164_v5 = vadd.f32 %v1163_v4, %v960_v60  ;;  %v1167_v8 = vmax.f32 %v1160_v1, 0.0  ;;  %v2977_v60 = vld [vmem:[#allocation20 + $0x60] ss:$8 sps:$4 sm:$0xff]   ;;  %v2988_v2 = vld [vmem:[#allocation19 + $0x14] ss:$8 sps:$4 sm:$0xff]  }
 0x401   :  { %v1168_v7 = vmax.f32 %v1162_v3, 0.0  ;;  %v2983_v1 = vld [vmem:[#allocation19] ss:$8 sps:$4 sm:$0xff]   ;;  %v2986_v3 = vld [vmem:[#allocation19 + $0x10] ss:$8 sps:$4 sm:$0xff]  }
 0x402   :  { %v1169_v9 = vmax.f32 %v1164_v5, 0.0  ;;  %v2991_v4 = vld [vmem:[#allocation19 + $0x24] ss:$8 sps:$4 sm:$0xff]   ;;  %v2989_v5 = vld [vmem:[#allocation19 + $0x20] ss:$8 sps:$4 sm:$0xff]  }
 0x403   :  { %v1170_v10 = vpack.c.bf16 %v1168_v7, %v1166_v6  ;;  %v2994_v6 = vld [vmem:[#allocation19 + $0x34] ss:$8 sps:$4 sm:$0xff]   ;;  %v2992_v7 = vld [vmem:[#allocation19 + $0x30] ss:$8 sps:$4 sm:$0xff]  }
 0x404   :  { %v1171_v11 = vpack.c.bf16 %v1169_v9, %v1167_v8  ;;  %v2997_v8 = vld [vmem:[#allocation19 + $0x44] ss:$8 sps:$4 sm:$0xff]   ;;  %v2995_v9 = vld [vmem:[#allocation19 + $0x40] ss:$8 sps:$4 sm:$0xff]  }
 0x406   :  { %1408 = vmatprep.mubr.bf16.mxu0 %v1171_v11  ;;  %v3004_v11 = vld [vmem:[#allocation19 + $0x70] ss:$8 sps:$4 sm:$0xff]  }
 0x407   :  { %1409 = vmatmul.mubr.bf16.vlgmr.msra.gmra.mrb[8].mxu0 %v1170_v10  ;;  %v3000_v10 = vld [vmem:[#allocation19 + $0x54] ss:$8 sps:$4 sm:$0xff]  }
 0x408   :  { %2051 = vmatpush1.bf16.msra.mxu0 %v3007_v12  ;;  %v3090_v12 = vld [vmem:[#allocation23 + $0xb4] ss:$8 sps:$4 sm:$0xff]  }
 0x409   :  { %2052 = vmatprep.subr.bf16.mxu0 %v3012_v14  ;;  %v3093_v14 = vld [vmem:[#allocation23 + $0xc4] ss:$8 sps:$4 sm:$0xff]  }
 0x40c   :  { %2053 = vmatpush1.bf16.msra.mxu0 %v3010_v15  ;;  %v3091_v15 = vld [vmem:[#allocation23 + $0xc0] ss:$8 sps:$4 sm:$0xff]  }
 0x40d   :  { %2054 = vmatprep.subr.bf16.mxu0 %v3015_v16  ;;  %v3096_v16 = vld [vmem:[#allocation23 + $0xd4] ss:$8 sps:$4 sm:$0xff]  }
 0x410   :  { %2055 = vmatpush1.bf16.msra.mxu0 %v3013_v17  ;;  %v3094_v17 = vld [vmem:[#allocation23 + $0xd0] ss:$8 sps:$4 sm:$0xff]  }
 0x411   :  { %2056 = vmatprep.subr.bf16.mxu0 %v3018_v18  ;;  %v1824_v18 = vld [vmem:[%s4044_s18] sm:$0x3] }
 0x414   :  { %2057 = vmatpush1.bf16.msra.mxu0 %v3016_v19  ;;  %v1829_v19 = vrot.slane %v1824_v18, %v3927_v20 }
 0x4da   :  { %v1410_v24 = vpop.f32.mrb[8].mxu0 }
 0x4db   :  { %v1411_v25 = vadd.f32 %v1410_v24, %v1209_v21  ;;  %v1412_v26 = vpop.f32.mrb[9].mxu0  ;;  %v3024_v24 = vld [vmem:[#allocation22 + $0x54] ss:$8 sps:$4 sm:$0xff]  }
 0x4dc   :  { %v1413_v27 = vadd.f32 %v1412_v26, %v1213_v23  ;;  %v1414_v28 = vpop.f32.mrb[10].mxu0  ;;  %v3027_v26 = vld [vmem:[#allocation22 + $0x64] ss:$8 sps:$4 sm:$0xff]  }
 0x4dd   :  { %2378 = vst [vmem:[#allocation26] sm:$0xff] %v1411_v25  ;;  %v1415_v29 = vadd.f32 %v1414_v28, %v1209_v21  ;;  %v1416_v30 = vpop.f32.mrb[11].mxu0  ;;  %v3021_v21 = vld [vmem:[#allocation22 + $0x44] ss:$8 sps:$4 sm:$0xff]   ;;  %v3030_v28 = vld [vmem:[#allocation22 + $0x74] ss:$8 sps:$4 sm:$0xff]  }
 0x4de   :  { %v1419_v33 = vmul.f32 0.5, %v1413_v27  ;;  %2380 = vst [vmem:[#allocation28] sm:$0xff] %v1413_v27  ;;  %v1417_v34 = vadd.f32 %v1416_v30, %v1213_v23  ;;  %v3019_v23 = vld [vmem:[#allocation22 + $0x40] ss:$8 sps:$4 sm:$0xff]   ;;  %2058 = vmatprep.subr.bf16.mxu0 %v3021_v21  ;;  %v3033_v30 = vld [vmem:[#allocation22 + $0x84] ss:$8 sps:$4 sm:$0xff]   ;;  %v1833_v21 = vrot.slane %v1824_v18, %v3932_v22 }
 0x4df   :  { %2379 = vst [vmem:[#allocation26 + $0x8] sm:$0xff] %v1415_v29  ;;  %2059 = vmatpush1.bf16.msra.mxu0 %v3019_v23  ;;  %v3025_v27 = vld [vmem:[#allocation22 + $0x60] ss:$8 sps:$4 sm:$0xff]  }
 0x4e0   :  { %v1421_v35 = vmul.f32 1.442695, %v1419_v33  ;;  %v1420_v37 = vmul.f32 0.5, %v1417_v34  ;;  %2381 = vst [vmem:[#allocation28 + $0x8] sm:$0xff] %v1417_v34  ;;  %2060 = vmatprep.subr.bf16.mxu0 %v3024_v24  ;;  %v3031_v33 = vld [vmem:[#allocation22 + $0x80] ss:$8 sps:$4 sm:$0xff]  }
 0x4e1   :  { %v3036_v34 = vld [vmem:[#allocation22 + $0x94] ss:$8 sps:$4 sm:$0xff]  }
 0x4e2   :  { %3103 = vpow2.f32 %v1421_v35  ;;  %v1423_v38 = vmul.f32 1.442695, %v1420_v37  ;;  %v3034_v35 = vld [vmem:[#allocation22 + $0x90] ss:$8 sps:$4 sm:$0xff]   ;;  %v3039_v37 = vld [vmem:[#allocation22 + $0xa4] ss:$8 sps:$4 sm:$0xff]  }
 0x4e4   :  { %3105 = vpow2.f32 %v1423_v38  ;;  %v3037_v38 = vld [vmem:[#allocation22 + $0xa0] ss:$8 sps:$4 sm:$0xff]  }
 0x4ec   :  { %v3104_v40 = vpop.eup %3103 }
 0x4ed   :  { %v1427_v42 = vmul.f32 %v3104_v40, %v1425_v39  ;;  %v3042_v39 = vld [vmem:[#allocation22 + $0xb4] ss:$8 sps:$4 sm:$0xff]   ;;  %v3040_v40 = vld [vmem:[#allocation22 + $0xb0] ss:$8 sps:$4 sm:$0xff]  }
 0x4ee   :  { %v3106_v43 = vpop.eup %3105 }
 0x4ef   :  { %v1428_v44 = vmul.f32 %v3106_v43, %v1426_v41  ;;  %v1429_v45 = vadd.f32 %v1427_v42, %v1411_v25  ;;  %v3022_v25 = vld [vmem:[#allocation22 + $0x50] ss:$8 sps:$4 sm:$0xff]   ;;  %v3045_v41 = vld [vmem:[#allocation22 + $0xc4] ss:$8 sps:$4 sm:$0xff]   ;;  %v3043_v42 = vld [vmem:[#allocation22 + $0xc0] ss:$8 sps:$4 sm:$0xff]  }
 0x4f0   :  { %2061 = vmatpush1.bf16.msra.mxu0 %v3022_v25  ;;  %v3048_v43 = vld [vmem:[#allocation22 + $0xd4] ss:$8 sps:$4 sm:$0xff]  }
 0x4f1   :  { %v1430_v46 = vadd.f32 %v1428_v44, %v1415_v29  ;;  %2062 = vmatprep.subr.bf16.mxu0 %v3027_v26  ;;  %v3028_v29 = vld [vmem:[#allocation22 + $0x70] ss:$8 sps:$4 sm:$0xff]  }
 0x4f2   :  { %v3046_v44 = vld [vmem:[#allocation22 + $0xd0] ss:$8 sps:$4 sm:$0xff]  }
 0x4f3   :  { %v1431_v48 = vpack.c.bf16 %v1430_v46, %v1429_v45  ;;  %v2569_v45 = vld [vmem:[%s4041_s15] ss:$0 sm:$0xff] }
 0x4f4   :  { %2063 = vmatpush1.bf16.msra.mxu0 %v3025_v27 }
 0x4f5   :  { %2726 = vmatmul.mubr.bf16.vlgmr.msra.gmra.mrb[8].mxu1 %v1431_v48  ;;  %2064 = vmatprep.subr.bf16.mxu0 %v3030_v28 }
 0x4f6   :  { %1659 = vmatpush1.bf16.msra.mxu1 %v2959_v47  ;;  %1690 = vmatprep.mubr.bf16.mxu1 %v3535_v0 }
 0x4f7   :  { %1660 = vmatprep.subr.bf16.mxu1 %v2964_v49 }
 0x4f8   :  { %2065 = vmatpush1.bf16.msra.mxu0 %v3028_v29 }
 0x4f9   :  { %2066 = vmatprep.subr.bf16.mxu0 %v3033_v30 }
 0x4fa   :  { %1661 = vmatpush1.bf16.msra.mxu1 %v2962_v50 }
 0x4fb   :  { %1662 = vmatprep.subr.bf16.mxu1 %v2967_v51 }
 0x4fc   :  { %2067 = vmatpush1.bf16.msra.mxu0 %v3031_v33 }
 0x4fd   :  { %2068 = vmatprep.subr.bf16.mxu0 %v3036_v34 }
 0x4fe   :  { %1663 = vmatpush1.bf16.msra.mxu1 %v2965_v52 }
 0x4ff   :  { %1664 = vmatprep.subr.bf16.mxu1 %v2970_v53  ;;  %v3051_v53 = vld [vmem:[#allocation22 + $0xe4] ss:$8 sps:$4 sm:$0xff]  }
 0x500   :  { %2069 = vmatpush1.bf16.msra.mxu0 %v3034_v35 }
 0x501   :  { %2070 = vmatprep.subr.bf16.mxu0 %v3039_v37 }
 0x502   :  { %1665 = vmatpush1.bf16.msra.mxu1 %v2968_v54  ;;  %v3049_v54 = vld [vmem:[#allocation22 + $0xe0] ss:$8 sps:$4 sm:$0xff]  }
 0x503   :  { %1666 = vmatprep.subr.bf16.mxu1 %v2973_v55  ;;  %v3054_v55 = vld [vmem:[#allocation22 + $0xf4] ss:$8 sps:$4 sm:$0xff]  }
 0x504   :  { %2071 = vmatpush1.bf16.msra.mxu0 %v3037_v38 }
 0x505   :  { %2072 = vmatprep.subr.bf16.mxu0 %v3042_v39 }
 0x506   :  { %1667 = vmatpush1.bf16.msra.mxu1 %v2971_v56  ;;  %v3052_v56 = vld [vmem:[#allocation22 + $0xf0] ss:$8 sps:$4 sm:$0xff]  }
 0x507   :  { %1668 = vmatprep.subr.bf16.mxu1 %v2976_v57  ;;  %v3055_v57 = vld [vmem:[#allocation23] ss:$8 sps:$4 sm:$0xff]  }
 0x508   :  { %2073 = vmatpush1.bf16.msra.mxu0 %v3040_v40  ;;  %v3099_v40 = vld [vmem:[#allocation23 + $0xe4] ss:$8 sps:$4 sm:$0xff]  }
 0x509   :  { %2074 = vmatprep.subr.bf16.mxu0 %v3045_v41  ;;  %v3097_v41 = vld [vmem:[#allocation23 + $0xe0] ss:$8 sps:$4 sm:$0xff]  }
 0x50a   :  { %1669 = vmatpush1.bf16.msra.mxu1 %v2974_v58  ;;  %v3057_v58 = vld [vmem:[#allocation23 + $0x4] ss:$8 sps:$4 sm:$0xff]  }
 0x50b   :  { %1670 = vmatprep.subr.bf16.mxu1 %v2979_v59  ;;  %v3060_v59 = vld [vmem:[#allocation23 + $0x14] ss:$8 sps:$4 sm:$0xff]  }
 0x50c   :  { %2075 = vmatpush1.bf16.msra.mxu0 %v3043_v42  ;;  %v3102_v42 = vld [vmem:[#allocation23 + $0xf4] ss:$8 sps:$4 sm:$0xff]  }
 0x50d   :  { %2076 = vmatprep.subr.bf16.mxu0 %v3048_v43  ;;  %v3100_v43 = vld [vmem:[#allocation23 + $0xf0] ss:$8 sps:$4 sm:$0xff]  }
 0x50e   :  { %1671 = vmatpush1.bf16.msra.mxu1 %v2977_v60  ;;  %v3058_v60 = vld [vmem:[#allocation23 + $0x10] ss:$8 sps:$4 sm:$0xff]  }
 0x50f   :  { %1672 = vmatprep.subr.bf16.mxu1 %v2982_v61  ;;  %v3063_v61 = vld [vmem:[#allocation23 + $0x24] ss:$8 sps:$4 sm:$0xff]  }
 0x510   :  { %2077 = vmatpush1.bf16.msra.mxu0 %v3046_v44  ;;  %v1878_v44 = vld [vmem:[%s4046_s20] sm:$0x3]  ;;  %s3538_s20 = smov [#allocation26]  }
 0x511   :  { %2078 = vmatprep.subr.bf16.mxu0 %v3051_v53  ;;  %s2399_s8 = sshll.u32 %s3538_s20, 4  ;;  %s2400_s8 = int_to_ptr.vmem [resolvable:$true] %s2399_s8 }
 0x512   :  { %1673 = vmatpush1.bf16.msra.mxu1 %v2980_v62  ;;  %v3061_v62 = vld [vmem:[#allocation23 + $0x20] ss:$8 sps:$4 sm:$0xff]   ;;  %s3431_s9 = scalar_lea.vmem %s2400_s8, 256  ;;  %p3436_p1 = scmp.lt.s32.totalorder %s2400_s8, %s2400_s8 }
 0x513   :  { %1781 = vmatprep.subr.bf16.mxu1 %v2985_v63  ;;  %v3066_v63 = vld [vmem:[#allocation23 + $0x34] ss:$8 sps:$4 sm:$0xff]   ;;  %p3432_p0 = scmp.ne.s32.totalorder %s2400_s8, %s3431_s9  ;;  %p3437_p2 = scmp.lt.s32.totalorder %s3431_s9, %s3431_s9 }
 0x514   :  { %2079 = vmatpush1.bf16.msra.mxu0 %v3049_v54 }
 0x515   :  { %1691 = vmatmul.mubr.bf16.vlgmr.msra.gmra.mrb[12].mxu1 %v1561_v36  ;;  %v3006_v36 = vld [vmem:[#allocation19 + $0x74] ss:$8 sps:$4 sm:$0xff]   ;;  %2080 = vmatprep.subr.bf16.mxu0 %v3054_v55  ;;  %p3438_p3 = por %p3437_p2, %p3436_p1 }
 0x516   :  { %1782 = vmatpush1.bf16.msra.mxu1 %v2983_v1  ;;  %1813 = vmatprep.mubr.bf16.mxu1 %v3535_v0  ;;  %v3001_v0 = vld [vmem:[#allocation19 + $0x60] ss:$8 sps:$4 sm:$0xff]   ;;  %v3064_v1 = vld [vmem:[#allocation23 + $0x30] ss:$8 sps:$4 sm:$0xff]  }
 0x517   :  { %1783 = vmatprep.subr.bf16.mxu1 %v2988_v2  ;;  %v3069_v2 = vld [vmem:[#allocation23 + $0x44] ss:$8 sps:$4 sm:$0xff]   ;;  %p3439_p4 = pnand %p3438_p3, %p3432_p0 }
 0x518   :  { %2081 = vmatpush1.bf16.msra.mxu0 %v3052_v56 }
 0x51a   :  { %1784 = vmatpush1.bf16.msra.mxu1 %v2986_v3  ;;  %v3067_v3 = vld [vmem:[#allocation23 + $0x40] ss:$8 sps:$4 sm:$0xff]  }
 0x51b   :  { %1785 = vmatprep.subr.bf16.mxu1 %v2991_v4  ;;  %v3072_v4 = vld [vmem:[#allocation23 + $0x54] ss:$8 sps:$4 sm:$0xff]  }
 0x51e   :  { %1786 = vmatpush1.bf16.msra.mxu1 %v2989_v5  ;;  %v3070_v5 = vld [vmem:[#allocation23 + $0x50] ss:$8 sps:$4 sm:$0xff]  }
 0x51f   :  { %1787 = vmatprep.subr.bf16.mxu1 %v2994_v6  ;;  %v3075_v6 = vld [vmem:[#allocation23 + $0x64] ss:$8 sps:$4 sm:$0xff]  }
 0x522   :  { %1788 = vmatpush1.bf16.msra.mxu1 %v2992_v7  ;;  %v3073_v7 = vld [vmem:[#allocation23 + $0x60] ss:$8 sps:$4 sm:$0xff]  }
 0x523   :  { %1789 = vmatprep.subr.bf16.mxu1 %v2997_v8  ;;  %v3078_v8 = vld [vmem:[#allocation23 + $0x74] ss:$8 sps:$4 sm:$0xff]  }
 0x526   :  { %1790 = vmatpush1.bf16.msra.mxu1 %v2995_v9  ;;  %v3076_v9 = vld [vmem:[#allocation23 + $0x70] ss:$8 sps:$4 sm:$0xff]  }
 0x527   :  { %1791 = vmatprep.subr.bf16.mxu1 %v3000_v10  ;;  %v3081_v10 = vld [vmem:[#allocation23 + $0x84] ss:$8 sps:$4 sm:$0xff]  }
 0x52a   :  { %1792 = vmatpush1.bf16.msra.mxu1 %v2998_v31  ;;  %v3079_v31 = vld [vmem:[#allocation23 + $0x80] ss:$8 sps:$4 sm:$0xff]  }
 0x52b   :  { %1793 = vmatprep.subr.bf16.mxu1 %v3003_v32  ;;  %v3084_v32 = vld [vmem:[#allocation23 + $0x94] ss:$8 sps:$4 sm:$0xff]  }
 0x52e   :  { %1794 = vmatpush1.bf16.msra.mxu1 %v3001_v0  ;;  %v3082_v0 = vld [vmem:[#allocation23 + $0x90] ss:$8 sps:$4 sm:$0xff]  }
 0x52f   :  { %1795 = vmatprep.subr.bf16.mxu1 %v3006_v36  ;;  %v3087_v36 = vld [vmem:[#allocation23 + $0xa4] ss:$8 sps:$4 sm:$0xff]  }
 0x532   :  { %1796 = vmatpush1.bf16.msra.mxu1 %v3004_v11  ;;  %v3085_v11 = vld [vmem:[#allocation23 + $0xa0] ss:$8 sps:$4 sm:$0xff]  }
 0x533   :  { %2303 = vmatprep.subr.bf16.mxu1 %v3057_v58 }
 0x5c8   :  { %v1537_v46 = vpop.f32.mrb[8].mxu1 }
 0x5c9   :  { %v2727_v47 = vpop.f32.mrb[9].mxu1  ;;  %v1538_v49 = vadd.f32 %v2569_v45, %v1537_v46  ;;  %v1887_v46 = vrot.slane %v1878_v44, %v3932_v22 }
 0x5ca   :  { %v1540_v48 = vpop.f32.mrb[10].mxu1 }
 0x5cb   :  { %v1541_v50 = vadd.f32 %v2569_v45, %v1540_v48  ;;  %v2728_v51 = vpop.f32.mrb[11].mxu1  ;;  %v1883_v45 = vrot.slane %v1878_v44, %v3927_v20 }
 0x5cd   :  { %v1544_v52 = vpack.c.bf16 %v1541_v50, %v1538_v49 }
 0x5cf   :  { %1814 = vmatmul.mubr.bf16.vlgmr.msra.gmra.mrb[12].mxu1 %v1544_v52 }
 0x5d0   :  { %2304 = vmatpush1.bf16.msra.mxu1 %v3055_v57 }
 0x5d1   :  { %2305 = vmatprep.subr.bf16.mxu1 %v3060_v59 }
 0x5d4   :  { %2306 = vmatpush1.bf16.msra.mxu1 %v3058_v60 }
 0x5d5   :  { %2307 = vmatprep.subr.bf16.mxu1 %v3063_v61 }
 0x5d8   :  { %2308 = vmatpush1.bf16.msra.mxu1 %v3061_v62 }
 0x5d9   :  { %2309 = vmatprep.subr.bf16.mxu1 %v3066_v63 }
 0x5dc   :  { %2310 = vmatpush1.bf16.msra.mxu1 %v3064_v1 }
 0x5dd   :  { %2311 = vmatprep.subr.bf16.mxu1 %v3069_v2 }
 0x5e0   :  { %2312 = vmatpush1.bf16.msra.mxu1 %v3067_v3 }
 0x5e1   :  { %2313 = vmatprep.subr.bf16.mxu1 %v3072_v4 }
 0x5e4   :  { %2314 = vmatpush1.bf16.msra.mxu1 %v3070_v5 }
 0x5e5   :  { %2315 = vmatprep.subr.bf16.mxu1 %v3075_v6 }
 0x5e8   :  { %2316 = vmatpush1.bf16.msra.mxu1 %v3073_v7 }
 0x5e9   :  { %2317 = vmatprep.subr.bf16.mxu1 %v3078_v8 }
 0x5ec   :  { %2318 = vmatpush1.bf16.msra.mxu1 %v3076_v9 }
 0x5ed   :  { %2319 = vmatprep.subr.bf16.mxu1 %v3081_v10 }
 0x5f0   :  { %2320 = vmatpush1.bf16.msra.mxu1 %v3079_v31 }
 0x5f1   :  { %2321 = vmatprep.subr.bf16.mxu1 %v3084_v32 }
 0x5f4   :  { %2322 = vmatpush1.bf16.msra.mxu1 %v3082_v0 }
 0x5f5   :  { %2323 = vmatprep.subr.bf16.mxu1 %v3087_v36 }
 0x5f8   :  { %2324 = vmatpush1.bf16.msra.mxu1 %v3085_v11 }
 0x5f9   :  { %2325 = vmatprep.subr.bf16.mxu1 %v3090_v12 }
 0x5fc   :  { %2326 = vmatpush1.bf16.msra.mxu1 %v3088_v13 }
 0x5fd   :  { %2327 = vmatprep.subr.bf16.mxu1 %v3093_v14 }
 0x600   :  { %2328 = vmatpush1.bf16.msra.mxu1 %v3091_v15 }
 0x601   :  { %2329 = vmatprep.subr.bf16.mxu1 %v3096_v16 }
 0x604   :  { %2330 = vmatpush1.bf16.msra.mxu1 %v3094_v17 }
 0x605   :  { %2331 = vmatprep.subr.bf16.mxu1 %v3099_v40 }
 0x608   :  { %2332 = vmatpush1.bf16.msra.mxu1 %v3097_v41 }
 0x609   :  { %2333 = vmatprep.subr.bf16.mxu1 %v3102_v42 }
 0x60c   :  { %2334 = vmatpush1.bf16.msra.mxu1 %v3100_v43 }
 0x6a2   :  { %v1815_v23 = vpop.f32.mrb[12].mxu1 }
 0x6a3   :  { %v1836_v24 = vadd.f32 %v1829_v19, %v1815_v23  ;;  %v1817_v25 = vpop.f32.mrb[13].mxu1 }
 0x6a4   :  { %v1837_v26 = vadd.f32 %v1833_v21, %v1817_v25  ;;  %v1819_v27 = vpop.f32.mrb[14].mxu1 }
 0x6a5   :  { %v1838_v28 = vadd.f32 %v1829_v19, %v1819_v27  ;;  %v1821_v29 = vpop.f32.mrb[15].mxu1  ;;  %v1840_v33 = vmax.f32 %v1836_v24, 0.0 }
 0x6a6   :  { %v1839_v30 = vadd.f32 %v1833_v21, %v1821_v29  ;;  %v1841_v35 = vmax.f32 %v1837_v26, 0.0 }
 0x6a7   :  { %v1842_v34 = vmax.f32 %v1838_v28, 0.0 }
 0x6a8   :  { %v1843_v37 = vmax.f32 %v1839_v30, 0.0 }
 0x6a9   :  { %v1844_v38 = vpack.c.bf16 %v1842_v34, %v1840_v33 }
 0x6aa   :  { %v1845_v39 = vpack.c.bf16 %v1843_v37, %v1841_v35 }
 0x6ac   :  { %2082 = vmatprep.mubr.bf16.mxu0 %v1845_v39 }
 0x6ad   :  { %2083 = vmatmul.mubr.bf16.vlgmr.msra.gmra.mrb[12].mxu0 %v1844_v38 }
 0x780   :  { %v2084_v47 = vpop.f32.mrb[12].mxu0 }
 0x781   :  { %v2085_v48 = vadd.f32 %v2084_v47, %v1883_v45  ;;  %v2086_v49 = vpop.f32.mrb[13].mxu0 }
 0x782   :  { %v2087_v50 = vadd.f32 %v2086_v49, %v1887_v46  ;;  %v2088_v51 = vpop.f32.mrb[14].mxu0 }
 0x783   :  { %v2089_v52 = vadd.f32 %v2088_v51, %v1883_v45  ;;  %v2090_v53 = vpop.f32.mrb[15].mxu0  ;;  %v2093_v55 = vmax.f32 %v2085_v48, 0.0 }
 0x784   :  { %v2091_v54 = vadd.f32 %v2090_v53, %v1887_v46  ;;  %v2094_v57 = vmax.f32 %v2087_v50, 0.0 }
 0x785   :  { %v2095_v56 = vmax.f32 %v2089_v52, 0.0 }
 0x786   :  { %v2096_v58 = vmax.f32 %v2091_v54, 0.0 }
 0x787   :  { %v2097_v59 = vpack.c.bf16 %v2095_v56, %v2093_v55 }
 0x788   :  { %v2098_v60 = vpack.c.bf16 %v2096_v58, %v2094_v57 }
 0x78a   :  { %2335 = vmatprep.mubr.bf16.mxu1 %v2098_v60 }
 0x78b   :  { %2336 = vmatmul.mubr.bf16.vlgmr.msra.gmra.mrb[16].mxu1 %v2097_v59 }
 0x78c   :  { %3442 = shalt.err (!%p3439_p4)
}
 0x78d   :  { %s3443_s28 = scalar_lea.hbm %s4050_s24, 256 }
 0x78e   :  { %p3444_p5 = scmp.ne.s32.totalorder %s4050_s24, %s3443_s28  ;;  %p3447_p6 = scmp.lt.u32.totalorder %s3443_s28, %s4050_s24 }
 0x790   :  { %p3449_p7 = pnand %p3447_p6, %p3444_p5 }
 0x792   :  { %3452 = shalt.err (!%p3449_p7)
}
 0x793   :  { %2405 = dma.vmem_to_hbm [thread:$0]  %s2400_s8, 256, %s4050_s24, [#allocation27], %s3523_s26, %s3523_s26, %s3524_s2  }
 0x794   :  { %s3539_s0 = smov [#allocation28]  }
 0x795   :  { %s2411_s6 = sshll.u32 %s3539_s0, 4  ;;  %s2412_s6 = int_to_ptr.vmem [resolvable:$true] %s2411_s6 }
 0x796   :  { %s3453_s30 = scalar_lea.vmem %s2412_s6, 256  ;;  %p3458_p9 = scmp.lt.s32.totalorder %s2412_s6, %s2412_s6 }
 0x797   :  { %p3454_p8 = scmp.ne.s32.totalorder %s2412_s6, %s3453_s30  ;;  %p3459_p10 = scmp.lt.s32.totalorder %s3453_s30, %s3453_s30 }
 0x799   :  { %p3460_p11 = por %p3459_p10, %p3458_p9 }
 0x79b   :  { %p3461_p12 = pnand %p3460_p11, %p3454_p8 }
 0x79d   :  { %3464 = shalt.err (!%p3461_p12)
}
 0x79e   :  { %s4084_s17 = sld [smem:[#allocation51_spill]] }
 0x7a4   :  { %s3465_s25 = scalar_lea.hbm %s4084_s17, 256 }
 0x7a5   :  { %p3466_p13 = scmp.ne.s32.totalorder %s4084_s17, %s3465_s25  ;;  %p3469_p0 = scmp.lt.u32.totalorder %s3465_s25, %s4084_s17 }
 0x7a7   :  { %p3471_p1 = pnand %p3469_p0, %p3466_p13 }
 0x7a9   :  { %3474 = shalt.err (!%p3471_p1)
}
 0x7aa   :  { %2417 = dma.vmem_to_hbm [thread:$0]  %s2412_s6, 256, %s4084_s17, [#allocation27], %s3523_s26, %s3523_s26, %s3524_s2  }
 0x7ab   :  { %s4085_s18 = sld [smem:[#allocation49_spill]]  ;;  %s3540_s26 = smov [#allocation25]  }
 0x7ac   :  { %s2387_s2 = sshll.u32 %s3540_s26, 4  ;;  %s2388_s2 = int_to_ptr.vmem [resolvable:$true] %s2387_s2 }
 0x7ad   :  { %s3475_s3 = scalar_lea.vmem %s2388_s2, 512  ;;  %p3480_p3 = scmp.lt.s32.totalorder %s2388_s2, %s2388_s2 }
 0x7ae   :  { %p3476_p2 = scmp.ne.s32.totalorder %s2388_s2, %s3475_s3  ;;  %p3481_p4 = scmp.lt.s32.totalorder %s3475_s3, %s3475_s3 }
 0x7b0   :  { %p3482_p5 = por %p3481_p4, %p3480_p3 }
 0x7b1   :  { %v2131_v61 = vld [vmem:[%s4085_s18] sm:$0x3] }
 0x7b2   :  { %v2136_v62 = vrot.slane %v2131_v61, %v3927_v20  ;;  %v2140_v63 = vrot.slane %v2131_v61, %v3932_v22  ;;  %p3483_p6 = pnand %p3482_p5, %p3476_p2 }
 0x85e   :  { %v2337_v1 = vpop.f32.mrb[16].mxu1 }
 0x85f   :  { %v2338_v2 = vadd.f32 %v2337_v1, %v2136_v62  ;;  %v2339_v3 = vpop.f32.mrb[17].mxu1 }
 0x860   :  { %v2340_v4 = vadd.f32 %v2339_v3, %v2140_v63  ;;  %v2341_v5 = vpop.f32.mrb[18].mxu1 }
 0x861   :  { %v2674_v6 = vclamps-f32 %v2338_v2, 30.0  ;;  %v2342_v7 = vadd.f32 %v2341_v5, %v2136_v62  ;;  %v2343_v8 = vpop.f32.mrb[19].mxu1 }
 0x862   :  { %v2675_v9 = vclamps-f32 %v2340_v4, 30.0  ;;  %v2344_v10 = vadd.f32 %v2343_v8, %v2140_v63 }
 0x863   :  { %v2354_v31 = vsub.f32 0.0, %v2674_v6  ;;  %v2676_v32 = vclamps-f32 %v2342_v7, 30.0 }
 0x864   :  { %v2355_v0 = vsub.f32 0.0, %v2675_v9  ;;  %v2677_v36 = vclamps-f32 %v2344_v10, 30.0 }
 0x865   :  { %v2358_v11 = vmul.f32 1.442695, %v2354_v31  ;;  %v2356_v12 = vsub.f32 0.0, %v2676_v32 }
 0x866   :  { %v2360_v13 = vmul.f32 1.442695, %v2355_v0  ;;  %v2357_v20 = vsub.f32 0.0, %v2677_v36 }
 0x867   :  { %3107 = vpow2.f32 %v2358_v11  ;;  %v2362_v22 = vmul.f32 1.442695, %v2356_v12 }
 0x868   :  { %3109 = vpow2.f32 %v2360_v13  ;;  %v2364_v14 = vmul.f32 1.442695, %v2357_v20 }
 0x869   :  { %3111 = vpow2.f32 %v2362_v22 }
 0x86a   :  { %3113 = vpow2.f32 %v2364_v14 }
 0x871   :  { %v3108_v15 = vpop.eup %3107 }
 0x872   :  { %v3110_v16 = vpop.eup %3109  ;;  %v2366_v17 = vadd.f32 1.0, %v3108_v15 }
 0x873   :  { %v3112_v18 = vpop.eup %3111  ;;  %v2367_v19 = vadd.f32 1.0, %v3110_v16 }
 0x874   :  { %v3114_v21 = vpop.eup %3113  ;;  %3115 = vrcp.f32 %v2366_v17  ;;  %v2368_v23 = vadd.f32 1.0, %v3112_v18 }
 0x875   :  { %3117 = vrcp.f32 %v2367_v19  ;;  %v2369_v24 = vadd.f32 1.0, %v3114_v21 }
 0x876   :  { %3119 = vrcp.f32 %v2368_v23 }
 0x877   :  { %3121 = vrcp.f32 %v2369_v24 }
 0x87e   :  { %v3116_v25 = vpop.eup %3115 }
 0x87f   :  { %v3118_v26 = vpop.eup %3117  ;;  %2374 = vst [vmem:[#allocation25] sm:$0xff] %v3116_v25 }
 0x880   :  { %v3120_v27 = vpop.eup %3119  ;;  %2375 = vst [vmem:[#allocation25 + $0x8] sm:$0xff] %v3118_v26 }
 0x881   :  { %v3122_v28 = vpop.eup %3121  ;;  %2376 = vst [vmem:[#allocation25 + $0x10] sm:$0xff] %v3120_v27 }
 0x882   :  { %2377 = vst [vmem:[#allocation25 + $0x18] sm:$0xff] %v3122_v28 }
 0x883   :  { %3486 = shalt.err (!%p3483_p6)
}
 0x884   :  { %s4086_s9 = sld [smem:[#allocation50_spill]] }
 0x88a   :  { %s3487_s4 = scalar_lea.hbm %s4086_s9, 512 }
 0x88b   :  { %p3488_p7 = scmp.ne.s32.totalorder %s4086_s9, %s3487_s4  ;;  %p3491_p8 = scmp.lt.u32.totalorder %s3487_s4, %s4086_s9 }
 0x88d   :  { %p3493_p9 = pnand %p3491_p8, %p3488_p7 }
 0x88f   :  { %3496 = shalt.err (!%p3493_p9)
}
 0x890   :  { %s3541_s10 = smov 256   ;;  %s3542_s21 = smov 16  }
 0x891   :  { %2393 = dma.vmem_to_hbm [thread:$0]  %s2388_s2, 512, %s4086_s9, [#allocation4], %s3541_s10, %s3541_s10, %s3542_s21  }
 0x892   :  { %3513 = dma.done.wait [#allocation4], 512  }
 0x893   :  { %3514 = vsyncadd [#allocation4], 4294966784 }
 0x894   :  { %3515 = dma.done.wait [#allocation27], 512  }
 0x895   :  { %3516 = vsyncadd [#allocation27], 4294966784 }
 0x896   :  { %2427 = vsyncpa [#allocation3], 1 }
 0x897   :  { %2428 = vsyncpa [#allocation6], 1 }
 0x898   :  { %2429 = vsyncpa [#allocation9], 1 }
 0x899   :  { %2430 = vsyncpa [#allocation12], 1 }
 0x89a   :  { %2431 = vsyncpa [#allocation15], 1 }
 0x89b   :  { %2432 = vsyncpa [#allocation18], 1 }
 0x89c   :  { %2433 = vsyncpa [#allocation21], 1 }
 0x89d   :  { %2434 = vsyncpa [#allocation24], 1 }
 0x89e   :  { %2435 = vsyncpa [#allocation4], 1 }
 0x89f   :  { %2436 = vsyncpa [#allocation27], 1 }

// kernel: tpu_custom_call.1
= control target key start
LH: loop header
LB: loop body
LE: loop exit
PB: predicated region body
PF: predicated region fallthrough
CT: control target
= control target key end

     0   :  { %s4026_s0 = inlined_call_operand.hbm [shape: bf16[16,256], index: 0, kind: input, shape index: {}]   ;;  %s4027_s1 = inlined_call_operand.hbm [shape: bf16[16,128], index: 1, kind: input, shape index: {}]   ;;  %s4028_s2 = inlined_call_operand.hbm [shape: f32[16,128], index: 2, kind: input, shape index: {}]   ;;  %s4029_s3 = inlined_call_operand.hbm [shape: bf16[256,128], index: 3, kind: input, shape index: {}]   ;;  %s4030_s4 = inlined_call_operand.vmem [shape: f32[1,128], index: 4, kind: input, shape index: {}]   ;;  %s4031_s5 = inlined_call_operand.hbm [shape: bf16[128,256], index: 5, kind: input, shape index: {}]   ;;  %s4032_s6 = inlined_call_operand.vmem [shape: f32[1,256], index: 6, kind: input, shape index: {}]   ;;  %s4033_s7 = inlined_call_operand.hbm [shape: bf16[128,256], index: 7, kind: input, shape index: {}]   ;;  %s4034_s8 = inlined_call_operand.hbm [shape: bf16[128,256], index: 8, kind: input, shape index: {}]   ;;  %s4035_s9 = inlined_call_operand.vmem [shape: f32[1,256], index: 9, kind: input, shape index: {}]   ;;  %s4036_s10 = inlined_call_operand.hbm [shape: bf16[256,256], index: 10, kind: input, shape index: {}]   ;;  %s4037_s11 = inlined_call_operand.vmem [shape: f32[1,256], index: 11, kind: input, shape index: {}]   ;;  %s4038_s12 = inlined_call_operand.hbm [shape: bf16[256,256], index: 12, kind: input, shape index: {}]   ;;  %s4039_s13 = inlined_call_operand.vmem [shape: f32[1,256], index: 13, kind: input, shape index: {}]   ;;  %s4040_s14 = inlined_call_operand.hbm [shape: bf16[128,128], index: 14, kind: input, shape index: {}]   ;;  %s4041_s15 = inlined_call_operand.vmem [shape: f32[1,128], index: 15, kind: input, shape index: {}]   ;;  %s4042_s16 = inlined_call_operand.hbm [shape: bf16[128,256], index: 16, kind: input, shape index: {}]   ;;  %s4043_s17 = inlined_call_operand.hbm [shape: bf16[128,256], index: 17, kind: input, shape index: {}]   ;;  %s4044_s18 = inlined_call_operand.vmem [shape: f32[1,256], index: 18, kind: input, shape index: {}]   ;;  %s4045_s19 = inlined_call_operand.hbm [shape: bf16[256,256], index: 19, kind: input, shape index: {}]   ;;  %s4046_s20 = inlined_call_operand.vmem [shape: f32[1,256], index: 20, kind: input, shape index: {}]   ;;  %s4047_s21 = inlined_call_operand.hbm [shape: bf16[256,256], index: 21, kind: input, shape index: {}]   ;;  %s4048_s22 = inlined_call_operand.vmem [shape: f32[1,256], index: 22, kind: input, shape index: {}]   ;;  %s4049_s23 = inlined_call_operand.hbm [shape: f32[16,256], index: 23, kind: output, shape index: {0}]   ;;  %s4050_s24 = inlined_call_operand.hbm [shape: f32[16,128], index: 24, kind: output, shape index: {1}]   ;;  %s4051_s25 = inlined_call_operand.hbm [shape: f32[16,128], index: 25, kind: output, shape index: {2}]  }
   0x1   :  { %4061 = sst [smem:[#allocation39_spill]] %s4026_s0 }
   0x2   :  { %4062 = sst [smem:[#allocation40_spill]] %s4027_s1 }
   0x3   :  { %4063 = sst [smem:[#allocation41_spill]] %s4028_s2 }
   0x4   :  { %4064 = sst [smem:[#allocation42_spill]] %s4029_s3 }
   0x5   :  { %4065 = sst [smem:[#allocation43_spill]] %s4030_s4 }
   0x6   :  { %4066 = sst [smem:[#allocation44_spill]] %s4031_s5 }
   0x7   :  { %4067 = sst [smem:[#allocation45_spill]] %s4032_s6 }
   0x8   :  { %4068 = sst [smem:[#allocation46_spill]] %s4033_s7 }
   0x9   :  { %4069 = sst [smem:[#allocation47_spill]] %s4034_s8 }
   0xa   :  { %4070 = sst [smem:[#allocation48_spill]] %s4035_s9 }
   0xb   :  { %4071 = sst [smem:[#allocation49_spill]] %s4048_s22 }
   0xc   :  { %4072 = sst [smem:[#allocation50_spill]] %s4049_s23 }
   0xd   :  { %4073 = sst [smem:[#allocation51_spill]] %s4051_s25 }
   0xe   :  { %31 = vsyncpa [#allocation3], 0 }
   0xf   :  { %32 = vsyncpa [#allocation6], 0 }
  0x10   :  { %33 = vsyncpa [#allocation9], 0 }
  0x11   :  { %34 = vsyncpa [#allocation12], 0 }
  0x12   :  { %35 = vsyncpa [#allocation15], 0 }
  0x13   :  { %36 = vsyncpa [#allocation18], 0 }
  0x14   :  { %37 = vsyncpa [#allocation21], 0 }
  0x15   :  { %38 = vsyncpa [#allocation24], 0 }
  0x16   :  { %39 = vsyncpa [#allocation4], 0 }
  0x17   :  { %40 = vsyncpa [#allocation27], 0  ;;  %s3517_s29 = smov [#allocation5]   ;;  %s4074_s7 = sld [smem:[#allocation40_spill]] }
  0x18   :  { %s58_s2 = sshll.u32 %s3517_s29, 4  ;;  %s59_s2 = int_to_ptr.vmem [resolvable:$true] %s58_s2 }
  0x1d   :  { %s3123_s3 = scalar_lea.hbm %s4074_s7, 128 }
  0x1e   :  { %p3124_p0 = scmp.ne.s32.totalorder %s4074_s7, %s3123_s3  ;;  %p3127_p1 = scmp.lt.u32.totalorder %s3123_s3, %s4074_s7 }
  0x20   :  { %p3129_p2 = pnand %p3127_p1, %p3124_p0 }
  0x22   :  { %3132 = shalt.err (!%p3129_p2)
}
  0x23   :  { %s3133_s4 = scalar_lea.vmem %s59_s2, 128  ;;  %p3138_p4 = scmp.lt.s32.totalorder %s59_s2, %s59_s2 }
  0x24   :  { %p3134_p3 = scmp.ne.s32.totalorder %s59_s2, %s3133_s4  ;;  %p3139_p5 = scmp.lt.s32.totalorder %s3133_s4, %s3133_s4 }
  0x26   :  { %p3140_p6 = por %p3139_p5, %p3138_p4 }
  0x28   :  { %p3141_p7 = pnand %p3140_p6, %p3134_p3 }
  0x2a   :  { %3144 = shalt.err (!%p3141_p7)
}
  0x2b   :  { %s3518_s28 = smov 64   ;;  %s3519_s9 = smov 4  }
  0x2c   :  { %64 = dma.hbm_to_vmem [thread:$0]  %s4074_s7, 128, %s59_s2, [#allocation6], %s3518_s28, %s3518_s28, %s3519_s9  }
  0x2d   :  { %s3520_s29 = smov [#allocation8]   ;;  %s4075_s26 = sld [smem:[#allocation42_spill]] }
  0x2e   :  { %s82_s6 = sshll.u32 %s3520_s29, 4  ;;  %s83_s6 = int_to_ptr.vmem [resolvable:$true] %s82_s6 }
  0x33   :  { %s3145_s1 = scalar_lea.hbm %s4075_s26, 2048 }
  0x34   :  { %p3146_p8 = scmp.ne.s32.totalorder %s4075_s26, %s3145_s1  ;;  %p3149_p9 = scmp.lt.u32.totalorder %s3145_s1, %s4075_s26 }
  0x36   :  { %p3151_p10 = pnand %p3149_p9, %p3146_p8 }
  0x38   :  { %3154 = shalt.err (!%p3151_p10)
}
  0x39   :  { %s3155_s22 = scalar_lea.vmem %s83_s6, 2048  ;;  %p3160_p12 = scmp.lt.s32.totalorder %s83_s6, %s83_s6 }
  0x3a   :  { %p3156_p11 = scmp.ne.s32.totalorder %s83_s6, %s3155_s22  ;;  %p3161_p13 = scmp.lt.s32.totalorder %s3155_s22, %s3155_s22 }
  0x3c   :  { %p3162_p0 = por %p3161_p13, %p3160_p12 }
  0x3e   :  { %p3163_p1 = pnand %p3162_p0, %p3156_p11 }
  0x40   :  { %3166 = shalt.err (!%p3163_p1)
}
  0x41   :  { %88 = dma.hbm_to_vmem [thread:$0]  %s4075_s26, 2048, %s83_s6, [#allocation9], %s3518_s28, %s3518_s28, %s3519_s9  }
  0x42   :  { %s3521_s5 = smov [#allocation11]   ;;  %s3522_s23 = smov [#allocation14]  }
  0x43   :  { %s110_s0 = sshll.u32 %s3521_s5, 4  ;;  %s136_s29 = sshll.u32 %s3522_s23, 4  ;;  %s111_s0 = int_to_ptr.vmem [resolvable:$true] %s110_s0  ;;  %s3703_s29 = int_to_ptr.vmem [resolvable:$true] %s136_s29 }
  0x44   :  { %s4076_s22 = sld [smem:[#allocation46_spill]] }
  0x4a   :  { %s3167_s1 = scalar_lea.hbm %s4076_s22, 2048 }
  0x4b   :  { %p3168_p2 = scmp.ne.s32.totalorder %s4076_s22, %s3167_s1  ;;  %p3171_p3 = scmp.lt.u32.totalorder %s3167_s1, %s4076_s22 }
  0x4d   :  { %p3173_p4 = pnand %p3171_p3, %p3168_p2 }
  0x4f   :  { %3176 = shalt.err (!%p3173_p4)
}
  0x50   :  { %s3177_s6 = scalar_lea.vmem %s111_s0, 2048  ;;  %p3182_p6 = scmp.lt.s32.totalorder %s111_s0, %s111_s0 }
  0x51   :  { %p3178_p5 = scmp.ne.s32.totalorder %s111_s0, %s3177_s6  ;;  %p3183_p7 = scmp.lt.s32.totalorder %s3177_s6, %s3177_s6 }
  0x53   :  { %p3184_p8 = por %p3183_p7, %p3182_p6 }
  0x55   :  { %p3185_p9 = pnand %p3184_p8, %p3178_p5 }
  0x57   :  { %3188 = shalt.err (!%p3185_p9)
}
  0x58   :  { %s3523_s26 = smov 128   ;;  %s3524_s2 = smov 8  }
  0x59   :  { %116 = dma.hbm_to_vmem [thread:$0]  %s4076_s22, 2048, %s111_s0, [#allocation12], %s3523_s26, %s3523_s26, %s3524_s2  }
  0x5a   :  { %s3189_s30 = scalar_lea.hbm %s4036_s10, 4096 }
  0x5b   :  { %p3190_p10 = scmp.ne.s32.totalorder %s4036_s10, %s3189_s30  ;;  %p3193_p11 = scmp.lt.u32.totalorder %s3189_s30, %s4036_s10 }
  0x5d   :  { %p3195_p12 = pnand %p3193_p11, %p3190_p10 }
  0x5f   :  { %3198 = shalt.err (!%p3195_p12)
}
  0x60   :  { %s3199_s4 = scalar_lea.vmem %s3703_s29, 4096  ;;  %p3204_p0 = scmp.lt.s32.totalorder %s3703_s29, %s3703_s29 }
  0x61   :  { %p3200_p13 = scmp.ne.s32.totalorder %s3703_s29, %s3199_s4  ;;  %p3205_p1 = scmp.lt.s32.totalorder %s3199_s4, %s3199_s4 }
  0x63   :  { %p3206_p2 = por %p3205_p1, %p3204_p0 }
  0x65   :  { %p3207_p3 = pnand %p3206_p2, %p3200_p13 }
  0x67   :  { %3210 = shalt.err (!%p3207_p3)
}
  0x68   :  { %142 = dma.hbm_to_vmem [thread:$0]  %s4036_s10, 4096, %s3703_s29, [#allocation15], %s3523_s26, %s3523_s26, %s3524_s2  }
  0x69   :  { %s3525_s6 = smov [#allocation17]   ;;  %s3526_s5 = smov [#allocation20]  }
  0x6a   :  { %s164_s7 = sshll.u32 %s3525_s6, 4  ;;  %s190_s25 = sshll.u32 %s3526_s5, 4  ;;  %s165_s7 = int_to_ptr.vmem [resolvable:$true] %s164_s7  ;;  %s3740_s25 = int_to_ptr.vmem [resolvable:$true] %s190_s25 }
  0x6b   :  { %s3211_s3 = scalar_lea.hbm %s4040_s14, 1024 }
  0x6c   :  { %p3212_p4 = scmp.ne.s32.totalorder %s4040_s14, %s3211_s3  ;;  %p3215_p5 = scmp.lt.u32.totalorder %s3211_s3, %s4040_s14 }
  0x6e   :  { %p3217_p6 = pnand %p3215_p5, %p3212_p4 }
  0x70   :  { %3220 = shalt.err (!%p3217_p6)
}
  0x71   :  { %s3221_s10 = scalar_lea.vmem %s165_s7, 1024  ;;  %p3226_p8 = scmp.lt.s32.totalorder %s165_s7, %s165_s7 }
  0x72   :  { %p3222_p7 = scmp.ne.s32.totalorder %s165_s7, %s3221_s10  ;;  %p3227_p9 = scmp.lt.s32.totalorder %s3221_s10, %s3221_s10 }
  0x74   :  { %p3228_p10 = por %p3227_p9, %p3226_p8 }
  0x76   :  { %p3229_p11 = pnand %p3228_p10, %p3222_p7 }
  0x78   :  { %3232 = shalt.err (!%p3229_p11)
}
  0x79   :  { %170 = dma.hbm_to_vmem [thread:$0]  %s4040_s14, 1024, %s165_s7, [#allocation18], %s3518_s28, %s3518_s28, %s3519_s9  }
  0x7a   :  { %s3233_s5 = scalar_lea.hbm %s4043_s17, 2048 }
  0x7b   :  { %p3234_p12 = scmp.ne.s32.totalorder %s4043_s17, %s3233_s5  ;;  %p3237_p13 = scmp.lt.u32.totalorder %s3233_s5, %s4043_s17 }
  0x7d   :  { %p3239_p0 = pnand %p3237_p13, %p3234_p12 }
  0x7f   :  { %3242 = shalt.err (!%p3239_p0)
}
  0x80   :  { %s3243_s8 = scalar_lea.vmem %s3740_s25, 2048  ;;  %p3248_p2 = scmp.lt.s32.totalorder %s3740_s25, %s3740_s25 }
  0x81   :  { %p3244_p1 = scmp.ne.s32.totalorder %s3740_s25, %s3243_s8  ;;  %p3249_p3 = scmp.lt.s32.totalorder %s3243_s8, %s3243_s8 }
  0x83   :  { %p3250_p4 = por %p3249_p3, %p3248_p2 }
  0x85   :  { %p3251_p5 = pnand %p3250_p4, %p3244_p1 }
  0x87   :  { %3254 = shalt.err (!%p3251_p5)
}
  0x88   :  { %196 = dma.hbm_to_vmem [thread:$0]  %s4043_s17, 2048, %s3740_s25, [#allocation21], %s3523_s26, %s3523_s26, %s3524_s2  }
  0x89   :  { %s3527_s9 = smov [#allocation2]   ;;  %s3528_s27 = smov [#allocation7]  }
  0x8a   :  { %s46_s7 = sshll.u32 %s3527_s9, 4  ;;  %s70_s4 = sshll.u32 %s3528_s27, 4  ;;  %s47_s7 = int_to_ptr.vmem [resolvable:$true] %s46_s7  ;;  %s3777_s4 = int_to_ptr.vmem [resolvable:$true] %s70_s4 }
  0x8b   :  { %s4077_s0 = sld [smem:[#allocation39_spill]] }
  0x91   :  { %s3255_s22 = scalar_lea.hbm %s4077_s0, 256 }
  0x92   :  { %p3256_p6 = scmp.ne.s32.totalorder %s4077_s0, %s3255_s22  ;;  %p3259_p7 = scmp.lt.u32.totalorder %s3255_s22, %s4077_s0 }
  0x94   :  { %p3261_p8 = pnand %p3259_p7, %p3256_p6 }
  0x96   :  { %3264 = shalt.err (!%p3261_p8)
}
  0x97   :  { %s3265_s17 = scalar_lea.vmem %s47_s7, 256  ;;  %p3270_p10 = scmp.lt.s32.totalorder %s47_s7, %s47_s7 }
  0x98   :  { %p3266_p9 = scmp.ne.s32.totalorder %s47_s7, %s3265_s17  ;;  %p3271_p11 = scmp.lt.s32.totalorder %s3265_s17, %s3265_s17 }
  0x9a   :  { %p3272_p12 = por %p3271_p11, %p3270_p10 }
  0x9c   :  { %p3273_p13 = pnand %p3272_p12, %p3266_p9 }
  0x9e   :  { %3276 = shalt.err (!%p3273_p13)
}
  0x9f   :  { %52 = dma.hbm_to_vmem [thread:$0]  %s4077_s0, 256, %s47_s7, [#allocation3], %s3523_s26, %s3523_s26, %s3524_s2  }
  0xa0   :  { %s4078_s14 = sld [smem:[#allocation41_spill]] }
  0xa6   :  { %s3277_s28 = scalar_lea.hbm %s4078_s14, 256 }
  0xa7   :  { %p3278_p0 = scmp.ne.s32.totalorder %s4078_s14, %s3277_s28  ;;  %p3281_p1 = scmp.lt.u32.totalorder %s3277_s28, %s4078_s14 }
  0xa9   :  { %p3283_p2 = pnand %p3281_p1, %p3278_p0 }
  0xab   :  { %3286 = shalt.err (!%p3283_p2)
}
  0xac   :  { %s3287_s22 = scalar_lea.vmem %s3777_s4, 256  ;;  %p3292_p4 = scmp.lt.s32.totalorder %s3777_s4, %s3777_s4 }
  0xad   :  { %p3288_p3 = scmp.ne.s32.totalorder %s3777_s4, %s3287_s22  ;;  %p3293_p5 = scmp.lt.s32.totalorder %s3287_s22, %s3287_s22 }
  0xaf   :  { %p3294_p6 = por %p3293_p5, %p3292_p4 }
  0xb1   :  { %p3295_p7 = pnand %p3294_p6, %p3288_p3 }
  0xb3   :  { %3298 = shalt.err (!%p3295_p7)
}
  0xb4   :  { %76 = dma.hbm_to_vmem [thread:$0]  %s4078_s14, 256, %s3777_s4, [#allocation6], %s3523_s26, %s3523_s26, %s3524_s2  }
  0xb5   :  { %s3529_s6 = smov [#allocation10]   ;;  %s3530_s23 = smov [#allocation13]  }
  0xb6   :  { %s96_s5 = sshll.u32 %s3529_s6, 4  ;;  %s122_s30 = sshll.u32 %s3530_s23, 4  ;;  %s97_s5 = int_to_ptr.vmem [resolvable:$true] %s96_s5  ;;  %s3814_s30 = int_to_ptr.vmem [resolvable:$true] %s122_s30 }
  0xb7   :  { %s4079_s3 = sld [smem:[#allocation44_spill]] }
  0xbd   :  { %s3299_s1 = scalar_lea.hbm %s4079_s3, 2048 }
  0xbe   :  { %p3300_p8 = scmp.ne.s32.totalorder %s4079_s3, %s3299_s1  ;;  %p3303_p9 = scmp.lt.u32.totalorder %s3299_s1, %s4079_s3 }
  0xc0   :  { %p3305_p10 = pnand %p3303_p9, %p3300_p8 }
  0xc2   :  { %3308 = shalt.err (!%p3305_p10)
}
  0xc3   :  { %s3309_s4 = scalar_lea.vmem %s97_s5, 2048  ;;  %p3314_p12 = scmp.lt.s32.totalorder %s97_s5, %s97_s5 }
  0xc4   :  { %p3310_p11 = scmp.ne.s32.totalorder %s97_s5, %s3309_s4  ;;  %p3315_p13 = scmp.lt.s32.totalorder %s3309_s4, %s3309_s4 }
  0xc6   :  { %p3316_p0 = por %p3315_p13, %p3314_p12 }
  0xc8   :  { %p3317_p1 = pnand %p3316_p0, %p3310_p11 }
  0xca   :  { %3320 = shalt.err (!%p3317_p1)
}
  0xcb   :  { %102 = dma.hbm_to_vmem [thread:$0]  %s4079_s3, 2048, %s97_s5, [#allocation9], %s3523_s26, %s3523_s26, %s3524_s2  }
  0xcc   :  { %s4080_s7 = sld [smem:[#allocation47_spill]] }
  0xd2   :  { %s3321_s0 = scalar_lea.hbm %s4080_s7, 2048 }
  0xd3   :  { %p3322_p2 = scmp.ne.s32.totalorder %s4080_s7, %s3321_s0  ;;  %p3325_p3 = scmp.lt.u32.totalorder %s3321_s0, %s4080_s7 }
  0xd5   :  { %p3327_p4 = pnand %p3325_p3, %p3322_p2 }
  0xd7   :  { %3330 = shalt.err (!%p3327_p4)
}
  0xd8   :  { %s3331_s1 = scalar_lea.vmem %s3814_s30, 2048  ;;  %p3336_p6 = scmp.lt.s32.totalorder %s3814_s30, %s3814_s30 }
  0xd9   :  { %p3332_p5 = scmp.ne.s32.totalorder %s3814_s30, %s3331_s1  ;;  %p3337_p7 = scmp.lt.s32.totalorder %s3331_s1, %s3331_s1 }
  0xdb   :  { %p3338_p8 = por %p3337_p7, %p3336_p6 }
  0xdd   :  { %p3339_p9 = pnand %p3338_p8, %p3332_p5 }
  0xdf   :  { %3342 = shalt.err (!%p3339_p9)
}
  0xe0   :  { %128 = dma.hbm_to_vmem [thread:$0]  %s4080_s7, 2048, %s3814_s30, [#allocation12], %s3523_s26, %s3523_s26, %s3524_s2  }
  0xe1   :  { %s3531_s8 = smov [#allocation16]   ;;  %s3532_s9 = smov [#allocation19]  }
  0xe2   :  { %s150_s28 = sshll.u32 %s3531_s8, 4  ;;  %s178_s27 = sshll.u32 %s3532_s9, 4  ;;  %s151_s28 = int_to_ptr.vmem [resolvable:$true] %s150_s28  ;;  %s3851_s27 = int_to_ptr.vmem [resolvable:$true] %s178_s27 }
  0xe3   :  { %s3343_s10 = scalar_lea.hbm %s4038_s12, 4096 }
  0xe4   :  { %p3344_p10 = scmp.ne.s32.totalorder %s4038_s12, %s3343_s10  ;;  %p3347_p11 = scmp.lt.u32.totalorder %s3343_s10, %s4038_s12 }
  0xe6   :  { %p3349_p12 = pnand %p3347_p11, %p3344_p10 }
  0xe8   :  { %3352 = shalt.err (!%p3349_p12)
}
  0xe9   :  { %s3353_s30 = scalar_lea.vmem %s151_s28, 4096  ;;  %p3358_p0 = scmp.lt.s32.totalorder %s151_s28, %s151_s28 }
  0xea   :  { %p3354_p13 = scmp.ne.s32.totalorder %s151_s28, %s3353_s30  ;;  %p3359_p1 = scmp.lt.s32.totalorder %s3353_s30, %s3353_s30 }
  0xec   :  { %p3360_p2 = por %p3359_p1, %p3358_p0 }
  0xee   :  { %p3361_p3 = pnand %p3360_p2, %p3354_p13 }
  0xf0   :  { %3364 = shalt.err (!%p3361_p3)
}
  0xf1   :  { %156 = dma.hbm_to_vmem [thread:$0]  %s4038_s12, 4096, %s151_s28, [#allocation15], %s3523_s26, %s3523_s26, %s3524_s2  }
  0xf2   :  { %s3365_s1 = scalar_lea.hbm %s4042_s16, 2048 }
  0xf3   :  { %p3366_p4 = scmp.ne.s32.totalorder %s4042_s16, %s3365_s1  ;;  %p3369_p5 = scmp.lt.u32.totalorder %s3365_s1, %s4042_s16 }
  0xf5   :  { %p3371_p6 = pnand %p3369_p5, %p3366_p4 }
  0xf7   :  { %3374 = shalt.err (!%p3371_p6)
}
  0xf8   :  { %s3375_s4 = scalar_lea.vmem %s3851_s27, 2048  ;;  %p3380_p8 = scmp.lt.s32.totalorder %s3851_s27, %s3851_s27 }
  0xf9   :  { %p3376_p7 = scmp.ne.s32.totalorder %s3851_s27, %s3375_s4  ;;  %p3381_p9 = scmp.lt.s32.totalorder %s3375_s4, %s3375_s4 }
  0xfb   :  { %p3382_p10 = por %p3381_p9, %p3380_p8 }
  0xfd   :  { %p3383_p11 = pnand %p3382_p10, %p3376_p7 }
  0xff   :  { %3386 = shalt.err (!%p3383_p11)
}
 0x100   :  { %184 = dma.hbm_to_vmem [thread:$0]  %s4042_s16, 2048, %s3851_s27, [#allocation18], %s3523_s26, %s3523_s26, %s3524_s2  }
 0x101   :  { %s3533_s14 = smov [#allocation22]   ;;  %s3534_s29 = smov [#allocation23]  }
 0x102   :  { %s204_s10 = sshll.u32 %s3533_s14, 4  ;;  %s218_s22 = sshll.u32 %s3534_s29, 4  ;;  %s205_s10 = int_to_ptr.vmem [resolvable:$true] %s204_s10  ;;  %s3888_s22 = int_to_ptr.vmem [resolvable:$true] %s218_s22 }
 0x103   :  { %s3387_s30 = scalar_lea.hbm %s4045_s19, 4096 }
 0x104   :  { %p3388_p12 = scmp.ne.s32.totalorder %s4045_s19, %s3387_s30  ;;  %p3391_p13 = scmp.lt.u32.totalorder %s3387_s30, %s4045_s19 }
 0x106   :  { %p3393_p0 = pnand %p3391_p13, %p3388_p12 }
 0x108   :  { %3396 = shalt.err (!%p3393_p0)
}
 0x109   :  { %s3397_s16 = scalar_lea.vmem %s205_s10, 4096  ;;  %p3402_p2 = scmp.lt.s32.totalorder %s205_s10, %s205_s10 }
 0x10a   :  { %p3398_p1 = scmp.ne.s32.totalorder %s205_s10, %s3397_s16  ;;  %p3403_p3 = scmp.lt.s32.totalorder %s3397_s16, %s3397_s16 }
 0x10c   :  { %p3404_p4 = por %p3403_p3, %p3402_p2 }
 0x10e   :  { %p3405_p5 = pnand %p3404_p4, %p3398_p1 }
 0x110   :  { %3408 = shalt.err (!%p3405_p5)
}
 0x111   :  { %210 = dma.hbm_to_vmem [thread:$0]  %s4045_s19, 4096, %s205_s10, [#allocation21], %s3523_s26, %s3523_s26, %s3524_s2  }
 0x112   :  { %s3409_s8 = scalar_lea.hbm %s4047_s21, 4096 }
 0x113   :  { %p3410_p6 = scmp.ne.s32.totalorder %s4047_s21, %s3409_s8  ;;  %p3413_p7 = scmp.lt.u32.totalorder %s3409_s8, %s4047_s21 }
 0x115   :  { %p3415_p8 = pnand %p3413_p7, %p3410_p6 }
 0x117   :  { %3418 = shalt.err (!%p3415_p8)
}
 0x118   :  { %s3419_s14 = scalar_lea.vmem %s3888_s22, 4096  ;;  %p3424_p10 = scmp.lt.s32.totalorder %s3888_s22, %s3888_s22 }
 0x119   :  { %p3420_p9 = scmp.ne.s32.totalorder %s3888_s22, %s3419_s14  ;;  %p3425_p11 = scmp.lt.s32.totalorder %s3419_s14, %s3419_s14 }
 0x11b   :  { %p3426_p12 = por %p3425_p11, %p3424_p10 }
 0x11d   :  { %p3427_p13 = pnand %p3426_p12, %p3420_p9 }
 0x11f   :  { %3430 = shalt.err (!%p3427_p13)
}
 0x120   :  { %224 = dma.hbm_to_vmem [thread:$0]  %s4047_s21, 4096, %s3888_s22, [#allocation24], %s3523_s26, %s3523_s26, %s3524_s2  }
 0x121   :  { %3497 = dma.done.wait [#allocation3], 256  }
 0x122   :  { %3498 = vsyncadd [#allocation3], 4294967040 }
 0x123   :  { %3499 = dma.done.wait [#allocation6], 384  }
 0x124   :  { %3500 = vsyncadd [#allocation6], 4294966912 }
 0x125   :  { %3501 = dma.done.wait [#allocation9], 4096  }
 0x126   :  { %3502 = vsyncadd [#allocation9], 4294963200 }
 0x127   :  { %3503 = dma.done.wait [#allocation12], 4096  }
 0x128   :  { %3504 = vsyncadd [#allocation12], 4294963200 }
 0x129   :  { %3505 = dma.done.wait [#allocation15], 8192  }
 0x12a   :  { %3506 = vsyncadd [#allocation15], 4294959104 }
 0x12b   :  { %3507 = dma.done.wait [#allocation18], 3072  }
 0x12c   :  { %3508 = vsyncadd [#allocation18], 4294964224 }
 0x12d   :  { %3509 = dma.done.wait [#allocation21], 6144  }
 0x12e   :  { %3510 = vsyncadd [#allocation21], 4294961152 }
 0x12f   :  { %3511 = dma.done.wait [#allocation24], 4096  }
 0x130   :  { %3512 = vsyncadd [#allocation24], 4294963200  ;;  %v3535_v0 = vmov 0   ;;  %v2763_v1 = vld [vmem:[#allocation10 + $0x4] ss:$8 sps:$4 sm:$0xff]   ;;  %v2792_v16 = vld [vmem:[#allocation8 + $0x50] sm:$0xff]  }
 0x131   :  { %606 = vmatprep.mubr.bf16.mxu1 %v3535_v0  ;;  %v2765_v2 = vld [vmem:[#allocation10] ss:$8 sps:$4 sm:$0xff]   ;;  %574 = vmatprep.subr.bf16.mxu1 %v2763_v1  ;;  %v2766_v3 = vld [vmem:[#allocation10 + $0x14] ss:$8 sps:$4 sm:$0xff]   ;;  %v2768_v4 = vld [vmem:[#allocation10 + $0x10] ss:$8 sps:$4 sm:$0xff]  }
 0x132   :  { %575 = vmatpush1.bf16.msra.mxu1 %v2765_v2  ;;  %v2769_v5 = vld [vmem:[#allocation10 + $0x24] ss:$8 sps:$4 sm:$0xff]   ;;  %v2771_v6 = vld [vmem:[#allocation10 + $0x20] ss:$8 sps:$4 sm:$0xff]   ;;  %v2772_v7 = vld [vmem:[#allocation10 + $0x34] ss:$8 sps:$4 sm:$0xff]  }
 0x133   :  { %576 = vmatprep.subr.bf16.mxu1 %v2766_v3  ;;  %v2783_v8 = vld [vmem:[#allocation8 + $0x40] sm:$0xff]   ;;  %v2774_v9 = vld [vmem:[#allocation10 + $0x30] ss:$8 sps:$4 sm:$0xff]   ;;  %v2788_v13 = vld [vmem:[#allocation8 + $0x48] sm:$0xff]   ;;  %s4081_s22 = sld [smem:[#allocation45_spill]]  ;;  %s4082_s30 = sld [smem:[#allocation43_spill]] }
 0x134   :  { %2678 = vmatprep.subr.bf16.mxu0 %v2783_v8  ;;  %v2785_v10 = vld [vmem:[#allocation8] sm:$0xff]   ;;  %v2790_v14 = vld [vmem:[#allocation8 + $0x8] sm:$0xff]   ;;  %v2778_v15 = vld [vmem:[#allocation10 + $0x54] ss:$8 sps:$4 sm:$0xff]   ;;  %s4083_s17 = sld [smem:[#allocation48_spill]]  ;;  %vm3537_vm0 = vmmov 0  }
 0x135   :  { %v2775_v11 = vld [vmem:[#allocation10 + $0x44] ss:$8 sps:$4 sm:$0xff]   ;;  %v2777_v12 = vld [vmem:[#allocation10 + $0x40] ss:$8 sps:$4 sm:$0xff]   ;;  %2679 = vmatpush3.bf16.msra.mxu0 %v2785_v10  ;;  %v2793_v17 = vld [vmem:[#allocation8 + $0x10] sm:$0xff]  }
 0x136   :  { %577 = vmatpush1.bf16.msra.mxu1 %v2768_v4  ;;  %2680 = vmatprep.subr.bf16.mxu0 %v2788_v13  ;;  %v2794_v18 = vld [vmem:[#allocation8 + $0x58] sm:$0xff]   ;;  %v2781_v20 = vld [vmem:[#allocation10 + $0x64] ss:$8 sps:$4 sm:$0xff]   ;;  %v2784_v23 = vld [vmem:[#allocation10 + $0x60] ss:$8 sps:$4 sm:$0xff]  }
 0x137   :  { %578 = vmatprep.subr.bf16.mxu1 %v2769_v5  ;;  %v2780_v19 = vld [vmem:[#allocation10 + $0x50] ss:$8 sps:$4 sm:$0xff]   ;;  %v2796_v22 = vld [vmem:[#allocation8 + $0x60] sm:$0xff]   ;;  %v2786_v24 = vld [vmem:[#allocation10 + $0x74] ss:$8 sps:$4 sm:$0xff]  }
 0x138   :  { %v2795_v21 = vld [vmem:[#allocation8 + $0x18] sm:$0xff]   ;;  %v2797_v25 = vld [vmem:[#allocation8 + $0x20] sm:$0xff]   ;;  %v2798_v26 = vld [vmem:[#allocation8 + $0x68] sm:$0xff]  }
 0x139   :  { %2681 = vmatpush3.bf16.msra.mxu0 %v2790_v14  ;;  %v2789_v27 = vld [vmem:[#allocation10 + $0x70] ss:$8 sps:$4 sm:$0xff]   ;;  %v2791_v28 = vld [vmem:[#allocation5] sm:$0xff]   ;;  %v2806_v29 = vld [vmem:[#allocation2 + $0x4] ss:$8 sps:$4 sm:$0xff]  }
 0x13a   :  { %579 = vmatpush1.bf16.msra.mxu1 %v2771_v6  ;;  %2682 = vmatprep.subr.bf16.mxu0 %v2792_v16  ;;  %v2799_v30 = vld [vmem:[#allocation8 + $0x28] sm:$0xff]   ;;  %v2800_v31 = vld [vmem:[#allocation8 + $0x70] sm:$0xff]   ;;  %v2802_v33 = vld [vmem:[#allocation8 + $0x78] sm:$0xff]  }
 0x13b   :  { %580 = vmatprep.subr.bf16.mxu1 %v2772_v7  ;;  %449 = vmatprep.mubr.bf16.mxu0 %v2806_v29  ;;  %v2801_v32 = vld [vmem:[#allocation8 + $0x30] sm:$0xff]   ;;  %v2803_v34 = vld [vmem:[#allocation8 + $0x38] sm:$0xff]   ;;  %v2809_v36 = vld [vmem:[#allocation13 + $0x4] ss:$8 sps:$4 sm:$0xff]  }
 0x13c   :  { %v2804_v35 = vld [vmem:[#allocation2] ss:$8 sps:$4 sm:$0xff]   ;;  %v2812_v38 = vld [vmem:[#allocation13 + $0x14] ss:$8 sps:$4 sm:$0xff]   ;;  %v2815_v40 = vld [vmem:[#allocation13 + $0x24] ss:$8 sps:$4 sm:$0xff]  }
 0x13d   :  { %2683 = vmatpush3.bf16.msra.mxu0 %v2793_v17  ;;  %v2807_v37 = vld [vmem:[#allocation13] ss:$8 sps:$4 sm:$0xff]   ;;  %v2810_v39 = vld [vmem:[#allocation13 + $0x10] ss:$8 sps:$4 sm:$0xff]   ;;  %v2818_v42 = vld [vmem:[#allocation13 + $0x34] ss:$8 sps:$4 sm:$0xff]  }
 0x13e   :  { %581 = vmatpush1.bf16.msra.mxu1 %v2774_v9  ;;  %2684 = vmatprep.subr.bf16.mxu0 %v2794_v18  ;;  %v2813_v41 = vld [vmem:[#allocation13 + $0x20] ss:$8 sps:$4 sm:$0xff]   ;;  %v2816_v43 = vld [vmem:[#allocation13 + $0x30] ss:$8 sps:$4 sm:$0xff]   ;;  %v2821_v44 = vld [vmem:[#allocation13 + $0x44] ss:$8 sps:$4 sm:$0xff]   ;;  %v478_v18 = vlaneseq }
 0x13f   :  { %582 = vmatprep.subr.bf16.mxu1 %v2775_v11  ;;  %v2819_v45 = vld [vmem:[#allocation13 + $0x40] ss:$8 sps:$4 sm:$0xff]   ;;  %v2824_v46 = vld [vmem:[#allocation13 + $0x54] ss:$8 sps:$4 sm:$0xff]   ;;  %v2822_v47 = vld [vmem:[#allocation13 + $0x50] ss:$8 sps:$4 sm:$0xff]  }
 0x140   :  { %v2827_v48 = vld [vmem:[#allocation13 + $0x64] ss:$8 sps:$4 sm:$0xff]   ;;  %v2825_v49 = vld [vmem:[#allocation13 + $0x60] ss:$8 sps:$4 sm:$0xff]   ;;  %v2830_v50 = vld [vmem:[#allocation13 + $0x74] ss:$8 sps:$4 sm:$0xff]  }
 0x141   :  { %2685 = vmatpush3.bf16.msra.mxu0 %v2795_v21  ;;  %v2828_v51 = vld [vmem:[#allocation13 + $0x70] ss:$8 sps:$4 sm:$0xff]   ;;  %v2833_v52 = vld [vmem:[#allocation11 + $0x4] ss:$8 sps:$4 sm:$0xff]   ;;  %v2855_v53 = vld [vmem:[#allocation14] ss:$8 sps:$4 sm:$0xff]  }
 0x142   :  { %583 = vmatpush1.bf16.msra.mxu1 %v2777_v12  ;;  %2686 = vmatprep.subr.bf16.mxu0 %v2796_v22  ;;  %v2857_v54 = vld [vmem:[#allocation14 + $0x4] ss:$8 sps:$4 sm:$0xff]   ;;  %v2860_v55 = vld [vmem:[#allocation14 + $0x14] ss:$8 sps:$4 sm:$0xff]   ;;  %v2858_v56 = vld [vmem:[#allocation14 + $0x10] ss:$8 sps:$4 sm:$0xff]  }
 0x143   :  { %584 = vmatprep.subr.bf16.mxu1 %v2778_v15  ;;  %v2863_v57 = vld [vmem:[#allocation14 + $0x24] ss:$8 sps:$4 sm:$0xff]   ;;  %v2861_v58 = vld [vmem:[#allocation14 + $0x20] ss:$8 sps:$4 sm:$0xff]   ;;  %v2866_v59 = vld [vmem:[#allocation14 + $0x34] ss:$8 sps:$4 sm:$0xff]  }
 0x144   :  { %v2864_v60 = vld [vmem:[#allocation14 + $0x30] ss:$8 sps:$4 sm:$0xff]   ;;  %v2869_v61 = vld [vmem:[#allocation14 + $0x44] ss:$8 sps:$4 sm:$0xff]   ;;  %v2867_v62 = vld [vmem:[#allocation14 + $0x40] ss:$8 sps:$4 sm:$0xff]  }
 0x145   :  { %2687 = vmatpush3.bf16.msra.mxu0 %v2797_v25  ;;  %v2872_v63 = vld [vmem:[#allocation14 + $0x54] ss:$8 sps:$4 sm:$0xff]   ;;  %v2870_v1 = vld [vmem:[#allocation14 + $0x50] ss:$8 sps:$4 sm:$0xff]   ;;  %v2875_v2 = vld [vmem:[#allocation14 + $0x64] ss:$8 sps:$4 sm:$0xff]  }
 0x146   :  { %585 = vmatpush1.bf16.msra.mxu1 %v2780_v19  ;;  %2688 = vmatprep.subr.bf16.mxu0 %v2798_v26  ;;  %v2873_v3 = vld [vmem:[#allocation14 + $0x60] ss:$8 sps:$4 sm:$0xff]   ;;  %v2878_v4 = vld [vmem:[#allocation14 + $0x74] ss:$8 sps:$4 sm:$0xff]   ;;  %v2876_v5 = vld [vmem:[#allocation14 + $0x70] ss:$8 sps:$4 sm:$0xff]  }
 0x147   :  { %586 = vmatprep.subr.bf16.mxu1 %v2781_v20  ;;  %v2881_v6 = vld [vmem:[#allocation14 + $0x84] ss:$8 sps:$4 sm:$0xff]   ;;  %v2879_v7 = vld [vmem:[#allocation14 + $0x80] ss:$8 sps:$4 sm:$0xff]   ;;  %v2884_v8 = vld [vmem:[#allocation14 + $0x94] ss:$8 sps:$4 sm:$0xff]  }
 0x148   :  { %v2882_v9 = vld [vmem:[#allocation14 + $0x90] ss:$8 sps:$4 sm:$0xff]   ;;  %v2887_v10 = vld [vmem:[#allocation14 + $0xa4] ss:$8 sps:$4 sm:$0xff]   ;;  %v2885_v11 = vld [vmem:[#allocation14 + $0xa0] ss:$8 sps:$4 sm:$0xff]  }
 0x149   :  { %2689 = vmatpush3.bf16.msra.mxu0 %v2799_v30  ;;  %v2890_v12 = vld [vmem:[#allocation14 + $0xb4] ss:$8 sps:$4 sm:$0xff]   ;;  %v2888_v13 = vld [vmem:[#allocation14 + $0xb0] ss:$8 sps:$4 sm:$0xff]   ;;  %v2893_v14 = vld [vmem:[#allocation14 + $0xc4] ss:$8 sps:$4 sm:$0xff]  }
 0x14a   :  { %587 = vmatpush1.bf16.msra.mxu1 %v2784_v23  ;;  %2690 = vmatprep.subr.bf16.mxu0 %v2800_v31  ;;  %v2891_v15 = vld [vmem:[#allocation14 + $0xc0] ss:$8 sps:$4 sm:$0xff]   ;;  %v2896_v16 = vld [vmem:[#allocation14 + $0xd4] ss:$8 sps:$4 sm:$0xff]   ;;  %v2894_v17 = vld [vmem:[#allocation14 + $0xd0] ss:$8 sps:$4 sm:$0xff]  }
 0x14b   :  { %588 = vmatprep.subr.bf16.mxu1 %v2786_v24  ;;  %v479_v19 = vshrl.u32 %v478_v18, 7  ;;  %v476_v21 = vld [vmem:[%s4081_s22] sm:$0x3]  ;;  %v2927_v18 = vld [vmem:[#allocation16 + $0x80] ss:$8 sps:$4 sm:$0xff]  }
 0x14d   :  { %2691 = vmatpush3.bf16.msra.mxu0 %v2801_v32  ;;  %v3927_v20 = vsub.s32 0, %v479_v19  ;;  %v3932_v22 = vsub.s32 1, %v479_v19  ;;  %v2932_v19 = vld [vmem:[#allocation16 + $0x94] ss:$8 sps:$4 sm:$0xff]  }
 0x14e   :  { %589 = vmatpush1.bf16.msra.mxu1 %v2789_v27  ;;  %2692 = vmatprep.subr.bf16.mxu0 %v2802_v33  ;;  %v2831_v33 = vld [vmem:[#allocation11] ss:$8 sps:$4 sm:$0xff]  }
 0x14f   :  { %1123 = vmatprep.subr.bf16.mxu1 %v2857_v54  ;;  %v481_v23 = vrot.slane %v476_v21, %v3927_v20  ;;  %v485_v25 = vrot.slane %v476_v21, %v3932_v22  ;;  %v2848_v54 = vld [vmem:[#allocation11 + $0x54] ss:$8 sps:$4 sm:$0xff]   ;;  %v2930_v21 = vld [vmem:[#allocation16 + $0x90] ss:$8 sps:$4 sm:$0xff]  }
 0x151   :  { %607 = vmatmul.mubr.bf16.vlgmr.msra.gmra.mrb[0].mxu1 %v2791_v28  ;;  %2693 = vmatpush3.bf16.msra.mxu0 %v2803_v34 }
 0x152   :  { %731 = vmatprep.subr.bf16.mxu0 %v2809_v36  ;;  %1124 = vmatpush1.bf16.msra.mxu1 %v2855_v53  ;;  %v2843_v53 = vld [vmem:[#allocation11 + $0x40] ss:$8 sps:$4 sm:$0xff]  }
 0x153   :  { %1125 = vmatprep.subr.bf16.mxu1 %v2860_v55  ;;  %v2846_v55 = vld [vmem:[#allocation11 + $0x50] ss:$8 sps:$4 sm:$0xff]  }
 0x154   :  { %450 = vmatmul.mubr.bf16.vlgmr.msra.gmra.mrb[0].mxu0 %v2804_v35  ;;  %v2836_v35 = vld [vmem:[#allocation11 + $0x14] ss:$8 sps:$4 sm:$0xff]  }
 0x155   :  { %732 = vmatpush1.bf16.msra.mxu0 %v2807_v37  ;;  %763 = vmatprep.mubr.bf16.mxu0 %v3535_v0  ;;  %v2834_v37 = vld [vmem:[#allocation11 + $0x10] ss:$8 sps:$4 sm:$0xff]  }
 0x156   :  { %733 = vmatprep.subr.bf16.mxu0 %v2812_v38  ;;  %1126 = vmatpush1.bf16.msra.mxu1 %v2858_v56  ;;  %v2839_v38 = vld [vmem:[#allocation11 + $0x24] ss:$8 sps:$4 sm:$0xff]  }
 0x157   :  { %1127 = vmatprep.subr.bf16.mxu1 %v2863_v57  ;;  %v2851_v56 = vld [vmem:[#allocation11 + $0x64] ss:$8 sps:$4 sm:$0xff]   ;;  %v2849_v57 = vld [vmem:[#allocation11 + $0x60] ss:$8 sps:$4 sm:$0xff]  }
 0x159   :  { %734 = vmatpush1.bf16.msra.mxu0 %v2810_v39 }
 0x15a   :  { %735 = vmatprep.subr.bf16.mxu0 %v2815_v40  ;;  %1128 = vmatpush1.bf16.msra.mxu1 %v2861_v58  ;;  %v2437_v40 = vld [vmem:[%s4082_s30] ss:$0 sm:$0xff]  ;;  %v2854_v58 = vld [vmem:[#allocation11 + $0x74] ss:$8 sps:$4 sm:$0xff]  }
 0x15b   :  { %1129 = vmatprep.subr.bf16.mxu1 %v2866_v59  ;;  %v2852_v59 = vld [vmem:[#allocation11 + $0x70] ss:$8 sps:$4 sm:$0xff]  }
 0x15d   :  { %736 = vmatpush1.bf16.msra.mxu0 %v2813_v41 }
 0x15e   :  { %737 = vmatprep.subr.bf16.mxu0 %v2818_v42  ;;  %1130 = vmatpush1.bf16.msra.mxu1 %v2864_v60  ;;  %v2837_v42 = vld [vmem:[#allocation11 + $0x20] ss:$8 sps:$4 sm:$0xff]   ;;  %v2899_v60 = vld [vmem:[#allocation14 + $0xe4] ss:$8 sps:$4 sm:$0xff]  }
 0x15f   :  { %1131 = vmatprep.subr.bf16.mxu1 %v2869_v61  ;;  %v2897_v61 = vld [vmem:[#allocation14 + $0xe0] ss:$8 sps:$4 sm:$0xff]  }
 0x161   :  { %738 = vmatpush1.bf16.msra.mxu0 %v2816_v43 }
 0x162   :  { %739 = vmatprep.subr.bf16.mxu0 %v2821_v44  ;;  %1132 = vmatpush1.bf16.msra.mxu1 %v2867_v62  ;;  %v2902_v62 = vld [vmem:[#allocation14 + $0xf4] ss:$8 sps:$4 sm:$0xff]  }
 0x163   :  { %1133 = vmatprep.subr.bf16.mxu1 %v2872_v63  ;;  %v2900_v63 = vld [vmem:[#allocation14 + $0xf0] ss:$8 sps:$4 sm:$0xff]  }
 0x165   :  { %740 = vmatpush1.bf16.msra.mxu0 %v2819_v45  ;;  %v2842_v45 = vld [vmem:[#allocation11 + $0x34] ss:$8 sps:$4 sm:$0xff]  }
 0x166   :  { %741 = vmatprep.subr.bf16.mxu0 %v2824_v46  ;;  %1134 = vmatpush1.bf16.msra.mxu1 %v2870_v1  ;;  %v2903_v1 = vld [vmem:[#allocation16] ss:$8 sps:$4 sm:$0xff]  }
 0x167   :  { %1135 = vmatprep.subr.bf16.mxu1 %v2875_v2  ;;  %v2905_v2 = vld [vmem:[#allocation16 + $0x4] ss:$8 sps:$4 sm:$0xff]  }
 0x169   :  { %742 = vmatpush1.bf16.msra.mxu0 %v2822_v47 }
 0x16a   :  { %743 = vmatprep.subr.bf16.mxu0 %v2827_v48  ;;  %1136 = vmatpush1.bf16.msra.mxu1 %v2873_v3  ;;  %v2908_v3 = vld [vmem:[#allocation16 + $0x14] ss:$8 sps:$4 sm:$0xff]  }
 0x16b   :  { %1137 = vmatprep.subr.bf16.mxu1 %v2878_v4  ;;  %v2906_v4 = vld [vmem:[#allocation16 + $0x10] ss:$8 sps:$4 sm:$0xff]  }
 0x16d   :  { %744 = vmatpush1.bf16.msra.mxu0 %v2825_v49  ;;  %v2840_v49 = vld [vmem:[#allocation11 + $0x30] ss:$8 sps:$4 sm:$0xff]  }
 0x16e   :  { %745 = vmatprep.subr.bf16.mxu0 %v2830_v50  ;;  %1138 = vmatpush1.bf16.msra.mxu1 %v2876_v5  ;;  %v2911_v5 = vld [vmem:[#allocation16 + $0x24] ss:$8 sps:$4 sm:$0xff]  }
 0x16f   :  { %1139 = vmatprep.subr.bf16.mxu1 %v2881_v6  ;;  %v2909_v6 = vld [vmem:[#allocation16 + $0x20] ss:$8 sps:$4 sm:$0xff]  }
 0x171   :  { %746 = vmatpush1.bf16.msra.mxu0 %v2828_v51  ;;  %v2845_v51 = vld [vmem:[#allocation11 + $0x44] ss:$8 sps:$4 sm:$0xff]  }
 0x172   :  { %854 = vmatprep.subr.bf16.mxu0 %v2833_v52  ;;  %1140 = vmatpush1.bf16.msra.mxu1 %v2879_v7  ;;  %v2914_v7 = vld [vmem:[#allocation16 + $0x34] ss:$8 sps:$4 sm:$0xff]  }
 0x173   :  { %1141 = vmatprep.subr.bf16.mxu1 %v2884_v8  ;;  %v2912_v8 = vld [vmem:[#allocation16 + $0x30] ss:$8 sps:$4 sm:$0xff]  }
 0x176   :  { %1142 = vmatpush1.bf16.msra.mxu1 %v2882_v9  ;;  %v2917_v9 = vld [vmem:[#allocation16 + $0x44] ss:$8 sps:$4 sm:$0xff]  }
 0x177   :  { %1143 = vmatprep.subr.bf16.mxu1 %v2887_v10  ;;  %v2915_v10 = vld [vmem:[#allocation16 + $0x40] ss:$8 sps:$4 sm:$0xff]  }
 0x17a   :  { %1144 = vmatpush1.bf16.msra.mxu1 %v2885_v11  ;;  %v2920_v11 = vld [vmem:[#allocation16 + $0x54] ss:$8 sps:$4 sm:$0xff]  }
 0x17b   :  { %1145 = vmatprep.subr.bf16.mxu1 %v2890_v12  ;;  %v2918_v12 = vld [vmem:[#allocation16 + $0x50] ss:$8 sps:$4 sm:$0xff]  }
 0x17e   :  { %1146 = vmatpush1.bf16.msra.mxu1 %v2888_v13  ;;  %v2923_v13 = vld [vmem:[#allocation16 + $0x64] ss:$8 sps:$4 sm:$0xff]  }
 0x17f   :  { %1147 = vmatprep.subr.bf16.mxu1 %v2893_v14  ;;  %v2921_v14 = vld [vmem:[#allocation16 + $0x60] ss:$8 sps:$4 sm:$0xff]  }
 0x182   :  { %1148 = vmatpush1.bf16.msra.mxu1 %v2891_v15  ;;  %v2926_v15 = vld [vmem:[#allocation16 + $0x74] ss:$8 sps:$4 sm:$0xff]  }
 0x183   :  { %1149 = vmatprep.subr.bf16.mxu1 %v2896_v16  ;;  %v2924_v16 = vld [vmem:[#allocation16 + $0x70] ss:$8 sps:$4 sm:$0xff]  }
 0x186   :  { %1150 = vmatpush1.bf16.msra.mxu1 %v2894_v17  ;;  %v2929_v17 = vld [vmem:[#allocation16 + $0x84] ss:$8 sps:$4 sm:$0xff]  }
 0x187   :  { %1151 = vmatprep.subr.bf16.mxu1 %v2899_v60 }
 0x18a   :  { %1152 = vmatpush1.bf16.msra.mxu1 %v2897_v61 }
 0x18b   :  { %1153 = vmatprep.subr.bf16.mxu1 %v2902_v62 }
 0x18e   :  { %1154 = vmatpush1.bf16.msra.mxu1 %v2900_v63 }
 0x224   :  { %v608_v24 = vpop.f32.mrb[0].mxu1 }
 0x225   :  { %v610_v26 = vpop.f32.mrb[1].mxu1  ;;  %v609_v28 = vadd.f32 %v608_v24, %v481_v23  ;;  %v2933_v24 = vld [vmem:[#allocation16 + $0xa0] ss:$8 sps:$4 sm:$0xff]  }
 0x226   :  { %v612_v27 = vpop.f32.mrb[2].mxu1  ;;  %v3936_v31 = vadd.f32 %v610_v26, %v485_v25  ;;  %v2936_v26 = vld [vmem:[#allocation16 + $0xb0] ss:$8 sps:$4 sm:$0xff]  }
 0x227   :  { %v613_v29 = vadd.f32 %v612_v27, %v481_v23  ;;  %v614_v30 = vpop.f32.mrb[3].mxu1  ;;  %v2694_v39 = vpop.f32.mrb[0].mxu0  ;;  %v2935_v23 = vld [vmem:[#allocation16 + $0xa4] ss:$8 sps:$4 sm:$0xff]  }
 0x228   :  { %v3938_v32 = vadd.f32 %v614_v30, %v485_v25  ;;  %v2695_v41 = vpop.f32.mrb[1].mxu0  ;;  %v2938_v25 = vld [vmem:[#allocation16 + $0xb4] ss:$8 sps:$4 sm:$0xff]   ;;  %v2941_v27 = vld [vmem:[#allocation16 + $0xc4] ss:$8 sps:$4 sm:$0xff]  }
 0x229   :  { %v634_v34 = vpack.c.bf16 %v613_v29, %v609_v28  ;;  %v2696_v43 = vadd.f32 %v2695_v41, %v2694_v39  ;;  %v2697_v44 = vpop.f32.mrb[2].mxu0  ;;  %v2939_v28 = vld [vmem:[#allocation16 + $0xc0] ss:$8 sps:$4 sm:$0xff]   ;;  %v2944_v29 = vld [vmem:[#allocation16 + $0xd4] ss:$8 sps:$4 sm:$0xff]  }
 0x22a   :  { %v1561_v36 = vpack.c.bf16 %v3938_v32, %v3936_v31  ;;  %v2698_v46 = vpop.f32.mrb[3].mxu0  ;;  %v2942_v30 = vld [vmem:[#allocation16 + $0xd0] ss:$8 sps:$4 sm:$0xff]   ;;  %v3003_v32 = vld [vmem:[#allocation19 + $0x64] ss:$8 sps:$4 sm:$0xff]  }
 0x22b   :  { %764 = vmatmul.mubr.bf16.vlgmr.msra.gmra.mrb[4].mxu0 %v634_v34  ;;  %v452_v47 = vadd.f32 %v2696_v43, %v2437_v40  ;;  %v2699_v48 = vadd.f32 %v2698_v46, %v2697_v44  ;;  %v2998_v31 = vld [vmem:[#allocation19 + $0x50] ss:$8 sps:$4 sm:$0xff]  }
 0x22c   :  { %855 = vmatpush1.bf16.msra.mxu0 %v2831_v33  ;;  %886 = vmatprep.mubr.bf16.mxu0 %v3535_v0  ;;  %v897_v33 = vld [vmem:[%s4083_s17] sm:$0x3] }
 0x22d   :  { %856 = vmatprep.subr.bf16.mxu0 %v2836_v35  ;;  %v455_v50 = vadd.f32 %v2699_v48, %v2437_v40  ;;  %v902_v34 = vrot.slane %v897_v33, %v3927_v20  ;;  %v906_v35 = vrot.slane %v897_v33, %v3932_v22 }
 0x22f   :  { %v617_v52 = vpack.c.bf16 %v455_v50, %v452_v47 }
 0x230   :  { %857 = vmatpush1.bf16.msra.mxu0 %v2834_v37 }
 0x231   :  { %858 = vmatprep.subr.bf16.mxu0 %v2839_v38 }
 0x234   :  { %859 = vmatpush1.bf16.msra.mxu0 %v2837_v42 }
 0x235   :  { %860 = vmatprep.subr.bf16.mxu0 %v2842_v45 }
 0x238   :  { %861 = vmatpush1.bf16.msra.mxu0 %v2840_v49 }
 0x239   :  { %862 = vmatprep.subr.bf16.mxu0 %v2845_v51  ;;  %v2947_v51 = vld [vmem:[#allocation16 + $0xe4] ss:$8 sps:$4 sm:$0xff]  }
 0x23c   :  { %863 = vmatpush1.bf16.msra.mxu0 %v2843_v53  ;;  %v2950_v53 = vld [vmem:[#allocation16 + $0xf4] ss:$8 sps:$4 sm:$0xff]  }
 0x23d   :  { %864 = vmatprep.subr.bf16.mxu0 %v2848_v54  ;;  %v2948_v54 = vld [vmem:[#allocation16 + $0xf0] ss:$8 sps:$4 sm:$0xff]  }
 0x240   :  { %865 = vmatpush1.bf16.msra.mxu0 %v2846_v55  ;;  %v2951_v55 = vld [vmem:[#allocation17] sm:$0xff]  }
 0x241   :  { %866 = vmatprep.subr.bf16.mxu0 %v2851_v56  ;;  %v3536_v56 = vmov 0.0  }
 0x242   :  { %2709 = vmatprep.subr.bf16.mxu1 %v3536_v56 }
 0x244   :  { %867 = vmatpush1.bf16.msra.mxu0 %v2849_v57  ;;  %v2952_v57 = vld [vmem:[#allocation17 + $0x8] sm:$0xff]  }
 0x245   :  { %868 = vmatprep.subr.bf16.mxu0 %v2854_v58  ;;  %v951_v58 = vld [vmem:[%s4037_s11] sm:$0x3] }
 0x246   :  { %v960_v60 = vrot.slane %v951_v58, %v3932_v22 }
 0x248   :  { %869 = vmatpush1.bf16.msra.mxu0 %v2852_v59  ;;  %v956_v59 = vrot.slane %v951_v58, %v3927_v20  ;;  %v2974_v58 = vld [vmem:[#allocation20 + $0x50] ss:$8 sps:$4 sm:$0xff]  }
 0x249   :  { %1376 = vmatprep.subr.bf16.mxu0 %v2905_v2 }
 0x24b   :  { %887 = vmatmul.mubr.bf16.vlgmr.msra.gmra.mrb[4].mxu0 %v617_v52  ;;  %v2945_v52 = vld [vmem:[#allocation16 + $0xe0] ss:$8 sps:$4 sm:$0xff]  }
 0x24c   :  { %1377 = vmatpush1.bf16.msra.mxu0 %v2903_v1 }
 0x24d   :  { %1378 = vmatprep.subr.bf16.mxu0 %v2908_v3 }
 0x250   :  { %1379 = vmatpush1.bf16.msra.mxu0 %v2906_v4 }
 0x251   :  { %1380 = vmatprep.subr.bf16.mxu0 %v2911_v5 }
 0x254   :  { %1381 = vmatpush1.bf16.msra.mxu0 %v2909_v6 }
 0x255   :  { %1382 = vmatprep.subr.bf16.mxu0 %v2914_v7 }
 0x258   :  { %1383 = vmatpush1.bf16.msra.mxu0 %v2912_v8 }
 0x259   :  { %1384 = vmatprep.subr.bf16.mxu0 %v2917_v9 }
 0x25c   :  { %1385 = vmatpush1.bf16.msra.mxu0 %v2915_v10 }
 0x25d   :  { %1386 = vmatprep.subr.bf16.mxu0 %v2920_v11 }
 0x260   :  { %1387 = vmatpush1.bf16.msra.mxu0 %v2918_v12  ;;  %v2953_v12 = vld [vmem:[#allocation17 + $0x10] sm:$0xff]  }
 0x261   :  { %1388 = vmatprep.subr.bf16.mxu0 %v2923_v13  ;;  %v2954_v13 = vld [vmem:[#allocation17 + $0x18] sm:$0xff]  }
 0x264   :  { %1389 = vmatpush1.bf16.msra.mxu0 %v2921_v14  ;;  %v2955_v14 = vld [vmem:[#allocation17 + $0x20] sm:$0xff]  }
 0x265   :  { %1390 = vmatprep.subr.bf16.mxu0 %v2926_v15  ;;  %v2956_v15 = vld [vmem:[#allocation17 + $0x28] sm:$0xff]  }
 0x268   :  { %1391 = vmatpush1.bf16.msra.mxu0 %v2924_v16  ;;  %v2957_v16 = vld [vmem:[#allocation17 + $0x30] sm:$0xff]  }
 0x269   :  { %1392 = vmatprep.subr.bf16.mxu0 %v2929_v17  ;;  %v2958_v17 = vld [vmem:[#allocation17 + $0x38] sm:$0xff]  }
 0x26c   :  { %1393 = vmatpush1.bf16.msra.mxu0 %v2927_v18  ;;  %v2961_v18 = vld [vmem:[#allocation20 + $0x4] ss:$8 sps:$4 sm:$0xff]  }
 0x26d   :  { %1394 = vmatprep.subr.bf16.mxu0 %v2932_v19  ;;  %v1204_v19 = vld [vmem:[%s4039_s13] sm:$0x3] }
 0x270   :  { %1395 = vmatpush1.bf16.msra.mxu0 %v2930_v21  ;;  %v1209_v21 = vrot.slane %v1204_v19, %v3927_v20 }
 0x271   :  { %1396 = vmatprep.subr.bf16.mxu0 %v2935_v23  ;;  %v1213_v23 = vrot.slane %v1204_v19, %v3932_v22  ;;  %v3016_v19 = vld [vmem:[#allocation22 + $0x30] ss:$8 sps:$4 sm:$0xff]  }
 0x274   :  { %1397 = vmatpush1.bf16.msra.mxu0 %v2933_v24 }
 0x275   :  { %1398 = vmatprep.subr.bf16.mxu0 %v2938_v25 }
 0x278   :  { %1399 = vmatpush1.bf16.msra.mxu0 %v2936_v26 }
 0x279   :  { %1400 = vmatprep.subr.bf16.mxu0 %v2941_v27 }
 0x27c   :  { %1401 = vmatpush1.bf16.msra.mxu0 %v2939_v28 }
 0x27d   :  { %1402 = vmatprep.subr.bf16.mxu0 %v2944_v29 }
 0x280   :  { %1403 = vmatpush1.bf16.msra.mxu0 %v2942_v30 }
 0x281   :  { %1404 = vmatprep.subr.bf16.mxu0 %v2947_v51  ;;  %v2967_v51 = vld [vmem:[#allocation20 + $0x24] ss:$8 sps:$4 sm:$0xff]  }
 0x284   :  { %1405 = vmatpush1.bf16.msra.mxu0 %v2945_v52  ;;  %v2965_v52 = vld [vmem:[#allocation20 + $0x20] ss:$8 sps:$4 sm:$0xff]  }
 0x285   :  { %1406 = vmatprep.subr.bf16.mxu0 %v2950_v53  ;;  %v2970_v53 = vld [vmem:[#allocation20 + $0x34] ss:$8 sps:$4 sm:$0xff]  }
 0x288   :  { %1407 = vmatpush1.bf16.msra.mxu0 %v2948_v54  ;;  %v2968_v54 = vld [vmem:[#allocation20 + $0x30] ss:$8 sps:$4 sm:$0xff]  }
 0x31e   :  { %v888_v37 = vpop.f32.mrb[4].mxu0 }
 0x31f   :  { %v909_v38 = vadd.f32 %v902_v34, %v888_v37  ;;  %v890_v39 = vpop.f32.mrb[5].mxu0 }
 0x320   :  { %v910_v40 = vadd.f32 %v906_v35, %v890_v39  ;;  %v892_v41 = vpop.f32.mrb[6].mxu0  ;;  %v1425_v39 = vld [vmem:[#allocation7] sm:$0xff] }
 0x321   :  { %v911_v42 = vadd.f32 %v902_v34, %v892_v41  ;;  %v894_v43 = vpop.f32.mrb[7].mxu0  ;;  %v913_v45 = vmax.f32 %v909_v38, 0.0  ;;  %v1426_v41 = vld [vmem:[#allocation7 + $0x8] sm:$0xff] }
 0x322   :  { %v912_v44 = vadd.f32 %v906_v35, %v894_v43  ;;  %v914_v47 = vmax.f32 %v910_v40, 0.0 }
 0x323   :  { %v915_v46 = vmax.f32 %v911_v42, 0.0 }
 0x324   :  { %v916_v48 = vmax.f32 %v912_v44, 0.0 }
 0x325   :  { %v917_v49 = vpack.c.bf16 %v915_v46, %v913_v45 }
 0x326   :  { %v918_v50 = vpack.c.bf16 %v916_v48, %v914_v47  ;;  %v2959_v47 = vld [vmem:[#allocation20] ss:$8 sps:$4 sm:$0xff]  }
 0x328   :  { %1155 = vmatprep.mubr.bf16.mxu1 %v918_v50  ;;  %v2962_v50 = vld [vmem:[#allocation20 + $0x10] ss:$8 sps:$4 sm:$0xff]  }
 0x329   :  { %1156 = vmatmul.mubr.bf16.vlgmr.msra.gmra.mrb[4].mxu1 %v917_v49  ;;  %v2964_v49 = vld [vmem:[#allocation20 + $0x14] ss:$8 sps:$4 sm:$0xff]  }
 0x32a   :  { %2710 = vmatpush3.bf16.msra.mxu1 %v2951_v55  ;;  %2725 = vmatprep.mubr.msk.bf16.mxu1 %vm3537_vm0, %v3536_v56  ;;  %v2973_v55 = vld [vmem:[#allocation20 + $0x44] ss:$8 sps:$4 sm:$0xff]  }
 0x32b   :  { %2711 = vmatprep.subr.bf16.mxu1 %v3536_v56 }
 0x32e   :  { %2712 = vmatpush3.bf16.msra.mxu1 %v2952_v57  ;;  %v2976_v57 = vld [vmem:[#allocation20 + $0x54] ss:$8 sps:$4 sm:$0xff]  }
 0x32f   :  { %2713 = vmatprep.subr.bf16.mxu1 %v3536_v56 }
 0x332   :  { %2714 = vmatpush3.bf16.msra.mxu1 %v2953_v12  ;;  %v3007_v12 = vld [vmem:[#allocation22] ss:$8 sps:$4 sm:$0xff]  }
 0x333   :  { %2715 = vmatprep.subr.bf16.mxu1 %v3536_v56 }
 0x336   :  { %2716 = vmatpush3.bf16.msra.mxu1 %v2954_v13  ;;  %v3009_v13 = vld [vmem:[#allocation22 + $0x4] ss:$8 sps:$4 sm:$0xff]  }
 0x337   :  { %2717 = vmatprep.subr.bf16.mxu1 %v3536_v56  ;;  %2050 = vmatprep.subr.bf16.mxu0 %v3009_v13  ;;  %v3088_v13 = vld [vmem:[#allocation23 + $0xb0] ss:$8 sps:$4 sm:$0xff]  }
 0x33a   :  { %2718 = vmatpush3.bf16.msra.mxu1 %v2955_v14  ;;  %v3012_v14 = vld [vmem:[#allocation22 + $0x14] ss:$8 sps:$4 sm:$0xff]  }
 0x33b   :  { %2719 = vmatprep.subr.bf16.mxu1 %v3536_v56 }
 0x33e   :  { %2720 = vmatpush3.bf16.msra.mxu1 %v2956_v15  ;;  %v3010_v15 = vld [vmem:[#allocation22 + $0x10] ss:$8 sps:$4 sm:$0xff]  }
 0x33f   :  { %2721 = vmatprep.subr.bf16.mxu1 %v3536_v56 }
 0x342   :  { %2722 = vmatpush3.bf16.msra.mxu1 %v2957_v16  ;;  %v3015_v16 = vld [vmem:[#allocation22 + $0x24] ss:$8 sps:$4 sm:$0xff]  }
 0x343   :  { %2723 = vmatprep.subr.bf16.mxu1 %v3536_v56  ;;  %v2971_v56 = vld [vmem:[#allocation20 + $0x40] ss:$8 sps:$4 sm:$0xff]  }
 0x346   :  { %2724 = vmatpush3.bf16.msra.mxu1 %v2958_v17  ;;  %v3013_v17 = vld [vmem:[#allocation22 + $0x20] ss:$8 sps:$4 sm:$0xff]  }
 0x347   :  { %1658 = vmatprep.subr.bf16.mxu1 %v2961_v18  ;;  %v3018_v18 = vld [vmem:[#allocation22 + $0x34] ss:$8 sps:$4 sm:$0xff]  }
 0x3fc   :  { %v1157_v61 = vpop.f32.mrb[4].mxu1 }
 0x3fd   :  { %v1158_v62 = vadd.f32 %v1157_v61, %v956_v59  ;;  %v1159_v63 = vpop.f32.mrb[5].mxu1  ;;  %v2982_v61 = vld [vmem:[#allocation20 + $0x74] ss:$8 sps:$4 sm:$0xff]  }
 0x3fe   :  { %v1160_v1 = vadd.f32 %v1159_v63, %v960_v60  ;;  %v1161_v2 = vpop.f32.mrb[6].mxu1  ;;  %v2985_v63 = vld [vmem:[#allocation19 + $0x4] ss:$8 sps:$4 sm:$0xff]  }
 0x3ff   :  { %v1162_v3 = vadd.f32 %v1161_v2, %v956_v59  ;;  %v1163_v4 = vpop.f32.mrb[7].mxu1  ;;  %v1166_v6 = vmax.f32 %v1158_v62, 0.0  ;;  %v2979_v59 = vld [vmem:[#allocation20 + $0x64] ss:$8 sps:$4 sm:$0xff]   ;;  %v2980_v62 = vld [vmem:[#allocation20 + $0x70] ss:$8 sps:$4 sm:$0xff]  }
 0x400   :  { %v1164_v5 = vadd.f32 %v1163_v4, %v960_v60  ;;  %v1167_v8 = vmax.f32 %v1160_v1, 0.0  ;;  %v2977_v60 = vld [vmem:[#allocation20 + $0x60] ss:$8 sps:$4 sm:$0xff]   ;;  %v2988_v2 = vld [vmem:[#allocation19 + $0x14] ss:$8 sps:$4 sm:$0xff]  }
 0x401   :  { %v1168_v7 = vmax.f32 %v1162_v3, 0.0  ;;  %v2983_v1 = vld [vmem:[#allocation19] ss:$8 sps:$4 sm:$0xff]   ;;  %v2986_v3 = vld [vmem:[#allocation19 + $0x10] ss:$8 sps:$4 sm:$0xff]  }
 0x402   :  { %v1169_v9 = vmax.f32 %v1164_v5, 0.0  ;;  %v2991_v4 = vld [vmem:[#allocation19 + $0x24] ss:$8 sps:$4 sm:$0xff]   ;;  %v2989_v5 = vld [vmem:[#allocation19 + $0x20] ss:$8 sps:$4 sm:$0xff]  }
 0x403   :  { %v1170_v10 = vpack.c.bf16 %v1168_v7, %v1166_v6  ;;  %v2994_v6 = vld [vmem:[#allocation19 + $0x34] ss:$8 sps:$4 sm:$0xff]   ;;  %v2992_v7 = vld [vmem:[#allocation19 + $0x30] ss:$8 sps:$4 sm:$0xff]  }
 0x404   :  { %v1171_v11 = vpack.c.bf16 %v1169_v9, %v1167_v8  ;;  %v2997_v8 = vld [vmem:[#allocation19 + $0x44] ss:$8 sps:$4 sm:$0xff]   ;;  %v2995_v9 = vld [vmem:[#allocation19 + $0x40] ss:$8 sps:$4 sm:$0xff]  }
 0x406   :  { %1408 = vmatprep.mubr.bf16.mxu0 %v1171_v11  ;;  %v3004_v11 = vld [vmem:[#allocation19 + $0x70] ss:$8 sps:$4 sm:$0xff]  }
 0x407   :  { %1409 = vmatmul.mubr.bf16.vlgmr.msra.gmra.mrb[8].mxu0 %v1170_v10  ;;  %v3000_v10 = vld [vmem:[#allocation19 + $0x54] ss:$8 sps:$4 sm:$0xff]  }
 0x408   :  { %2051 = vmatpush1.bf16.msra.mxu0 %v3007_v12  ;;  %v3090_v12 = vld [vmem:[#allocation23 + $0xb4] ss:$8 sps:$4 sm:$0xff]  }
 0x409   :  { %2052 = vmatprep.subr.bf16.mxu0 %v3012_v14  ;;  %v3093_v14 = vld [vmem:[#allocation23 + $0xc4] ss:$8 sps:$4 sm:$0xff]  }
 0x40c   :  { %2053 = vmatpush1.bf16.msra.mxu0 %v3010_v15  ;;  %v3091_v15 = vld [vmem:[#allocation23 + $0xc0] ss:$8 sps:$4 sm:$0xff]  }
 0x40d   :  { %2054 = vmatprep.subr.bf16.mxu0 %v3015_v16  ;;  %v3096_v16 = vld [vmem:[#allocation23 + $0xd4] ss:$8 sps:$4 sm:$0xff]  }
 0x410   :  { %2055 = vmatpush1.bf16.msra.mxu0 %v3013_v17  ;;  %v3094_v17 = vld [vmem:[#allocation23 + $0xd0] ss:$8 sps:$4 sm:$0xff]  }
 0x411   :  { %2056 = vmatprep.subr.bf16.mxu0 %v3018_v18  ;;  %v1824_v18 = vld [vmem:[%s4044_s18] sm:$0x3] }
 0x414   :  { %2057 = vmatpush1.bf16.msra.mxu0 %v3016_v19  ;;  %v1829_v19 = vrot.slane %v1824_v18, %v3927_v20 }
 0x4da   :  { %v1410_v24 = vpop.f32.mrb[8].mxu0 }
 0x4db   :  { %v1411_v25 = vadd.f32 %v1410_v24, %v1209_v21  ;;  %v1412_v26 = vpop.f32.mrb[9].mxu0  ;;  %v3024_v24 = vld [vmem:[#allocation22 + $0x54] ss:$8 sps:$4 sm:$0xff]  }
 0x4dc   :  { %v1413_v27 = vadd.f32 %v1412_v26, %v1213_v23  ;;  %v1414_v28 = vpop.f32.mrb[10].mxu0  ;;  %v3027_v26 = vld [vmem:[#allocation22 + $0x64] ss:$8 sps:$4 sm:$0xff]  }
 0x4dd   :  { %2378 = vst [vmem:[#allocation26] sm:$0xff] %v1411_v25  ;;  %v1415_v29 = vadd.f32 %v1414_v28, %v1209_v21  ;;  %v1416_v30 = vpop.f32.mrb[11].mxu0  ;;  %v3021_v21 = vld [vmem:[#allocation22 + $0x44] ss:$8 sps:$4 sm:$0xff]   ;;  %v3030_v28 = vld [vmem:[#allocation22 + $0x74] ss:$8 sps:$4 sm:$0xff]  }
 0x4de   :  { %v1419_v33 = vmul.f32 0.5, %v1413_v27  ;;  %2380 = vst [vmem:[#allocation28] sm:$0xff] %v1413_v27  ;;  %v1417_v34 = vadd.f32 %v1416_v30, %v1213_v23  ;;  %v3019_v23 = vld [vmem:[#allocation22 + $0x40] ss:$8 sps:$4 sm:$0xff]   ;;  %2058 = vmatprep.subr.bf16.mxu0 %v3021_v21  ;;  %v3033_v30 = vld [vmem:[#allocation22 + $0x84] ss:$8 sps:$4 sm:$0xff]   ;;  %v1833_v21 = vrot.slane %v1824_v18, %v3932_v22 }
 0x4df   :  { %2379 = vst [vmem:[#allocation26 + $0x8] sm:$0xff] %v1415_v29  ;;  %2059 = vmatpush1.bf16.msra.mxu0 %v3019_v23  ;;  %v3025_v27 = vld [vmem:[#allocation22 + $0x60] ss:$8 sps:$4 sm:$0xff]  }
 0x4e0   :  { %v1421_v35 = vmul.f32 1.442695, %v1419_v33  ;;  %v1420_v37 = vmul.f32 0.5, %v1417_v34  ;;  %2381 = vst [vmem:[#allocation28 + $0x8] sm:$0xff] %v1417_v34  ;;  %2060 = vmatprep.subr.bf16.mxu0 %v3024_v24  ;;  %v3031_v33 = vld [vmem:[#allocation22 + $0x80] ss:$8 sps:$4 sm:$0xff]  }
 0x4e1   :  { %v3036_v34 = vld [vmem:[#allocation22 + $0x94] ss:$8 sps:$4 sm:$0xff]  }
 0x4e2   :  { %3103 = vpow2.f32 %v1421_v35  ;;  %v1423_v38 = vmul.f32 1.442695, %v1420_v37  ;;  %v3034_v35 = vld [vmem:[#allocation22 + $0x90] ss:$8 sps:$4 sm:$0xff]   ;;  %v3039_v37 = vld [vmem:[#allocation22 + $0xa4] ss:$8 sps:$4 sm:$0xff]  }
 0x4e4   :  { %3105 = vpow2.f32 %v1423_v38  ;;  %v3037_v38 = vld [vmem:[#allocation22 + $0xa0] ss:$8 sps:$4 sm:$0xff]  }
 0x4ec   :  { %v3104_v40 = vpop.eup %3103 }
 0x4ed   :  { %v1427_v42 = vmul.f32 %v3104_v40, %v1425_v39  ;;  %v3042_v39 = vld [vmem:[#allocation22 + $0xb4] ss:$8 sps:$4 sm:$0xff]   ;;  %v3040_v40 = vld [vmem:[#allocation22 + $0xb0] ss:$8 sps:$4 sm:$0xff]  }
 0x4ee   :  { %v3106_v43 = vpop.eup %3105 }
 0x4ef   :  { %v1428_v44 = vmul.f32 %v3106_v43, %v1426_v41  ;;  %v1429_v45 = vadd.f32 %v1427_v42, %v1411_v25  ;;  %v3022_v25 = vld [vmem:[#allocation22 + $0x50] ss:$8 sps:$4 sm:$0xff]   ;;  %v3045_v41 = vld [vmem:[#allocation22 + $0xc4] ss:$8 sps:$4 sm:$0xff]   ;;  %v3043_v42 = vld [vmem:[#allocation22 + $0xc0] ss:$8 sps:$4 sm:$0xff]  }
 0x4f0   :  { %2061 = vmatpush1.bf16.msra.mxu0 %v3022_v25  ;;  %v3048_v43 = vld [vmem:[#allocation22 + $0xd4] ss:$8 sps:$4 sm:$0xff]  }
 0x4f1   :  { %v1430_v46 = vadd.f32 %v1428_v44, %v1415_v29  ;;  %2062 = vmatprep.subr.bf16.mxu0 %v3027_v26  ;;  %v3028_v29 = vld [vmem:[#allocation22 + $0x70] ss:$8 sps:$4 sm:$0xff]  }
 0x4f2   :  { %v3046_v44 = vld [vmem:[#allocation22 + $0xd0] ss:$8 sps:$4 sm:$0xff]  }
 0x4f3   :  { %v1431_v48 = vpack.c.bf16 %v1430_v46, %v1429_v45  ;;  %v2569_v45 = vld [vmem:[%s4041_s15] ss:$0 sm:$0xff] }
 0x4f4   :  { %2063 = vmatpush1.bf16.msra.mxu0 %v3025_v27 }
 0x4f5   :  { %2726 = vmatmul.mubr.bf16.vlgmr.msra.gmra.mrb[8].mxu1 %v1431_v48  ;;  %2064 = vmatprep.subr.bf16.mxu0 %v3030_v28 }
 0x4f6   :  { %1659 = vmatpush1.bf16.msra.mxu1 %v2959_v47  ;;  %1690 = vmatprep.mubr.bf16.mxu1 %v3535_v0 }
 0x4f7   :  { %1660 = vmatprep.subr.bf16.mxu1 %v2964_v49 }
 0x4f8   :  { %2065 = vmatpush1.bf16.msra.mxu0 %v3028_v29 }
 0x4f9   :  { %2066 = vmatprep.subr.bf16.mxu0 %v3033_v30 }
 0x4fa   :  { %1661 = vmatpush1.bf16.msra.mxu1 %v2962_v50 }
 0x4fb   :  { %1662 = vmatprep.subr.bf16.mxu1 %v2967_v51 }
 0x4fc   :  { %2067 = vmatpush1.bf16.msra.mxu0 %v3031_v33 }
 0x4fd   :  { %2068 = vmatprep.subr.bf16.mxu0 %v3036_v34 }
 0x4fe   :  { %1663 = vmatpush1.bf16.msra.mxu1 %v2965_v52 }
 0x4ff   :  { %1664 = vmatprep.subr.bf16.mxu1 %v2970_v53  ;;  %v3051_v53 = vld [vmem:[#allocation22 + $0xe4] ss:$8 sps:$4 sm:$0xff]  }
 0x500   :  { %2069 = vmatpush1.bf16.msra.mxu0 %v3034_v35 }
 0x501   :  { %2070 = vmatprep.subr.bf16.mxu0 %v3039_v37 }
 0x502   :  { %1665 = vmatpush1.bf16.msra.mxu1 %v2968_v54  ;;  %v3049_v54 = vld [vmem:[#allocation22 + $0xe0] ss:$8 sps:$4 sm:$0xff]  }
 0x503   :  { %1666 = vmatprep.subr.bf16.mxu1 %v2973_v55  ;;  %v3054_v55 = vld [vmem:[#allocation22 + $0xf4] ss:$8 sps:$4 sm:$0xff]  }
 0x504   :  { %2071 = vmatpush1.bf16.msra.mxu0 %v3037_v38 }
 0x505   :  { %2072 = vmatprep.subr.bf16.mxu0 %v3042_v39 }
 0x506   :  { %1667 = vmatpush1.bf16.msra.mxu1 %v2971_v56  ;;  %v3052_v56 = vld [vmem:[#allocation22 + $0xf0] ss:$8 sps:$4 sm:$0xff]  }
 0x507   :  { %1668 = vmatprep.subr.bf16.mxu1 %v2976_v57  ;;  %v3055_v57 = vld [vmem:[#allocation23] ss:$8 sps:$4 sm:$0xff]  }
 0x508   :  { %2073 = vmatpush1.bf16.msra.mxu0 %v3040_v40  ;;  %v3099_v40 = vld [vmem:[#allocation23 + $0xe4] ss:$8 sps:$4 sm:$0xff]  }
 0x509   :  { %2074 = vmatprep.subr.bf16.mxu0 %v3045_v41  ;;  %v3097_v41 = vld [vmem:[#allocation23 + $0xe0] ss:$8 sps:$4 sm:$0xff]  }
 0x50a   :  { %1669 = vmatpush1.bf16.msra.mxu1 %v2974_v58  ;;  %v3057_v58 = vld [vmem:[#allocation23 + $0x4] ss:$8 sps:$4 sm:$0xff]  }
 0x50b   :  { %1670 = vmatprep.subr.bf16.mxu1 %v2979_v59  ;;  %v3060_v59 = vld [vmem:[#allocation23 + $0x14] ss:$8 sps:$4 sm:$0xff]  }
 0x50c   :  { %2075 = vmatpush1.bf16.msra.mxu0 %v3043_v42  ;;  %v3102_v42 = vld [vmem:[#allocation23 + $0xf4] ss:$8 sps:$4 sm:$0xff]  }
 0x50d   :  { %2076 = vmatprep.subr.bf16.mxu0 %v3048_v43  ;;  %v3100_v43 = vld [vmem:[#allocation23 + $0xf0] ss:$8 sps:$4 sm:$0xff]  }
 0x50e   :  { %1671 = vmatpush1.bf16.msra.mxu1 %v2977_v60  ;;  %v3058_v60 = vld [vmem:[#allocation23 + $0x10] ss:$8 sps:$4 sm:$0xff]  }
 0x50f   :  { %1672 = vmatprep.subr.bf16.mxu1 %v2982_v61  ;;  %v3063_v61 = vld [vmem:[#allocation23 + $0x24] ss:$8 sps:$4 sm:$0xff]  }
 0x510   :  { %2077 = vmatpush1.bf16.msra.mxu0 %v3046_v44  ;;  %v1878_v44 = vld [vmem:[%s4046_s20] sm:$0x3]  ;;  %s3538_s20 = smov [#allocation26]  }
 0x511   :  { %2078 = vmatprep.subr.bf16.mxu0 %v3051_v53  ;;  %s2399_s8 = sshll.u32 %s3538_s20, 4  ;;  %s2400_s8 = int_to_ptr.vmem [resolvable:$true] %s2399_s8 }
 0x512   :  { %1673 = vmatpush1.bf16.msra.mxu1 %v2980_v62  ;;  %v3061_v62 = vld [vmem:[#allocation23 + $0x20] ss:$8 sps:$4 sm:$0xff]   ;;  %s3431_s9 = scalar_lea.vmem %s2400_s8, 256  ;;  %p3436_p1 = scmp.lt.s32.totalorder %s2400_s8, %s2400_s8 }
 0x513   :  { %1781 = vmatprep.subr.bf16.mxu1 %v2985_v63  ;;  %v3066_v63 = vld [vmem:[#allocation23 + $0x34] ss:$8 sps:$4 sm:$0xff]   ;;  %p3432_p0 = scmp.ne.s32.totalorder %s2400_s8, %s3431_s9  ;;  %p3437_p2 = scmp.lt.s32.totalorder %s3431_s9, %s3431_s9 }
 0x514   :  { %2079 = vmatpush1.bf16.msra.mxu0 %v3049_v54 }
 0x515   :  { %1691 = vmatmul.mubr.bf16.vlgmr.msra.gmra.mrb[12].mxu1 %v1561_v36  ;;  %v3006_v36 = vld [vmem:[#allocation19 + $0x74] ss:$8 sps:$4 sm:$0xff]   ;;  %2080 = vmatprep.subr.bf16.mxu0 %v3054_v55  ;;  %p3438_p3 = por %p3437_p2, %p3436_p1 }
 0x516   :  { %1782 = vmatpush1.bf16.msra.mxu1 %v2983_v1  ;;  %1813 = vmatprep.mubr.bf16.mxu1 %v3535_v0  ;;  %v3001_v0 = vld [vmem:[#allocation19 + $0x60] ss:$8 sps:$4 sm:$0xff]   ;;  %v3064_v1 = vld [vmem:[#allocation23 + $0x30] ss:$8 sps:$4 sm:$0xff]  }
 0x517   :  { %1783 = vmatprep.subr.bf16.mxu1 %v2988_v2  ;;  %v3069_v2 = vld [vmem:[#allocation23 + $0x44] ss:$8 sps:$4 sm:$0xff]   ;;  %p3439_p4 = pnand %p3438_p3, %p3432_p0 }
 0x518   :  { %2081 = vmatpush1.bf16.msra.mxu0 %v3052_v56 }
 0x51a   :  { %1784 = vmatpush1.bf16.msra.mxu1 %v2986_v3  ;;  %v3067_v3 = vld [vmem:[#allocation23 + $0x40] ss:$8 sps:$4 sm:$0xff]  }
 0x51b   :  { %1785 = vmatprep.subr.bf16.mxu1 %v2991_v4  ;;  %v3072_v4 = vld [vmem:[#allocation23 + $0x54] ss:$8 sps:$4 sm:$0xff]  }
 0x51e   :  { %1786 = vmatpush1.bf16.msra.mxu1 %v2989_v5  ;;  %v3070_v5 = vld [vmem:[#allocation23 + $0x50] ss:$8 sps:$4 sm:$0xff]  }
 0x51f   :  { %1787 = vmatprep.subr.bf16.mxu1 %v2994_v6  ;;  %v3075_v6 = vld [vmem:[#allocation23 + $0x64] ss:$8 sps:$4 sm:$0xff]  }
 0x522   :  { %1788 = vmatpush1.bf16.msra.mxu1 %v2992_v7  ;;  %v3073_v7 = vld [vmem:[#allocation23 + $0x60] ss:$8 sps:$4 sm:$0xff]  }
 0x523   :  { %1789 = vmatprep.subr.bf16.mxu1 %v2997_v8  ;;  %v3078_v8 = vld [vmem:[#allocation23 + $0x74] ss:$8 sps:$4 sm:$0xff]  }
 0x526   :  { %1790 = vmatpush1.bf16.msra.mxu1 %v2995_v9  ;;  %v3076_v9 = vld [vmem:[#allocation23 + $0x70] ss:$8 sps:$4 sm:$0xff]  }
 0x527   :  { %1791 = vmatprep.subr.bf16.mxu1 %v3000_v10  ;;  %v3081_v10 = vld [vmem:[#allocation23 + $0x84] ss:$8 sps:$4 sm:$0xff]  }
 0x52a   :  { %1792 = vmatpush1.bf16.msra.mxu1 %v2998_v31  ;;  %v3079_v31 = vld [vmem:[#allocation23 + $0x80] ss:$8 sps:$4 sm:$0xff]  }
 0x52b   :  { %1793 = vmatprep.subr.bf16.mxu1 %v3003_v32  ;;  %v3084_v32 = vld [vmem:[#allocation23 + $0x94] ss:$8 sps:$4 sm:$0xff]  }
 0x52e   :  { %1794 = vmatpush1.bf16.msra.mxu1 %v3001_v0  ;;  %v3082_v0 = vld [vmem:[#allocation23 + $0x90] ss:$8 sps:$4 sm:$0xff]  }
 0x52f   :  { %1795 = vmatprep.subr.bf16.mxu1 %v3006_v36  ;;  %v3087_v36 = vld [vmem:[#allocation23 + $0xa4] ss:$8 sps:$4 sm:$0xff]  }
 0x532   :  { %1796 = vmatpush1.bf16.msra.mxu1 %v3004_v11  ;;  %v3085_v11 = vld [vmem:[#allocation23 + $0xa0] ss:$8 sps:$4 sm:$0xff]  }
 0x533   :  { %2303 = vmatprep.subr.bf16.mxu1 %v3057_v58 }
 0x5c8   :  { %v1537_v46 = vpop.f32.mrb[8].mxu1 }
 0x5c9   :  { %v2727_v47 = vpop.f32.mrb[9].mxu1  ;;  %v1538_v49 = vadd.f32 %v2569_v45, %v1537_v46  ;;  %v1887_v46 = vrot.slane %v1878_v44, %v3932_v22 }
 0x5ca   :  { %v1540_v48 = vpop.f32.mrb[10].mxu1 }
 0x5cb   :  { %v1541_v50 = vadd.f32 %v2569_v45, %v1540_v48  ;;  %v2728_v51 = vpop.f32.mrb[11].mxu1  ;;  %v1883_v45 = vrot.slane %v1878_v44, %v3927_v20 }
 0x5cd   :  { %v1544_v52 = vpack.c.bf16 %v1541_v50, %v1538_v49 }
 0x5cf   :  { %1814 = vmatmul.mubr.bf16.vlgmr.msra.gmra.mrb[12].mxu1 %v1544_v52 }
 0x5d0   :  { %2304 = vmatpush1.bf16.msra.mxu1 %v3055_v57 }
 0x5d1   :  { %2305 = vmatprep.subr.bf16.mxu1 %v3060_v59 }
 0x5d4   :  { %2306 = vmatpush1.bf16.msra.mxu1 %v3058_v60 }
 0x5d5   :  { %2307 = vmatprep.subr.bf16.mxu1 %v3063_v61 }
 0x5d8   :  { %2308 = vmatpush1.bf16.msra.mxu1 %v3061_v62 }
 0x5d9   :  { %2309 = vmatprep.subr.bf16.mxu1 %v3066_v63 }
 0x5dc   :  { %2310 = vmatpush1.bf16.msra.mxu1 %v3064_v1 }
 0x5dd   :  { %2311 = vmatprep.subr.bf16.mxu1 %v3069_v2 }
 0x5e0   :  { %2312 = vmatpush1.bf16.msra.mxu1 %v3067_v3 }
 0x5e1   :  { %2313 = vmatprep.subr.bf16.mxu1 %v3072_v4 }
 0x5e4   :  { %2314 = vmatpush1.bf16.msra.mxu1 %v3070_v5 }
 0x5e5   :  { %2315 = vmatprep.subr.bf16.mxu1 %v3075_v6 }
 0x5e8   :  { %2316 = vmatpush1.bf16.msra.mxu1 %v3073_v7 }
 0x5e9   :  { %2317 = vmatprep.subr.bf16.mxu1 %v3078_v8 }
 0x5ec   :  { %2318 = vmatpush1.bf16.msra.mxu1 %v3076_v9 }
 0x5ed   :  { %2319 = vmatprep.subr.bf16.mxu1 %v3081_v10 }
 0x5f0   :  { %2320 = vmatpush1.bf16.msra.mxu1 %v3079_v31 }
 0x5f1   :  { %2321 = vmatprep.subr.bf16.mxu1 %v3084_v32 }
 0x5f4   :  { %2322 = vmatpush1.bf16.msra.mxu1 %v3082_v0 }
 0x5f5   :  { %2323 = vmatprep.subr.bf16.mxu1 %v3087_v36 }
 0x5f8   :  { %2324 = vmatpush1.bf16.msra.mxu1 %v3085_v11 }
 0x5f9   :  { %2325 = vmatprep.subr.bf16.mxu1 %v3090_v12 }
 0x5fc   :  { %2326 = vmatpush1.bf16.msra.mxu1 %v3088_v13 }
 0x5fd   :  { %2327 = vmatprep.subr.bf16.mxu1 %v3093_v14 }
 0x600   :  { %2328 = vmatpush1.bf16.msra.mxu1 %v3091_v15 }
 0x601   :  { %2329 = vmatprep.subr.bf16.mxu1 %v3096_v16 }
 0x604   :  { %2330 = vmatpush1.bf16.msra.mxu1 %v3094_v17 }
 0x605   :  { %2331 = vmatprep.subr.bf16.mxu1 %v3099_v40 }
 0x608   :  { %2332 = vmatpush1.bf16.msra.mxu1 %v3097_v41 }
 0x609   :  { %2333 = vmatprep.subr.bf16.mxu1 %v3102_v42 }
 0x60c   :  { %2334 = vmatpush1.bf16.msra.mxu1 %v3100_v43 }
 0x6a2   :  { %v1815_v23 = vpop.f32.mrb[12].mxu1 }
 0x6a3   :  { %v1836_v24 = vadd.f32 %v1829_v19, %v1815_v23  ;;  %v1817_v25 = vpop.f32.mrb[13].mxu1 }
 0x6a4   :  { %v1837_v26 = vadd.f32 %v1833_v21, %v1817_v25  ;;  %v1819_v27 = vpop.f32.mrb[14].mxu1 }
 0x6a5   :  { %v1838_v28 = vadd.f32 %v1829_v19, %v1819_v27  ;;  %v1821_v29 = vpop.f32.mrb[15].mxu1  ;;  %v1840_v33 = vmax.f32 %v1836_v24, 0.0 }
 0x6a6   :  { %v1839_v30 = vadd.f32 %v1833_v21, %v1821_v29  ;;  %v1841_v35 = vmax.f32 %v1837_v26, 0.0 }
 0x6a7   :  { %v1842_v34 = vmax.f32 %v1838_v28, 0.0 }
 0x6a8   :  { %v1843_v37 = vmax.f32 %v1839_v30, 0.0 }
 0x6a9   :  { %v1844_v38 = vpack.c.bf16 %v1842_v34, %v1840_v33 }
 0x6aa   :  { %v1845_v39 = vpack.c.bf16 %v1843_v37, %v1841_v35 }
 0x6ac   :  { %2082 = vmatprep.mubr.bf16.mxu0 %v1845_v39 }
 0x6ad   :  { %2083 = vmatmul.mubr.bf16.vlgmr.msra.gmra.mrb[12].mxu0 %v1844_v38 }
 0x780   :  { %v2084_v47 = vpop.f32.mrb[12].mxu0 }
 0x781   :  { %v2085_v48 = vadd.f32 %v2084_v47, %v1883_v45  ;;  %v2086_v49 = vpop.f32.mrb[13].mxu0 }
 0x782   :  { %v2087_v50 = vadd.f32 %v2086_v49, %v1887_v46  ;;  %v2088_v51 = vpop.f32.mrb[14].mxu0 }
 0x783   :  { %v2089_v52 = vadd.f32 %v2088_v51, %v1883_v45  ;;  %v2090_v53 = vpop.f32.mrb[15].mxu0  ;;  %v2093_v55 = vmax.f32 %v2085_v48, 0.0 }
 0x784   :  { %v2091_v54 = vadd.f32 %v2090_v53, %v1887_v46  ;;  %v2094_v57 = vmax.f32 %v2087_v50, 0.0 }
 0x785   :  { %v2095_v56 = vmax.f32 %v2089_v52, 0.0 }
 0x786   :  { %v2096_v58 = vmax.f32 %v2091_v54, 0.0 }
 0x787   :  { %v2097_v59 = vpack.c.bf16 %v2095_v56, %v2093_v55 }
 0x788   :  { %v2098_v60 = vpack.c.bf16 %v2096_v58, %v2094_v57 }
 0x78a   :  { %2335 = vmatprep.mubr.bf16.mxu1 %v2098_v60 }
 0x78b   :  { %2336 = vmatmul.mubr.bf16.vlgmr.msra.gmra.mrb[16].mxu1 %v2097_v59 }
 0x78c   :  { %3442 = shalt.err (!%p3439_p4)
}
 0x78d   :  { %s3443_s28 = scalar_lea.hbm %s4050_s24, 256 }
 0x78e   :  { %p3444_p5 = scmp.ne.s32.totalorder %s4050_s24, %s3443_s28  ;;  %p3447_p6 = scmp.lt.u32.totalorder %s3443_s28, %s4050_s24 }
 0x790   :  { %p3449_p7 = pnand %p3447_p6, %p3444_p5 }
 0x792   :  { %3452 = shalt.err (!%p3449_p7)
}
 0x793   :  { %2405 = dma.vmem_to_hbm [thread:$0]  %s2400_s8, 256, %s4050_s24, [#allocation27], %s3523_s26, %s3523_s26, %s3524_s2  }
 0x794   :  { %s3539_s0 = smov [#allocation28]  }
 0x795   :  { %s2411_s6 = sshll.u32 %s3539_s0, 4  ;;  %s2412_s6 = int_to_ptr.vmem [resolvable:$true] %s2411_s6 }
 0x796   :  { %s3453_s30 = scalar_lea.vmem %s2412_s6, 256  ;;  %p3458_p9 = scmp.lt.s32.totalorder %s2412_s6, %s2412_s6 }
 0x797   :  { %p3454_p8 = scmp.ne.s32.totalorder %s2412_s6, %s3453_s30  ;;  %p3459_p10 = scmp.lt.s32.totalorder %s3453_s30, %s3453_s30 }
 0x799   :  { %p3460_p11 = por %p3459_p10, %p3458_p9 }
 0x79b   :  { %p3461_p12 = pnand %p3460_p11, %p3454_p8 }
 0x79d   :  { %3464 = shalt.err (!%p3461_p12)
}
 0x79e   :  { %s4084_s17 = sld [smem:[#allocation51_spill]] }
 0x7a4   :  { %s3465_s25 = scalar_lea.hbm %s4084_s17, 256 }
 0x7a5   :  { %p3466_p13 = scmp.ne.s32.totalorder %s4084_s17, %s3465_s25  ;;  %p3469_p0 = scmp.lt.u32.totalorder %s3465_s25, %s4084_s17 }
 0x7a7   :  { %p3471_p1 = pnand %p3469_p0, %p3466_p13 }
 0x7a9   :  { %3474 = shalt.err (!%p3471_p1)
}
 0x7aa   :  { %2417 = dma.vmem_to_hbm [thread:$0]  %s2412_s6, 256, %s4084_s17, [#allocation27], %s3523_s26, %s3523_s26, %s3524_s2  }
 0x7ab   :  { %s4085_s18 = sld [smem:[#allocation49_spill]]  ;;  %s3540_s26 = smov [#allocation25]  }
 0x7ac   :  { %s2387_s2 = sshll.u32 %s3540_s26, 4  ;;  %s2388_s2 = int_to_ptr.vmem [resolvable:$true] %s2387_s2 }
 0x7ad   :  { %s3475_s3 = scalar_lea.vmem %s2388_s2, 512  ;;  %p3480_p3 = scmp.lt.s32.totalorder %s2388_s2, %s2388_s2 }
 0x7ae   :  { %p3476_p2 = scmp.ne.s32.totalorder %s2388_s2, %s3475_s3  ;;  %p3481_p4 = scmp.lt.s32.totalorder %s3475_s3, %s3475_s3 }
 0x7b0   :  { %p3482_p5 = por %p3481_p4, %p3480_p3 }
 0x7b1   :  { %v2131_v61 = vld [vmem:[%s4085_s18] sm:$0x3] }
 0x7b2   :  { %v2136_v62 = vrot.slane %v2131_v61, %v3927_v20  ;;  %v2140_v63 = vrot.slane %v2131_v61, %v3932_v22  ;;  %p3483_p6 = pnand %p3482_p5, %p3476_p2 }
 0x85e   :  { %v2337_v1 = vpop.f32.mrb[16].mxu1 }
 0x85f   :  { %v2338_v2 = vadd.f32 %v2337_v1, %v2136_v62  ;;  %v2339_v3 = vpop.f32.mrb[17].mxu1 }
 0x860   :  { %v2340_v4 = vadd.f32 %v2339_v3, %v2140_v63  ;;  %v2341_v5 = vpop.f32.mrb[18].mxu1 }
 0x861   :  { %v2674_v6 = vclamps-f32 %v2338_v2, 30.0  ;;  %v2342_v7 = vadd.f32 %v2341_v5, %v2136_v62  ;;  %v2343_v8 = vpop.f32.mrb[19].mxu1 }
 0x862   :  { %v2675_v9 = vclamps-f32 %v2340_v4, 30.0  ;;  %v2344_v10 = vadd.f32 %v2343_v8, %v2140_v63 }
 0x863   :  { %v2354_v31 = vsub.f32 0.0, %v2674_v6  ;;  %v2676_v32 = vclamps-f32 %v2342_v7, 30.0 }
 0x864   :  { %v2355_v0 = vsub.f32 0.0, %v2675_v9  ;;  %v2677_v36 = vclamps-f32 %v2344_v10, 30.0 }
 0x865   :  { %v2358_v11 = vmul.f32 1.442695, %v2354_v31  ;;  %v2356_v12 = vsub.f32 0.0, %v2676_v32 }
 0x866   :  { %v2360_v13 = vmul.f32 1.442695, %v2355_v0  ;;  %v2357_v20 = vsub.f32 0.0, %v2677_v36 }
 0x867   :  { %3107 = vpow2.f32 %v2358_v11  ;;  %v2362_v22 = vmul.f32 1.442695, %v2356_v12 }
 0x868   :  { %3109 = vpow2.f32 %v2360_v13  ;;  %v2364_v14 = vmul.f32 1.442695, %v2357_v20 }
 0x869   :  { %3111 = vpow2.f32 %v2362_v22 }
 0x86a   :  { %3113 = vpow2.f32 %v2364_v14 }
 0x871   :  { %v3108_v15 = vpop.eup %3107 }
 0x872   :  { %v3110_v16 = vpop.eup %3109  ;;  %v2366_v17 = vadd.f32 1.0, %v3108_v15 }
 0x873   :  { %v3112_v18 = vpop.eup %3111  ;;  %v2367_v19 = vadd.f32 1.0, %v3110_v16 }
 0x874   :  { %v3114_v21 = vpop.eup %3113  ;;  %3115 = vrcp.f32 %v2366_v17  ;;  %v2368_v23 = vadd.f32 1.0, %v3112_v18 }
 0x875   :  { %3117 = vrcp.f32 %v2367_v19  ;;  %v2369_v24 = vadd.f32 1.0, %v3114_v21 }
 0x876   :  { %3119 = vrcp.f32 %v2368_v23 }
 0x877   :  { %3121 = vrcp.f32 %v2369_v24 }
 0x87e   :  { %v3116_v25 = vpop.eup %3115 }
 0x87f   :  { %v3118_v26 = vpop.eup %3117  ;;  %2374 = vst [vmem:[#allocation25] sm:$0xff] %v3116_v25 }
 0x880   :  { %v3120_v27 = vpop.eup %3119  ;;  %2375 = vst [vmem:[#allocation25 + $0x8] sm:$0xff] %v3118_v26 }
 0x881   :  { %v3122_v28 = vpop.eup %3121  ;;  %2376 = vst [vmem:[#allocation25 + $0x10] sm:$0xff] %v3120_v27 }
 0x882   :  { %2377 = vst [vmem:[#allocation25 + $0x18] sm:$0xff] %v3122_v28 }
 0x883   :  { %3486 = shalt.err (!%p3483_p6)
}
 0x884   :  { %s4086_s9 = sld [smem:[#allocation50_spill]] }
 0x88a   :  { %s3487_s4 = scalar_lea.hbm %s4086_s9, 512 }
 0x88b   :  { %p3488_p7 = scmp.ne.s32.totalorder %s4086_s9, %s3487_s4  ;;  %p3491_p8 = scmp.lt.u32.totalorder %s3487_s4, %s4086_s9 }
 0x88d   :  { %p3493_p9 = pnand %p3491_p8, %p3488_p7 }
 0x88f   :  { %3496 = shalt.err (!%p3493_p9)
}
 0x890   :  { %s3541_s10 = smov 256   ;;  %s3542_s21 = smov 16  }
 0x891   :  { %2393 = dma.vmem_to_hbm [thread:$0]  %s2388_s2, 512, %s4086_s9, [#allocation4], %s3541_s10, %s3541_s10, %s3542_s21  }
 0x892   :  { %3513 = dma.done.wait [#allocation4], 512  }
 0x893   :  { %3514 = vsyncadd [#allocation4], 4294966784 }
 0x894   :  { %3515 = dma.done.wait [#allocation27], 512  }
 0x895   :  { %3516 = vsyncadd [#allocation27], 4294966784 }
 0x896   :  { %2427 = vsyncpa [#allocation3], 1 }
 0x897   :  { %2428 = vsyncpa [#allocation6], 1 }
 0x898   :  { %2429 = vsyncpa [#allocation9], 1 }
 0x899   :  { %2430 = vsyncpa [#allocation12], 1 }
 0x89a   :  { %2431 = vsyncpa [#allocation15], 1 }
 0x89b   :  { %2432 = vsyncpa [#allocation18], 1 }
 0x89c   :  { %2433 = vsyncpa [#allocation21], 1 }
 0x89d   :  { %2434 = vsyncpa [#allocation24], 1 }
 0x89e   :  { %2435 = vsyncpa [#allocation4], 1 }
 0x89f   :  { %2436 = vsyncpa [#allocation27], 1 }

</bundles_post_ra>
